<compile_context>
chip_gen: v7x
topology: tpu7x:2x2x1
jax: 0.10.0
libtpu: 0.0.40
codegen_flags: <defaults>
</compile_context>

<pallas_src>
import numpy as np
import jax
import jax.numpy as jnp
from jax import lax
from jax.experimental import pallas as pl
from jax.experimental.pallas import tpu as pltpu


LANE = 128


def _round_up(x, m):
    return (x + m - 1) // m * m


def make_tap_masks(H, W):
    """(9, HW, 1) 0/1 masks: tap k=(ky,kx) is valid at pixel (h,w) iff the
    source pixel (h+ky-1, w+kx-1) lies inside the image (zero padding)."""
    m = np.zeros((9, H * W, 1), np.float32)
    for k in range(9):
        dy, dx = k // 3 - 1, k % 3 - 1
        for h in range(H):
            hh = h + dy
            if not (0 <= hh < H):
                continue
            for w in range(W):
                if 0 <= w + dx < W:
                    m[k, h * W + w, 0] = 1.0
    return jnp.asarray(m)


def bottleneck_pallas(x_nchw, params):
    (w1, s1, b1, w2, s2, b2, w3, s3, b3) = params
    N, Cin, H, W = x_nchw.shape
    Cmid = w1.shape[1]
    Cout = w3.shape[1]
    assert Cin == Cout, "identity shortcut requires in_channels == out_channels*4"
    HW = H * W

    Cin_p = _round_up(Cin, LANE)
    Cmid_p = _round_up(Cmid, LANE)
    Cout_p = _round_up(Cout, LANE)

    # Fold the BN scale into the conv weights (per output channel).
    w1f = w1 * s1[None, :]
    w2f = w2 * s2[None, None, None, :]          # HWIO, scale output channels
    w3f = w3 * s3[None, :]

    # Zero-pad channels to lane width; cast weights to bf16 for the MXU.
    w1p = jnp.pad(w1f, ((0, Cin_p - Cin), (0, Cmid_p - Cmid))).astype(jnp.bfloat16)
    w2p = jnp.pad(w2f, ((0, 0), (0, 0),
                        (0, Cmid_p - Cmid), (0, Cmid_p - Cmid)))
    w2p = w2p.reshape(9 * Cmid_p, Cmid_p).astype(jnp.bfloat16)
    w3p = jnp.pad(w3f, ((0, Cmid_p - Cmid), (0, Cout_p - Cout))).astype(jnp.bfloat16)
    b1p = jnp.pad(b1, (0, Cmid_p - Cmid)).reshape(1, Cmid_p).astype(jnp.float32)
    b2p = jnp.pad(b2, (0, Cmid_p - Cmid)).reshape(1, Cmid_p).astype(jnp.float32)
    b3p = jnp.pad(b3, (0, Cout_p - Cout)).reshape(1, Cout_p).astype(jnp.float32)

    # NCHW -> (N, HW, C), channel-padded so the last dim is lane-dense.
    x_flat = jnp.transpose(x_nchw, (0, 2, 3, 1)).reshape(N, HW, Cin)
    x_flat = jnp.pad(x_flat, ((0, 0), (0, 0), (0, Cin_p - Cin))).astype(jnp.float32)

    tapmask = make_tap_masks(H, W)              # (9, HW, 1) f32, O(HW) tiny

    def kernel(x_ref, w1_ref, b1_ref, tm_ref, w2_ref, b2_ref, w3_ref, b3_ref,
               o_ref):
        x32 = x_ref[0]                          # (HW, Cin_p) f32

        # conv1 (1x1, BN scale folded) + bias + relu
        y1 = jnp.dot(x32.astype(jnp.bfloat16), w1_ref[...],
                     preferred_element_type=jnp.float32)
        y1 = jnp.maximum(y1 + b1_ref[...], 0.0)              # (HW, Cmid_p) f32

        # conv2 (3x3, stride=1, pad=1): build 9 shifted taps on-chip and
        # contract them with one K = 9*Cmid_p matmul.
        taps = []
        for k in range(9):
            dy, dx = k // 3 - 1, k % 3 - 1
            d = dy * W + dx
            if d == 0:
                taps.append(y1)
                continue
            if d > 0:
                shifted = jnp.concatenate(
                    [y1[d:, :], jnp.zeros((d, Cmid_p), jnp.float32)], axis=0)
            else:
                shifted = jnp.concatenate(
                    [jnp.zeros((-d, Cmid_p), jnp.float32), y1[:HW + d, :]],
                    axis=0)
            taps.append(shifted * tm_ref[k])                  # zero the border
        slab = jnp.concatenate(taps, axis=1).astype(jnp.bfloat16)  # (HW, 9*Cmid_p)
        y2 = jnp.dot(slab, w2_ref[...], preferred_element_type=jnp.float32)
        y2 = jnp.maximum(y2 + b2_ref[...], 0.0)               # (HW, Cmid_p) f32

        # conv3 (1x1) + bias + identity residual + relu
        y3 = jnp.dot(y2.astype(jnp.bfloat16), w3_ref[...],
                     preferred_element_type=jnp.float32)
        y3 = y3 + b3_ref[...] + x32
        o_ref[0] = jnp.maximum(y3, 0.0).astype(o_ref.dtype)

    def full(shape):
        return pl.BlockSpec(shape, lambda n, _nd=len(shape): (0,) * _nd)

    out_flat = pl.pallas_call(
        kernel,
        out_shape=jax.ShapeDtypeStruct((N, HW, Cout_p), jnp.float32),
        grid=(N,),
        in_specs=[
            pl.BlockSpec((1, HW, Cin_p), lambda n: (n, 0, 0)),   # x
            full(w1p.shape), full(b1p.shape),                    # conv1 / bn1 bias
            full(tapmask.shape),                                 # 3x3 border masks
            full(w2p.shape), full(b2p.shape),                    # conv2 / bn2 bias
            full(w3p.shape), full(b3p.shape),                    # conv3 / bn3 bias
        ],
        out_specs=pl.BlockSpec((1, HW, Cout_p), lambda n: (n, 0, 0)),
        compiler_params=pltpu.CompilerParams(
            dimension_semantics=("parallel",),
            vmem_limit_bytes=32 * 1024 * 1024),
    )(x_flat, w1p, b1p, tapmask, w2p, b2p, w3p, b3p)

    out = out_flat.reshape(N, H, W, Cout_p)[..., :Cout]
    return jnp.transpose(out, (0, 3, 1, 2))


def bottleneck_ref(x_nchw, params):
    """Pure-JAX f32 reference (lax conv) for correctness checking."""
    (w1, s1, b1, w2, s2, b2, w3, s3, b3) = params
    dn = ('NHWC', 'HWIO', 'NHWC')
    hp = lax.Precision.HIGHEST
    x = jnp.transpose(x_nchw, (0, 2, 3, 1))
    y = lax.conv_general_dilated(x, w1[None, None], (1, 1), 'SAME',
                                 dimension_numbers=dn, precision=hp)
    y = jnp.maximum(y * s1 + b1, 0.0)
    y = lax.conv_general_dilated(y, w2, (1, 1), 'SAME',
                                 dimension_numbers=dn, precision=hp)
    y = jnp.maximum(y * s2 + b2, 0.0)
    y = lax.conv_general_dilated(y, w3[None, None], (1, 1), 'SAME',
                                 dimension_numbers=dn, precision=hp)
    y = y * s3 + b3
    y = jnp.maximum(y + x, 0.0)
    return jnp.transpose(y, (0, 3, 1, 2))


def fold_bn(gamma, beta, mean, var, eps=1e-5):
    scale = gamma / jnp.sqrt(var + eps)
    bias = beta - mean * scale
    return scale, bias


def init_params(key, in_channels, out_channels, expansion=4):
    Cin, Cmid, Cout = in_channels, out_channels, out_channels * expansion
    ks = jax.random.split(key, 6)
    w1 = 0.2 * jax.random.normal(ks[0], (Cin, Cmid), jnp.float32)
    w2 = 0.2 * jax.random.normal(ks[1], (3, 3, Cmid, Cmid), jnp.float32)  # HWIO
    w3 = 0.2 * jax.random.normal(ks[2], (Cmid, Cout), jnp.float32)

    def bn(k, c):
        k1, k2, k3, k4 = jax.random.split(k, 4)
        gamma = 1.0 + 0.1 * jax.random.normal(k1, (c,), jnp.float32)
        beta = 0.1 * jax.random.normal(k2, (c,), jnp.float32)
        mean = 0.05 * jax.random.normal(k3, (c,), jnp.float32)
        var = jax.random.uniform(k4, (c,), jnp.float32, 0.5, 1.5)
        return fold_bn(gamma, beta, mean, var)

    s1, b1 = bn(ks[3], Cmid)
    s2, b2 = bn(ks[4], Cmid)
    s3, b3 = bn(ks[5], Cout)
    return (w1, s1, b1, w2, s2, b2, w3, s3, b3)


if __name__ == "__main__":
    key = jax.random.PRNGKey(0)
    k_x, k_p = jax.random.split(key)

    # in_channels == out_channels * expansion, stride=1, downsample=None
    # -> the identity residual is valid (matches the module's usage).
    N, in_channels, out_channels, H, W = 2, 16, 4, 16, 16
    x = jax.random.normal(k_x, (N, in_channels, H, W), jnp.float32)   # NCHW
    params = init_params(k_p, in_channels, out_channels)

    out = jax.block_until_ready(bottleneck_pallas(x, params))
    ref = jax.block_until_ready(bottleneck_ref(x, params))

    assert out.shape == (N, out_channels * 4, H, W)
    # bf16 MXU operands with f32 accumulation -> compare with a loose tolerance.
    ok = bool(jnp.allclose(out, ref, atol=1e-1, rtol=5e-2))
    assert ok, (
        f"mismatch vs reference: max |err| = {float(jnp.max(jnp.abs(out - ref)))}")
    print("KERNEL_OK")
</pallas_src>

<mosaic_0001>
module attributes {stable_mosaic.version = 11 : i64} {
  func.func @kernel(%arg0: i32, %arg1: memref<1x256x128xf32, #tpu.memory_space<vmem>>, %arg2: memref<128x128xbf16, #tpu.memory_space<vmem>>, %arg3: memref<1x128xf32, #tpu.memory_space<vmem>>, %arg4: memref<9x256x1xf32, #tpu.memory_space<vmem>>, %arg5: memref<1152x128xbf16, #tpu.memory_space<vmem>>, %arg6: memref<1x128xf32, #tpu.memory_space<vmem>>, %arg7: memref<128x128xbf16, #tpu.memory_space<vmem>>, %arg8: memref<1x128xf32, #tpu.memory_space<vmem>>, %arg9: memref<1x256x128xf32, #tpu.memory_space<vmem>>) attributes {dimension_semantics = [#tpu.dimension_semantics<parallel>], iteration_bounds = array<i64: 2>, scalar_prefetch = 0 : i64, scratch_operands = 0 : i64, tpu.core_type = #tpu.core_type<tc>, window_params = [{transform_indices = @transform_0, window_bounds = array<i64: 1, 256, 128>}, {pipeline_mode = #tpu.pipeline_mode<synchronous>, transform_indices = @transform_1, window_bounds = array<i64: 128, 128>}, {pipeline_mode = #tpu.pipeline_mode<synchronous>, transform_indices = @transform_2, window_bounds = array<i64: 1, 128>}, {pipeline_mode = #tpu.pipeline_mode<synchronous>, transform_indices = @transform_3, window_bounds = array<i64: 9, 256, 1>}, {pipeline_mode = #tpu.pipeline_mode<synchronous>, transform_indices = @transform_4, window_bounds = array<i64: 1152, 128>}, {pipeline_mode = #tpu.pipeline_mode<synchronous>, transform_indices = @transform_5, window_bounds = array<i64: 1, 128>}, {pipeline_mode = #tpu.pipeline_mode<synchronous>, transform_indices = @transform_6, window_bounds = array<i64: 128, 128>}, {pipeline_mode = #tpu.pipeline_mode<synchronous>, transform_indices = @transform_7, window_bounds = array<i64: 1, 128>}, {transform_indices = @transform_8, window_bounds = array<i64: 1, 256, 128>}]} {
    %c0 = arith.constant 0 : index
    %c0_0 = arith.constant 0 : index
    %c0_1 = arith.constant 0 : index
    %0 = vector.load %arg1[%c0, %c0_0, %c0_1] : memref<1x256x128xf32, #tpu.memory_space<vmem>>, vector<1x256x128xf32>
    %1 = vector.shape_cast %0 : vector<1x256x128xf32> to vector<256x128xf32>
    %2 = arith.truncf %1 : vector<256x128xf32> to vector<256x128xbf16>
    %c0_2 = arith.constant 0 : index
    %c0_3 = arith.constant 0 : index
    %3 = vector.load %arg2[%c0_2, %c0_3] : memref<128x128xbf16, #tpu.memory_space<vmem>>, vector<128x128xbf16>
    %cst = arith.constant dense<0.000000e+00> : vector<256x128xf32>
    %4 = tpu.matmul %2, %3, %cst {dimension_numbers = #tpu.dot_dimension_numbers<[1], [0], [0], [1], [0, 0, 1, 1], [], []>} : vector<256x128xbf16>, vector<128x128xbf16>, vector<256x128xf32> -> vector<256x128xf32>
    %c0_4 = arith.constant 0 : index
    %c0_5 = arith.constant 0 : index
    %5 = vector.load %arg3[%c0_4, %c0_5] : memref<1x128xf32, #tpu.memory_space<vmem>>, vector<1x128xf32>
    %6 = vector.broadcast %5 : vector<1x128xf32> to vector<256x128xf32>
    %7 = arith.addf %4, %6 : vector<256x128xf32>
    %cst_6 = arith.constant 0.000000e+00 : f32
    %8 = vector.broadcast %cst_6 : f32 to vector<256x128xf32>
    %9 = arith.maximumf %7, %8 : vector<256x128xf32>
    %cst_7 = arith.constant 0.000000e+00 : f32
    %10 = vector.broadcast %cst_7 : f32 to vector<17x128xf32>
    %11 = vector.extract_strided_slice %9 {offsets = [0, 0], sizes = [239, 128], strides = [1, 1]} : vector<256x128xf32> to vector<239x128xf32>
    %12 = tpu.concatenate %10, %11 in 0 : vector<17x128xf32>, vector<239x128xf32> -> vector<256x128xf32>
    %c0_8 = arith.constant 0 : index
    %c0_9 = arith.constant 0 : index
    %c0_10 = arith.constant 0 : index
    %13 = vector.load %arg4[%c0_8, %c0_9, %c0_10] : memref<9x256x1xf32, #tpu.memory_space<vmem>>, vector<1x256x1xf32>
    %14 = vector.shape_cast %13 : vector<1x256x1xf32> to vector<256x1xf32>
    %15 = vector.broadcast %14 : vector<256x1xf32> to vector<256x128xf32>
    %16 = arith.mulf %12, %15 : vector<256x128xf32>
    %cst_11 = arith.constant 0.000000e+00 : f32
    %17 = vector.broadcast %cst_11 : f32 to vector<16x128xf32>
    %18 = vector.extract_strided_slice %9 {offsets = [0, 0], sizes = [240, 128], strides = [1, 1]} : vector<256x128xf32> to vector<240x128xf32>
    %19 = tpu.concatenate %17, %18 in 0 : vector<16x128xf32>, vector<240x128xf32> -> vector<256x128xf32>
    %c1 = arith.constant 1 : index
    %c0_12 = arith.constant 0 : index
    %c0_13 = arith.constant 0 : index
    %20 = vector.load %arg4[%c1, %c0_12, %c0_13] : memref<9x256x1xf32, #tpu.memory_space<vmem>>, vector<1x256x1xf32>
    %21 = vector.shape_cast %20 : vector<1x256x1xf32> to vector<256x1xf32>
    %22 = vector.broadcast %21 : vector<256x1xf32> to vector<256x128xf32>
    %23 = arith.mulf %19, %22 : vector<256x128xf32>
    %cst_14 = arith.constant 0.000000e+00 : f32
    %24 = vector.broadcast %cst_14 : f32 to vector<15x128xf32>
    %25 = vector.extract_strided_slice %9 {offsets = [0, 0], sizes = [241, 128], strides = [1, 1]} : vector<256x128xf32> to vector<241x128xf32>
    %26 = tpu.concatenate %24, %25 in 0 : vector<15x128xf32>, vector<241x128xf32> -> vector<256x128xf32>
    %c2 = arith.constant 2 : index
    %c0_15 = arith.constant 0 : index
    %c0_16 = arith.constant 0 : index
    %27 = vector.load %arg4[%c2, %c0_15, %c0_16] : memref<9x256x1xf32, #tpu.memory_space<vmem>>, vector<1x256x1xf32>
    %28 = vector.shape_cast %27 : vector<1x256x1xf32> to vector<256x1xf32>
    %29 = vector.broadcast %28 : vector<256x1xf32> to vector<256x128xf32>
    %30 = arith.mulf %26, %29 : vector<256x128xf32>
    %cst_17 = arith.constant 0.000000e+00 : f32
    %31 = vector.broadcast %cst_17 : f32 to vector<1x128xf32>
    %32 = vector.extract_strided_slice %9 {offsets = [0, 0], sizes = [255, 128], strides = [1, 1]} : vector<256x128xf32> to vector<255x128xf32>
    %33 = tpu.concatenate %31, %32 in 0 : vector<1x128xf32>, vector<255x128xf32> -> vector<256x128xf32>
    %c3 = arith.constant 3 : index
    %c0_18 = arith.constant 0 : index
    %c0_19 = arith.constant 0 : index
    %34 = vector.load %arg4[%c3, %c0_18, %c0_19] : memref<9x256x1xf32, #tpu.memory_space<vmem>>, vector<1x256x1xf32>
    %35 = vector.shape_cast %34 : vector<1x256x1xf32> to vector<256x1xf32>
    %36 = vector.broadcast %35 : vector<256x1xf32> to vector<256x128xf32>
    %37 = arith.mulf %33, %36 : vector<256x128xf32>
    %38 = vector.extract_strided_slice %9 {offsets = [1, 0], sizes = [255, 128], strides = [1, 1]} : vector<256x128xf32> to vector<255x128xf32>
    %cst_20 = arith.constant 0.000000e+00 : f32
    %39 = vector.broadcast %cst_20 : f32 to vector<1x128xf32>
    %40 = tpu.concatenate %38, %39 in 0 : vector<255x128xf32>, vector<1x128xf32> -> vector<256x128xf32>
    %c5 = arith.constant 5 : index
    %c0_21 = arith.constant 0 : index
    %c0_22 = arith.constant 0 : index
    %41 = vector.load %arg4[%c5, %c0_21, %c0_22] : memref<9x256x1xf32, #tpu.memory_space<vmem>>, vector<1x256x1xf32>
    %42 = vector.shape_cast %41 : vector<1x256x1xf32> to vector<256x1xf32>
    %43 = vector.broadcast %42 : vector<256x1xf32> to vector<256x128xf32>
    %44 = arith.mulf %40, %43 : vector<256x128xf32>
    %45 = vector.extract_strided_slice %9 {offsets = [15, 0], sizes = [241, 128], strides = [1, 1]} : vector<256x128xf32> to vector<241x128xf32>
    %cst_23 = arith.constant 0.000000e+00 : f32
    %46 = vector.broadcast %cst_23 : f32 to vector<15x128xf32>
    %47 = tpu.concatenate %45, %46 in 0 : vector<241x128xf32>, vector<15x128xf32> -> vector<256x128xf32>
    %c6 = arith.constant 6 : index
    %c0_24 = arith.constant 0 : index
    %c0_25 = arith.constant 0 : index
    %48 = vector.load %arg4[%c6, %c0_24, %c0_25] : memref<9x256x1xf32, #tpu.memory_space<vmem>>, vector<1x256x1xf32>
    %49 = vector.shape_cast %48 : vector<1x256x1xf32> to vector<256x1xf32>
    %50 = vector.broadcast %49 : vector<256x1xf32> to vector<256x128xf32>
    %51 = arith.mulf %47, %50 : vector<256x128xf32>
    %52 = vector.extract_strided_slice %9 {offsets = [16, 0], sizes = [240, 128], strides = [1, 1]} : vector<256x128xf32> to vector<240x128xf32>
    %cst_26 = arith.constant 0.000000e+00 : f32
    %53 = vector.broadcast %cst_26 : f32 to vector<16x128xf32>
    %54 = tpu.concatenate %52, %53 in 0 : vector<240x128xf32>, vector<16x128xf32> -> vector<256x128xf32>
    %c7 = arith.constant 7 : index
    %c0_27 = arith.constant 0 : index
    %c0_28 = arith.constant 0 : index
    %55 = vector.load %arg4[%c7, %c0_27, %c0_28] : memref<9x256x1xf32, #tpu.memory_space<vmem>>, vector<1x256x1xf32>
    %56 = vector.shape_cast %55 : vector<1x256x1xf32> to vector<256x1xf32>
    %57 = vector.broadcast %56 : vector<256x1xf32> to vector<256x128xf32>
    %58 = arith.mulf %54, %57 : vector<256x128xf32>
    %59 = vector.extract_strided_slice %9 {offsets = [17, 0], sizes = [239, 128], strides = [1, 1]} : vector<256x128xf32> to vector<239x128xf32>
    %cst_29 = arith.constant 0.000000e+00 : f32
    %60 = vector.broadcast %cst_29 : f32 to vector<17x128xf32>
    %61 = tpu.concatenate %59, %60 in 0 : vector<239x128xf32>, vector<17x128xf32> -> vector<256x128xf32>
    %c8 = arith.constant 8 : index
    %c0_30 = arith.constant 0 : index
    %c0_31 = arith.constant 0 : index
    %62 = vector.load %arg4[%c8, %c0_30, %c0_31] : memref<9x256x1xf32, #tpu.memory_space<vmem>>, vector<1x256x1xf32>
    %63 = vector.shape_cast %62 : vector<1x256x1xf32> to vector<256x1xf32>
    %64 = vector.broadcast %63 : vector<256x1xf32> to vector<256x128xf32>
    %65 = arith.mulf %61, %64 : vector<256x128xf32>
    %66 = tpu.concatenate %16, %23, %30, %37, %9, %44, %51, %58, %65 in 1 : vector<256x128xf32>, vector<256x128xf32>, vector<256x128xf32>, vector<256x128xf32>, vector<256x128xf32>, vector<256x128xf32>, vector<256x128xf32>, vector<256x128xf32>, vector<256x128xf32> -> vector<256x1152xf32>
    %67 = arith.truncf %66 : vector<256x1152xf32> to vector<256x1152xbf16>
    %c0_32 = arith.constant 0 : index
    %c0_33 = arith.constant 0 : index
    %68 = vector.load %arg5[%c0_32, %c0_33] : memref<1152x128xbf16, #tpu.memory_space<vmem>>, vector<1152x128xbf16>
    %cst_34 = arith.constant dense<0.000000e+00> : vector<256x128xf32>
    %69 = tpu.matmul %67, %68, %cst_34 {dimension_numbers = #tpu.dot_dimension_numbers<[1], [0], [0], [1], [0, 0, 1, 1], [], []>} : vector<256x1152xbf16>, vector<1152x128xbf16>, vector<256x128xf32> -> vector<256x128xf32>
    %c0_35 = arith.constant 0 : index
    %c0_36 = arith.constant 0 : index
    %70 = vector.load %arg6[%c0_35, %c0_36] : memref<1x128xf32, #tpu.memory_space<vmem>>, vector<1x128xf32>
    %71 = vector.broadcast %70 : vector<1x128xf32> to vector<256x128xf32>
    %72 = arith.addf %69, %71 : vector<256x128xf32>
    %cst_37 = arith.constant 0.000000e+00 : f32
    %73 = vector.broadcast %cst_37 : f32 to vector<256x128xf32>
    %74 = arith.maximumf %72, %73 : vector<256x128xf32>
    %75 = arith.truncf %74 : vector<256x128xf32> to vector<256x128xbf16>
    %c0_38 = arith.constant 0 : index
    %c0_39 = arith.constant 0 : index
    %76 = vector.load %arg7[%c0_38, %c0_39] : memref<128x128xbf16, #tpu.memory_space<vmem>>, vector<128x128xbf16>
    %cst_40 = arith.constant dense<0.000000e+00> : vector<256x128xf32>
    %77 = tpu.matmul %75, %76, %cst_40 {dimension_numbers = #tpu.dot_dimension_numbers<[1], [0], [0], [1], [0, 0, 1, 1], [], []>} : vector<256x128xbf16>, vector<128x128xbf16>, vector<256x128xf32> -> vector<256x128xf32>
    %c0_41 = arith.constant 0 : index
    %c0_42 = arith.constant 0 : index
    %78 = vector.load %arg8[%c0_41, %c0_42] : memref<1x128xf32, #tpu.memory_space<vmem>>, vector<1x128xf32>
    %79 = vector.broadcast %78 : vector<1x128xf32> to vector<256x128xf32>
    %80 = arith.addf %77, %79 : vector<256x128xf32>
    %81 = arith.addf %80, %1 : vector<256x128xf32>
    %cst_43 = arith.constant 0.000000e+00 : f32
    %82 = vector.broadcast %cst_43 : f32 to vector<256x128xf32>
    %83 = arith.maximumf %81, %82 : vector<256x128xf32>
    %c0_44 = arith.constant 0 : index
    %c0_45 = arith.constant 0 : index
    %c0_46 = arith.constant 0 : index
    %84 = vector.load %arg9[%c0_44, %c0_45, %c0_46] : memref<1x256x128xf32, #tpu.memory_space<vmem>>, vector<1x256x128xf32>
    %85 = vector.shape_cast %84 : vector<1x256x128xf32> to vector<256x128xf32>
    %86 = vector.shape_cast %83 : vector<256x128xf32> to vector<1x256x128xf32>
    tpu.vector_store %arg9[%c0_44, %c0_45, %c0_46], %86 {strides = array<i32>} : memref<1x256x128xf32, #tpu.memory_space<vmem>>, vector<1x256x128xf32>,
    return
  }
  func.func @transform_0(%arg0: i32) -> (i32, i32, i32) {
    %c0_i32 = arith.constant 0 : i32
    %c0_i32_0 = arith.constant 0 : i32
    %c0_i32_1 = arith.constant 0 : i32
    return %arg0, %c0_i32, %c0_i32_0 : i32, i32, i32
  }
  func.func @transform_1(%arg0: i32) -> (i32, i32) {
    %c0_i32 = arith.constant 0 : i32
    %c0_i32_0 = arith.constant 0 : i32
    %c0_i32_1 = arith.constant 0 : i32
    return %c0_i32, %c0_i32_0 : i32, i32
  }
  func.func @transform_2(%arg0: i32) -> (i32, i32) {
    %c0_i32 = arith.constant 0 : i32
    %c0_i32_0 = arith.constant 0 : i32
    %c0_i32_1 = arith.constant 0 : i32
    return %c0_i32, %c0_i32_0 : i32, i32
  }
  func.func @transform_3(%arg0: i32) -> (i32, i32, i32) {
    %c0_i32 = arith.constant 0 : i32
    %c0_i32_0 = arith.constant 0 : i32
    %c0_i32_1 = arith.constant 0 : i32
    %c0_i32_2 = arith.constant 0 : i32
    return %c0_i32, %c0_i32_0, %c0_i32_1 : i32, i32, i32
  }
  func.func @transform_4(%arg0: i32) -> (i32, i32) {
    %c0_i32 = arith.constant 0 : i32
    %c0_i32_0 = arith.constant 0 : i32
    %c0_i32_1 = arith.constant 0 : i32
    return %c0_i32, %c0_i32_0 : i32, i32
  }
  func.func @transform_5(%arg0: i32) -> (i32, i32) {
    %c0_i32 = arith.constant 0 : i32
    %c0_i32_0 = arith.constant 0 : i32
    %c0_i32_1 = arith.constant 0 : i32
    return %c0_i32, %c0_i32_0 : i32, i32
  }
  func.func @transform_6(%arg0: i32) -> (i32, i32) {
    %c0_i32 = arith.constant 0 : i32
    %c0_i32_0 = arith.constant 0 : i32
    %c0_i32_1 = arith.constant 0 : i32
    return %c0_i32, %c0_i32_0 : i32, i32
  }
  func.func @transform_7(%arg0: i32) -> (i32, i32) {
    %c0_i32 = arith.constant 0 : i32
    %c0_i32_0 = arith.constant 0 : i32
    %c0_i32_1 = arith.constant 0 : i32
    return %c0_i32, %c0_i32_0 : i32, i32
  }
  func.func @transform_8(%arg0: i32) -> (i32, i32, i32) {
    %c0_i32 = arith.constant 0 : i32
    %c0_i32_0 = arith.constant 0 : i32
    %c0_i32_1 = arith.constant 0 : i32
    return %arg0, %c0_i32, %c0_i32_0 : i32, i32, i32
  }
}

</mosaic_0001>

<bundles_post_ra>
// kernel: tpu_custom_call.1
= control target key start
LH: loop header
LB: loop body
LE: loop exit
PB: predicated region body
PF: predicated region fallthrough
CT: control target
= control target key end

     0   :  { %13 = vsyncpa [#allocation3], 0  ;;  %s8549_s0 = inlined_call_operand.vmem [shape: f32[2,256,128], index: 0, kind: input, shape index: {}]   ;;  %s8550_s1 = inlined_call_operand.vmem [shape: bf16[128,128], index: 1, kind: input, shape index: {}]   ;;  %s8551_s2 = inlined_call_operand.vmem [shape: f32[1,128], index: 2, kind: input, shape index: {}]   ;;  %s8552_s3 = inlined_call_operand.vmem [shape: f32[9,256,1], index: 3, kind: input, shape index: {}]   ;;  %s8553_s4 = inlined_call_operand.vmem [shape: bf16[1152,128], index: 4, kind: input, shape index: {}]   ;;  %s8554_s5 = inlined_call_operand.vmem [shape: f32[1,128], index: 5, kind: input, shape index: {}]   ;;  %s8555_s6 = inlined_call_operand.vmem [shape: bf16[128,128], index: 6, kind: input, shape index: {}]   ;;  %s8556_s7 = inlined_call_operand.vmem [shape: f32[1,128], index: 7, kind: input, shape index: {}]   ;;  %s8557_s8 = inlined_call_operand.hbm [shape: f32[2,256,128], index: 8, kind: output, shape index: {}]  }
   0x1   :  { %15 = vsyncpa [#allocation3 + $0x1], 0  ;;  %s5917_s27 = smov 0   ;;  %s5919_s28 = smov 0  }
   0x2   :  { %s5921_s29 = smov 0   ;;  %s5923_s30 = smov 0  }
   0x3 LB: > { %s5938_s9 = sadd.s32 4294967295, %s5866_s30   ;;  %s4630_s10 = sadd.s32 4294967294, %s5866_s30   ;;  %s5866_s30 = sphi %s5923_s30, %s8871_s30   ;;  %s5862_s29 = sphi %s5921_s29, %s8870_s29   ;;  %s5858_s28 = sphi %s5919_s28, %s8869_s28   ;;  %s5854_s27 = sphi %s5917_s27, %s8868_s27  }
   0x4   : > { %s5942_s11 = sadd.s32 1, %s5866_s30   ;;  %s201_s12 = sadd.s32 1, %s5862_s29 }
   0x5   : > { %s198_s13 = ssub.s32 %s5866_s30, %s5942_s11  ;;  %p211_p0 = scmp.ne.s32.totalorder %s5862_s29, %s5858_s28 }
   0x6   : > { %p199_p1 = scmp.eq.s32.totalorder %s198_s13, 0  ;;  %p212_p2 = scmp.eq.s32.totalorder %s5938_s9, 1 }
   0x7   : > { %p217_p3 = scmp.ne.s32.totalorder %s5858_s28, %s5854_s27  ;;  %p218_p4 = scmp.eq.s32.totalorder %s4630_s10, 1 }
   0x8   : > { %s5953_s14 = scalar_select %p199_p1, %s5862_s29, %s201_s12  }
   0x9   : > { %p5955_p5 = por %p212_p2, %p211_p0  ;;  %p5959_p6 = por %p218_p4, %p217_p3 }
   0xa   : > { %p4633_p7 = scmp.ge.s32.totalorder %s5866_s30, 1  ;;  %p265_p8 = scmp.lt.s32.totalorder %s5866_s30, 3 }
   0xc   : > { %p266_p9 = pnand %p4633_p7, %p265_p8 }
   0xe   : > { %269 = sbr.rel (%p266_p9) target bundleno = 1123 (0x463), region = 52 }
  0x15   : > { %v740_v0 = vld [vmem:[%s8552_s3 + $0x10] sm:$0xff]  ;;  %v738_v1 = vld [vmem:[%s8552_s3] sm:$0xff]  ;;  %p299_p10 = scmp.lt.s32.totalorder %s5938_s9, 1  ;;  %v5868_v2 = vmov 0   ;;  %v741_v4 = vld [vmem:[%s8552_s3 + $0x18] sm:$0xff]  ;;  %vm647_vm0 = vcmask 1040384  }
  0x16   : > { %5682 = vset.pattern.permute.xlu1 %v5868_v2  ;;  %5681 = vset.pattern.permute.xlu0 %v5868_v2  ;;  %v5683_v3 = vld [vmem:[%s8550_s1] sm:$0xff]   ;;  %v739_v5 = vld [vmem:[%s8552_s3 + $0x8] sm:$0xff]  ;;  %v5685_v7 = vld [vmem:[%s8550_s1 + $0x10] sm:$0xff]   ;;  %vm1188_vm1 = vcmask 1046528   ;;  %s296_s18 = sand.u32 1, %s5858_s28   ;;  %s5869_s12 = smov [#allocation2]  }
  0x17   : > { %782 = vperm.xlu1 %5682, %v740_v0   ;;  %772 = vperm.xlu0 %5681, %v738_v1   ;;  %v5684_v6 = vld [vmem:[%s8550_s1 + $0x8] sm:$0xff]   ;;  %s300_s13 = scalar_select %p299_p10, %s5938_s9, 1  ;;  %v742_v9 = vld [vmem:[%s8552_s3 + $0x20] sm:$0xff]  ;;  %v5686_v10 = vld [vmem:[%s8550_s1 + $0x18] sm:$0xff]  }
  0x18   : > { %5479 = vmatprep.subr.bf16.mxu0 %v5683_v3  ;;  %5623 = vmatprep.subr.bf16.mxu1 %v5683_v3  ;;  %v743_v8 = vld [vmem:[%s8552_s3 + $0x28] sm:$0xff]  ;;  %v745_v11 = vld [vmem:[%s8552_s3 + $0x38] sm:$0xff]  ;;  %v744_v12 = vld [vmem:[%s8552_s3 + $0x30] sm:$0xff]  ;;  %s4634_s21 = sshll.u32 %s296_s18, 8  ;;  %s5808_s17 = sshll.u32 %s5869_s12, 4  ;;  %s5809_s17 = int_to_ptr.vmem [resolvable:$false] %s5808_s17 }
  0x19   : > { %5480 = vmatpush3.bf16.msra.mxu0 %v5683_v3  ;;  %5631 = vmatpush3.bf16.msra.mxu1 %v5683_v3  ;;  %s4957_s23 = sshll.u32 %s300_s13, 8  ;;  %v5687_v13 = vld [vmem:[%s8550_s1 + $0x20] sm:$0xff]   ;;  %v747_v17 = vld [vmem:[%s8552_s3 + $0x48] sm:$0xff]  ;;  %v749_v23 = vld [vmem:[%s8552_s3 + $0x58] sm:$0xff]  ;;  %s8407_s22 = scalar_lea.vmem [#allocation2], %s4634_s21 }
  0x1a   : > { %5481 = vmatprep.subr.bf16.mxu0 %v5684_v6  ;;  %5624 = vmatprep.subr.bf16.mxu1 %v5684_v6  ;;  %s6008_s13 = scalar_lea.vmem %s8549_s0, %s4957_s23  ;;  %v746_v18 = vld [vmem:[%s8552_s3 + $0x40] sm:$0xff]  ;;  %v5688_v22 = vld [vmem:[%s8550_s1 + $0x28] sm:$0xff]   ;;  %v748_v24 = vld [vmem:[%s8552_s3 + $0x50] sm:$0xff]  ;;  %s4958_s23 = sshll.u32 %s5938_s9, 12 }
  0x1b   : > { %787 = vperm.xlu1 %5682, %v741_v4   ;;  %777 = vperm.xlu0 %5681, %v739_v5   ;;  %v305_v14 = vld [vmem:[%s6008_s13] sm:$0xff]  ;;  %v306_v15 = vld [vmem:[%s6008_s13 + $0x8] sm:$0xff]  ;;  %v5689_v25 = vld [vmem:[%s8550_s1 + $0x30] sm:$0xff]   ;;  %s4568_s24 = sshll.u32 %s8407_s22, 4  ;;  %s8499_s10 = scalar_lea.hbm %s8557_s8, %s4958_s23  ;;  %s8501_s24 = int_to_ptr.vmem [resolvable:$true] %s4568_s24 }
  0x1c   : > { %v321_v16 = vld [vmem:[%s6008_s13 + $0x80] sm:$0xff]  ;;  %v337_v19 = vpack.c.bf16 %v306_v15, %v305_v14  ;;  %v322_v20 = vld [vmem:[%s6008_s13 + $0x88] sm:$0xff]  ;;  %v5690_v28 = vld [vmem:[%s8550_s1 + $0x38] sm:$0xff]   ;;  %s8508_s9 = scalar_lea.sflag [#allocation3], %s296_s18  ;;  %s5810_s19 = scalar_lea.vmem %s5809_s17, 8192 }
  0x1d   : > { %5482 = vmatpush3.bf16.msra.mxu0 %v5684_v6  ;;  %5632 = vmatpush3.bf16.msra.mxu1 %v5684_v6  ;;  %v345_v21 = vpack.c.bf16 %v322_v20, %v321_v16  ;;  %v751_v26 = vld [vmem:[%s8552_s3 + $0x68] sm:$0xff]  ;;  %v750_v27 = vld [vmem:[%s8552_s3 + $0x60] sm:$0xff]  ;;  %v753_v29 = vld [vmem:[%s8552_s3 + $0x78] sm:$0xff]  ;;  %p5811_p0 = scmp.lt.s32.totalorder %s8501_s24, %s5809_s17 }
  0x1e   : > { %5483 = vmatprep.subr.bf16.mxu0 %v5685_v7  ;;  %5625 = vmatprep.subr.bf16.mxu1 %v5685_v7  ;;  %v752_v30 = vld [vmem:[%s8552_s3 + $0x70] sm:$0xff]  ;;  %v308_v32 = vld [vmem:[%s6008_s13 + $0x18] sm:$0xff]  ;;  %v309_v35 = vld [vmem:[%s6008_s13 + $0x20] sm:$0xff] }
  0x1f   : > { %797 = vperm.xlu1 %5682, %v743_v8   ;;  %792 = vperm.xlu0 %5681, %v742_v9   ;;  %v307_v31 = vld [vmem:[%s6008_s13 + $0x10] sm:$0xff]  ;;  %v324_v34 = vld [vmem:[%s6008_s13 + $0x98] sm:$0xff]  ;;  %v310_v36 = vld [vmem:[%s6008_s13 + $0x28] sm:$0xff] }
  0x20   : > { %5495 = vmatprep.mubr.bf16.mxu0 %v337_v19  ;;  %5511 = vmatprep.mubr.bf16.mxu1 %v345_v21  ;;  %v323_v33 = vld [vmem:[%s6008_s13 + $0x90] sm:$0xff]  ;;  %v325_v37 = vld [vmem:[%s6008_s13 + $0xa0] sm:$0xff]  ;;  %v326_v38 = vld [vmem:[%s6008_s13 + $0xa8] sm:$0xff]  ;;  %v338_v41 = vpack.c.bf16 %v308_v32, %v307_v31  ;;  %v339_v43 = vpack.c.bf16 %v310_v36, %v309_v35 }
  0x21   : > { %5484 = vmatpush3.bf16.msra.mxu0 %v5685_v7  ;;  %5633 = vmatpush3.bf16.msra.mxu1 %v5685_v7  ;;  %v755_v39 = vld [vmem:[%s8552_s3 + $0x88] sm:$0xff]  ;;  %v754_v40 = vld [vmem:[%s8552_s3 + $0x80] sm:$0xff]  ;;  %v346_v42 = vpack.c.bf16 %v324_v34, %v323_v33  ;;  %v347_v44 = vpack.c.bf16 %v326_v38, %v325_v37  ;;  %v757_v45 = vld [vmem:[%s8552_s3 + $0x98] sm:$0xff] }
  0x22   : > { %5485 = vmatprep.subr.bf16.mxu0 %v5686_v10  ;;  %5626 = vmatprep.subr.bf16.mxu1 %v5686_v10  ;;  %v756_v46 = vld [vmem:[%s8552_s3 + $0x90] sm:$0xff]  ;;  %v312_v48 = vld [vmem:[%s6008_s13 + $0x38] sm:$0xff]  ;;  %v313_v51 = vld [vmem:[%s6008_s13 + $0x40] sm:$0xff] }
  0x23   : > { %807 = vperm.xlu1 %5682, %v745_v11   ;;  %802 = vperm.xlu0 %5681, %v744_v12   ;;  %v311_v47 = vld [vmem:[%s6008_s13 + $0x30] sm:$0xff]  ;;  %v328_v50 = vld [vmem:[%s6008_s13 + $0xb8] sm:$0xff]  ;;  %v314_v52 = vld [vmem:[%s6008_s13 + $0x48] sm:$0xff] }
  0x24   : > { %v327_v49 = vld [vmem:[%s6008_s13 + $0xb0] sm:$0xff]  ;;  %v329_v53 = vld [vmem:[%s6008_s13 + $0xc0] sm:$0xff]  ;;  %v330_v54 = vld [vmem:[%s6008_s13 + $0xc8] sm:$0xff]  ;;  %v340_v57 = vpack.c.bf16 %v312_v48, %v311_v47  ;;  %v341_v59 = vpack.c.bf16 %v314_v52, %v313_v51 }
  0x25   : > { %5486 = vmatpush3.bf16.msra.mxu0 %v5686_v10  ;;  %5634 = vmatpush3.bf16.msra.mxu1 %v5686_v10  ;;  %v759_v55 = vld [vmem:[%s8552_s3 + $0xa8] sm:$0xff]  ;;  %v758_v56 = vld [vmem:[%s8552_s3 + $0xa0] sm:$0xff]  ;;  %v348_v58 = vpack.c.bf16 %v328_v50, %v327_v49  ;;  %v349_v60 = vpack.c.bf16 %v330_v54, %v329_v53  ;;  %v761_v61 = vld [vmem:[%s8552_s3 + $0xb8] sm:$0xff] }
  0x26   : > { %5487 = vmatprep.subr.bf16.mxu0 %v5687_v13  ;;  %5627 = vmatprep.subr.bf16.mxu1 %v5687_v13  ;;  %v760_v62 = vld [vmem:[%s8552_s3 + $0xb0] sm:$0xff]  ;;  %v316_v0 = vld [vmem:[%s6008_s13 + $0x58] sm:$0xff]  ;;  %v317_v3 = vld [vmem:[%s6008_s13 + $0x60] sm:$0xff] }
  0x27   : > { %817 = vperm.xlu1 %5682, %v747_v17   ;;  %812 = vperm.xlu0 %5681, %v746_v18   ;;  %v315_v63 = vld [vmem:[%s6008_s13 + $0x50] sm:$0xff]  ;;  %v332_v2 = vld [vmem:[%s6008_s13 + $0xd8] sm:$0xff]  ;;  %v318_v4 = vld [vmem:[%s6008_s13 + $0x68] sm:$0xff] }
  0x28   : > { %v331_v1 = vld [vmem:[%s6008_s13 + $0xd0] sm:$0xff]  ;;  %v333_v5 = vld [vmem:[%s6008_s13 + $0xe0] sm:$0xff]  ;;  %v334_v6 = vld [vmem:[%s6008_s13 + $0xe8] sm:$0xff]  ;;  %v342_v9 = vpack.c.bf16 %v316_v0, %v315_v63  ;;  %v343_v12 = vpack.c.bf16 %v318_v4, %v317_v3 }
  0x29   : > { %5488 = vmatpush3.bf16.msra.mxu0 %v5687_v13  ;;  %5635 = vmatpush3.bf16.msra.mxu1 %v5687_v13  ;;  %v763_v7 = vld [vmem:[%s8552_s3 + $0xc8] sm:$0xff]  ;;  %v762_v8 = vld [vmem:[%s8552_s3 + $0xc0] sm:$0xff]  ;;  %v350_v10 = vpack.c.bf16 %v332_v2, %v331_v1  ;;  %v351_v13 = vpack.c.bf16 %v334_v6, %v333_v5  ;;  %v765_v14 = vld [vmem:[%s8552_s3 + $0xd8] sm:$0xff] }
  0x2a   : > { %5489 = vmatprep.subr.bf16.mxu0 %v5688_v22  ;;  %5628 = vmatprep.subr.bf16.mxu1 %v5688_v22  ;;  %v5691_v11 = vld [vmem:[%s8553_s4 + $0x40] sm:$0xff]   ;;  %v764_v15 = vld [vmem:[%s8552_s3 + $0xd0] sm:$0xff]  ;;  %v320_v18 = vld [vmem:[%s6008_s13 + $0x78] sm:$0xff] }
  0x2b   : > { %827 = vperm.xlu1 %5682, %v749_v23   ;;  %822 = vperm.xlu0 %5681, %v748_v24   ;;  %v5692_v16 = vld [vmem:[%s8553_s4] sm:$0xff]   ;;  %v319_v17 = vld [vmem:[%s6008_s13 + $0x70] sm:$0xff]  ;;  %v5693_v20 = vld [vmem:[%s8553_s4 + $0x48] sm:$0xff]  }
  0x2c   : > { %v335_v19 = vld [vmem:[%s6008_s13 + $0xf0] sm:$0xff]  ;;  %v336_v21 = vld [vmem:[%s6008_s13 + $0xf8] sm:$0xff]  ;;  %v767_v23 = vld [vmem:[%s8552_s3 + $0xe8] sm:$0xff] }
  0x2d   : > { %5490 = vmatpush3.bf16.msra.mxu0 %v5688_v22  ;;  %5636 = vmatpush3.bf16.msra.mxu1 %v5688_v22  ;;  %v5694_v22 = vld [vmem:[%s8553_s4 + $0x8] sm:$0xff]   ;;  %v766_v24 = vld [vmem:[%s8552_s3 + $0xe0] sm:$0xff]  ;;  %v5697_v31 = vld [vmem:[%s8553_s4 + $0x58] sm:$0xff]  }
  0x2e   : > { %5491 = vmatprep.subr.bf16.mxu0 %v5689_v25  ;;  %5629 = vmatprep.subr.bf16.mxu1 %v5689_v25  ;;  %v5698_v32 = vld [vmem:[%s8553_s4 + $0x18] sm:$0xff]   ;;  %v4647_v33 = vld [vmem:[%s8552_s3 + $0x108] sm:$0xff]  ;;  %v4646_v34 = vld [vmem:[%s8552_s3 + $0x100] sm:$0xff] }
  0x2f   : > { %837 = vperm.xlu1 %5682, %v751_v26   ;;  %832 = vperm.xlu0 %5681, %v750_v27   ;;  %v352_v26 = vpack.c.bf16 %v336_v21, %v335_v19  ;;  %v5695_v27 = vld [vmem:[%s8553_s4 + $0x50] sm:$0xff]   ;;  %v5699_v35 = vld [vmem:[%s8553_s4 + $0x60] sm:$0xff]   ;;  %v4649_v37 = vld [vmem:[%s8552_s3 + $0x118] sm:$0xff] }
  0x30   : > { %v5700_v36 = vld [vmem:[%s8553_s4 + $0x20] sm:$0xff]   ;;  %v4648_v38 = vld [vmem:[%s8552_s3 + $0x110] sm:$0xff]  ;;  %v5705_v47 = vld [vmem:[%s8553_s4 + $0x78] sm:$0xff]  }
  0x31   : > { %5492 = vmatpush3.bf16.msra.mxu0 %v5689_v25  ;;  %5637 = vmatpush3.bf16.msra.mxu1 %v5689_v25  ;;  %v344_v25 = vpack.c.bf16 %v320_v18, %v319_v17  ;;  %v4655_v48 = vld [vmem:[%s8552_s3 + $0x148] sm:$0xff]  ;;  %v5706_v49 = vld [vmem:[%s8553_s4 + $0x38] sm:$0xff]   ;;  %v4654_v50 = vld [vmem:[%s8552_s3 + $0x140] sm:$0xff] }
  0x32   : > { %5493 = vmatprep.subr.bf16.mxu0 %v5690_v28  ;;  %5630 = vmatprep.subr.bf16.mxu1 %v5690_v28  ;;  %v4657_v51 = vld [vmem:[%s8552_s3 + $0x158] sm:$0xff]  ;;  %v4656_v52 = vld [vmem:[%s8552_s3 + $0x150] sm:$0xff]  ;;  %v4659_v53 = vld [vmem:[%s8552_s3 + $0x168] sm:$0xff] }
  0x33   : > { %847 = vperm.xlu1 %5682, %v753_v29   ;;  %842 = vperm.xlu0 %5681, %v752_v30   ;;  %v769_v29 = vld [vmem:[%s8552_s3 + $0xf8] sm:$0xff]  ;;  %v768_v30 = vld [vmem:[%s8552_s3 + $0xf0] sm:$0xff]  ;;  %v4658_v54 = vld [vmem:[%s8552_s3 + $0x160] sm:$0xff] }
  0x34   : > { %v4669_v63 = vld [vmem:[%s8552_s3 + $0x1b8] sm:$0xff]  ;;  %v4668_v0 = vld [vmem:[%s8552_s3 + $0x1b0] sm:$0xff]  ;;  %v5707_v1 = vld [vmem:[%s8553_s4 + $0xc0] sm:$0xff]  }
  0x35   : > { %5494 = vmatpush3.bf16.msra.mxu0 %v5690_v28  ;;  %5638 = vmatpush3.bf16.msra.mxu1 %v5690_v28  ;;  %v5696_v28 = vld [vmem:[%s8553_s4 + $0x10] sm:$0xff]   ;;  %v5708_v2 = vld [vmem:[%s8553_s4 + $0x80] sm:$0xff]   ;;  %v4671_v3 = vld [vmem:[%s8552_s3 + $0x1c8] sm:$0xff] }
  0x36   : > { %4983 = vmatprep.subr.bf16.mxu1 %v5691_v11  ;;  %5095 = vmatprep.subr.bf16.mxu0 %v5707_v1  ;;  %v4670_v4 = vld [vmem:[%s8552_s3 + $0x1c0] sm:$0xff]  ;;  %v5709_v5 = vld [vmem:[%s8553_s4 + $0xc8] sm:$0xff]   ;;  %v4721_v1 = vld [vmem:[%s8552_s3 + $0x358] sm:$0xff] }
  0x37   : > { %857 = vperm.xlu1 %5682, %v755_v39   ;;  %852 = vperm.xlu0 %5681, %v754_v40   ;;  %v5701_v39 = vld [vmem:[%s8553_s4 + $0x68] sm:$0xff]   ;;  %v5715_v17 = vld [vmem:[%s8553_s4 + $0xe0] sm:$0xff]  }
  0x38   : > { %5496 = vmatmul.mubr.bf16.vlgmr.msra.gmra.mrb[0].mxu0 %v338_v41  ;;  %5512 = vmatmul.mubr.bf16.vlgmr.msra.gmra.mrb[0].mxu1 %v346_v42  ;;  %v4651_v40 = vld [vmem:[%s8552_s3 + $0x128] sm:$0xff]  ;;  %v4650_v41 = vld [vmem:[%s8552_s3 + $0x120] sm:$0xff] }
  0x39   : > { %5499 = vmatprep.mubr.bf16.mxu0 %v339_v43  ;;  %5515 = vmatprep.mubr.bf16.mxu1 %v347_v44  ;;  %v5702_v42 = vld [vmem:[%s8553_s4 + $0x28] sm:$0xff]   ;;  %v5703_v43 = vld [vmem:[%s8553_s4 + $0x70] sm:$0xff]   ;;  %v4653_v44 = vld [vmem:[%s8552_s3 + $0x138] sm:$0xff] }
  0x3a   : > { %4984 = vmatpush3.bf16.msra.mxu1 %v5692_v16  ;;  %5096 = vmatpush3.bf16.msra.mxu0 %v5708_v2  ;;  %v5710_v6 = vld [vmem:[%s8553_s4 + $0x88] sm:$0xff]   ;;  %v4676_v16 = vld [vmem:[%s8552_s3 + $0x1f0] sm:$0xff]  ;;  %v5716_v18 = vld [vmem:[%s8553_s4 + $0xa0] sm:$0xff]  }
  0x3b   : > { %867 = vperm.xlu1 %5682, %v757_v45   ;;  %862 = vperm.xlu0 %5681, %v756_v46   ;;  %v4652_v45 = vld [vmem:[%s8552_s3 + $0x130] sm:$0xff]  ;;  %v4675_v11 = vld [vmem:[%s8552_s3 + $0x1e8] sm:$0xff]  ;;  %v4710_v19 = vld [vmem:[%s8552_s3 + $0x300] sm:$0xff] }
  0x3c   : > { %4985 = vmatprep.subr.bf16.mxu1 %v5693_v20  ;;  %v5704_v46 = vld [vmem:[%s8553_s4 + $0x30] sm:$0xff]   ;;  %5097 = vmatprep.subr.bf16.mxu0 %v5709_v5  ;;  %v4678_v20 = vld [vmem:[%s8552_s3 + $0x200] sm:$0xff]  ;;  %v5717_v21 = vld [vmem:[%s8553_s4 + $0xe8] sm:$0xff]  }
  0x3d   : > { %v4720_v2 = vld [vmem:[%s8552_s3 + $0x350] sm:$0xff]  ;;  %v4689_v5 = vld [vmem:[%s8552_s3 + $0x258] sm:$0xff] }
  0x3e   : > { %4986 = vmatpush3.bf16.msra.mxu1 %v5694_v22  ;;  %5098 = vmatpush3.bf16.msra.mxu0 %v5710_v6  ;;  %v5718_v22 = vld [vmem:[%s8553_s4 + $0xa8] sm:$0xff]   ;;  %v4688_v6 = vld [vmem:[%s8552_s3 + $0x250] sm:$0xff] }
  0x3f   : > { %877 = vperm.xlu1 %5682, %v759_v55   ;;  %872 = vperm.xlu0 %5681, %v758_v56   ;;  %v4661_v55 = vld [vmem:[%s8552_s3 + $0x178] sm:$0xff]  ;;  %v4660_v56 = vld [vmem:[%s8552_s3 + $0x170] sm:$0xff] }
  0x40   : > { %5500 = vmatmul.mubr.bf16.gmra.mrb[4].mxu0 %v340_v57  ;;  %5516 = vmatmul.mubr.bf16.gmra.mrb[4].mxu1 %v348_v58  ;;  %v4663_v57 = vld [vmem:[%s8552_s3 + $0x188] sm:$0xff]  ;;  %v4662_v58 = vld [vmem:[%s8552_s3 + $0x180] sm:$0xff] }
  0x41   : > { %5503 = vmatprep.mubr.bf16.mxu0 %v341_v59  ;;  %5519 = vmatprep.mubr.bf16.mxu1 %v349_v60  ;;  %v4665_v59 = vld [vmem:[%s8552_s3 + $0x198] sm:$0xff]  ;;  %v4664_v60 = vld [vmem:[%s8552_s3 + $0x190] sm:$0xff] }
  0x42   : > { %4987 = vmatprep.subr.bf16.mxu1 %v5695_v27 }
  0x43   : > { %887 = vperm.xlu1 %5682, %v761_v61   ;;  %882 = vperm.xlu0 %5681, %v760_v62   ;;  %v4667_v61 = vld [vmem:[%s8552_s3 + $0x1a8] sm:$0xff]  ;;  %v4666_v62 = vld [vmem:[%s8552_s3 + $0x1a0] sm:$0xff] }
  0x44   : > { %4988 = vmatpush3.bf16.msra.mxu1 %v5696_v28 }
  0x45   : > { %4989 = vmatprep.subr.bf16.mxu1 %v5697_v31  ;;  %v4713_v31 = vld [vmem:[%s8552_s3 + $0x318] sm:$0xff] }
  0x47   : > { %897 = vperm.xlu1 %5682, %v763_v7   ;;  %892 = vperm.xlu0 %5681, %v762_v8   ;;  %v4673_v7 = vld [vmem:[%s8552_s3 + $0x1d8] sm:$0xff]  ;;  %v4672_v8 = vld [vmem:[%s8552_s3 + $0x1d0] sm:$0xff] }
  0x48   : > { %5504 = vmatmul.mubr.bf16.gmra.mrb[8].mxu0 %v342_v9  ;;  %5520 = vmatmul.mubr.bf16.gmra.mrb[8].mxu1 %v350_v10  ;;  %v5711_v9 = vld [vmem:[%s8553_s4 + $0xd0] sm:$0xff]  }
  0x49   : > { %5507 = vmatprep.mubr.bf16.mxu0 %v343_v12  ;;  %5523 = vmatprep.mubr.bf16.mxu1 %v351_v13  ;;  %v5712_v10 = vld [vmem:[%s8553_s4 + $0x90] sm:$0xff]   ;;  %v4674_v12 = vld [vmem:[%s8552_s3 + $0x1e0] sm:$0xff]  ;;  %v5713_v13 = vld [vmem:[%s8553_s4 + $0xd8] sm:$0xff]  }
  0x4a   : > { %4990 = vmatpush3.bf16.msra.mxu1 %v5698_v32  ;;  %5099 = vmatprep.subr.bf16.mxu0 %v5711_v9  ;;  %v4712_v32 = vld [vmem:[%s8552_s3 + $0x310] sm:$0xff]  ;;  %v4723_v9 = vld [vmem:[%s8552_s3 + $0x368] sm:$0xff] }
  0x4b   : > { %907 = vperm.xlu1 %5682, %v765_v14   ;;  %902 = vperm.xlu0 %5681, %v764_v15   ;;  %v5714_v14 = vld [vmem:[%s8553_s4 + $0x98] sm:$0xff]  }
  0x4c   : > { %4991 = vmatprep.subr.bf16.mxu1 %v5699_v35  ;;  %5100 = vmatpush3.bf16.msra.mxu0 %v5712_v10  ;;  %v4677_v15 = vld [vmem:[%s8552_s3 + $0x1f8] sm:$0xff]  ;;  %v4722_v10 = vld [vmem:[%s8552_s3 + $0x360] sm:$0xff] }
  0x4d   : > { %5101 = vmatprep.subr.bf16.mxu0 %v5713_v13  ;;  %v5721_v35 = vld [vmem:[%s8553_s4 + $0xf8] sm:$0xff]   ;;  %v4691_v13 = vld [vmem:[%s8552_s3 + $0x268] sm:$0xff] }
  0x4e   : > { %4992 = vmatpush3.bf16.msra.mxu1 %v5700_v36  ;;  %v4681_v36 = vld [vmem:[%s8552_s3 + $0x218] sm:$0xff] }
  0x4f   : > { %917 = vperm.xlu1 %5682, %v767_v23   ;;  %912 = vperm.xlu0 %5681, %v766_v24  }
  0x50   : > { %5508 = vmatmul.mubr.bf16.gmra.mrb[12].mxu0 %v344_v25  ;;  %5524 = vmatmul.mubr.bf16.gmra.mrb[12].mxu1 %v352_v26  ;;  %v4679_v25 = vld [vmem:[%s8552_s3 + $0x208] sm:$0xff] }
  0x51   : > { %4993 = vmatprep.subr.bf16.mxu1 %v5701_v39  ;;  %5102 = vmatpush3.bf16.msra.mxu0 %v5714_v14  ;;  %v4711_v26 = vld [vmem:[%s8552_s3 + $0x308] sm:$0xff]  ;;  %v4690_v14 = vld [vmem:[%s8552_s3 + $0x260] sm:$0xff] }
  0x52   : > { %4994 = vmatpush3.bf16.msra.mxu1 %v5702_v42  ;;  %5103 = vmatprep.subr.bf16.mxu0 %v5715_v17  ;;  %v4714_v42 = vld [vmem:[%s8552_s3 + $0x320] sm:$0xff]  ;;  %v4725_v17 = vld [vmem:[%s8552_s3 + $0x378] sm:$0xff] }
  0x53   : > { %927 = vperm.xlu1 %5682, %v769_v29   ;;  %922 = vperm.xlu0 %5681, %v768_v30   ;;  %v5719_v29 = vld [vmem:[%s8553_s4 + $0xf0] sm:$0xff]  }
  0x54   : > { %4995 = vmatprep.subr.bf16.mxu1 %v5703_v43  ;;  %v5720_v30 = vld [vmem:[%s8553_s4 + $0xb0] sm:$0xff]  }
  0x55   : > { %5104 = vmatpush3.bf16.msra.mxu0 %v5716_v18  ;;  %v4724_v18 = vld [vmem:[%s8552_s3 + $0x370] sm:$0xff] }
  0x56   : > { %4996 = vmatpush3.bf16.msra.mxu1 %v5704_v46  ;;  %5105 = vmatprep.subr.bf16.mxu0 %v5717_v21  ;;  %v4682_v46 = vld [vmem:[%s8552_s3 + $0x220] sm:$0xff]  ;;  %v4693_v21 = vld [vmem:[%s8552_s3 + $0x278] sm:$0xff] }
  0x57   : > { %1002 = vperm.xlu1 %5682, %v4647_v33   ;;  %997 = vperm.xlu0 %5681, %v4646_v34  }
  0x58   : > { %4997 = vmatprep.subr.bf16.mxu1 %v5705_v47 }
  0x59   : > { %5106 = vmatpush3.bf16.msra.mxu0 %v5718_v22  ;;  %v4692_v22 = vld [vmem:[%s8552_s3 + $0x270] sm:$0xff] }
  0x5a   : > { %4998 = vmatpush3.bf16.msra.mxu1 %v5706_v49  ;;  %5107 = vmatprep.subr.bf16.mxu0 %v5719_v29  ;;  %v4717_v49 = vld [vmem:[%s8552_s3 + $0x338] sm:$0xff]  ;;  %v4727_v29 = vld [vmem:[%s8552_s3 + $0x388] sm:$0xff] }
  0x5b   : > { %1012 = vperm.xlu1 %5682, %v4649_v37   ;;  %1007 = vperm.xlu0 %5681, %v4648_v38   ;;  %v4680_v37 = vld [vmem:[%s8552_s3 + $0x210] sm:$0xff]  ;;  %v5722_v38 = vld [vmem:[%s8553_s4 + $0xb8] sm:$0xff]  }
  0x5d   : > { %5108 = vmatpush3.bf16.msra.mxu0 %v5720_v30  ;;  %v4726_v30 = vld [vmem:[%s8552_s3 + $0x380] sm:$0xff] }
  0x5e   : > { %5109 = vmatprep.subr.bf16.mxu0 %v5721_v35 }
  0x5f   : > { %1022 = vperm.xlu1 %5682, %v4651_v40   ;;  %1017 = vperm.xlu0 %5681, %v4650_v41   ;;  %v4715_v41 = vld [vmem:[%s8552_s3 + $0x328] sm:$0xff] }
  0x61   : > { %5110 = vmatpush3.bf16.msra.mxu0 %v5722_v38  ;;  %v4695_v38 = vld [vmem:[%s8552_s3 + $0x288] sm:$0xff] }
  0x63   : > { %1032 = vperm.xlu1 %5682, %v4653_v44   ;;  %1027 = vperm.xlu0 %5681, %v4652_v45   ;;  %v4683_v45 = vld [vmem:[%s8552_s3 + $0x228] sm:$0xff] }
  0x67   : > { %1042 = vperm.xlu1 %5682, %v4655_v48   ;;  %1037 = vperm.xlu0 %5681, %v4654_v50   ;;  %v4716_v50 = vld [vmem:[%s8552_s3 + $0x330] sm:$0xff] }
  0x6b   : > { %1052 = vperm.xlu1 %5682, %v4657_v51   ;;  %1047 = vperm.xlu0 %5681, %v4656_v52  }
  0x6f   : > { %1062 = vperm.xlu1 %5682, %v4659_v53   ;;  %1057 = vperm.xlu0 %5681, %v4658_v54   ;;  %v4685_v53 = vld [vmem:[%s8552_s3 + $0x238] sm:$0xff]  ;;  %v4684_v54 = vld [vmem:[%s8552_s3 + $0x230] sm:$0xff] }
  0x73   : > { %1072 = vperm.xlu1 %5682, %v4661_v55   ;;  %1067 = vperm.xlu0 %5681, %v4660_v56  }
  0x77   : > { %1082 = vperm.xlu1 %5682, %v4663_v57   ;;  %1077 = vperm.xlu0 %5681, %v4662_v58   ;;  %v4719_v57 = vld [vmem:[%s8552_s3 + $0x348] sm:$0xff]  ;;  %v4718_v58 = vld [vmem:[%s8552_s3 + $0x340] sm:$0xff] }
  0x7b   : > { %1092 = vperm.xlu1 %5682, %v4665_v59   ;;  %1087 = vperm.xlu0 %5681, %v4664_v60  }
  0x7f   : > { %1102 = vperm.xlu1 %5682, %v4667_v61   ;;  %1097 = vperm.xlu0 %5681, %v4666_v62   ;;  %v4687_v61 = vld [vmem:[%s8552_s3 + $0x248] sm:$0xff]  ;;  %v4686_v62 = vld [vmem:[%s8552_s3 + $0x240] sm:$0xff] }
  0x83   : > { %1112 = vperm.xlu1 %5682, %v4669_v63   ;;  %1107 = vperm.xlu0 %5681, %v4668_v0  }
  0x87   : > { %1122 = vperm.xlu1 %5682, %v4671_v3   ;;  %1117 = vperm.xlu0 %5681, %v4670_v4  }
  0x8b   : > { %1132 = vperm.xlu1 %5682, %v4673_v7   ;;  %1127 = vperm.xlu0 %5681, %v4672_v8  }
  0x8f   : > { %1142 = vperm.xlu1 %5682, %v4675_v11   ;;  %1137 = vperm.xlu0 %5681, %v4674_v12  }
  0x93   : > { %1152 = vperm.xlu1 %5682, %v4677_v15   ;;  %1147 = vperm.xlu0 %5681, %v4676_v16  }
  0x96   : > { %v6312_v23 = vpop.permute.xlu1 %782  ;;  %v6314_v24 = vpop.permute.xlu0 %772 }
  0x97   : > { %1549 = vperm.xlu1 %5682, %v4710_v19   ;;  %1317 = vperm.xlu0 %5681, %v4678_v20  }
  0x9a   : > { %v6322_v27 = vpop.permute.xlu1 %787  ;;  %v6324_v28 = vpop.permute.xlu0 %777 }
  0x9b   : > { %1322 = vperm.xlu1 %5682, %v4679_v25   ;;  %1554 = vperm.xlu0 %5681, %v4711_v26   ;;  %v931_v35 = vmul.f32 0.0, %v6324_v28 }
  0x9e   : > { %v6338_v33 = vpop.permute.xlu1 %797  ;;  %v6340_v34 = vpop.permute.xlu0 %792 }
  0x9f   : > { %1564 = vperm.xlu1 %5682, %v4713_v31   ;;  %1559 = vperm.xlu0 %5681, %v4712_v32  }
  0xa2   : > { %v6354_v39 = vpop.permute.xlu1 %807  ;;  %v6356_v40 = vpop.permute.xlu0 %802 }
  0xa3   : > { %1332 = vperm.xlu1 %5682, %v4681_v36   ;;  %1327 = vperm.xlu0 %5681, %v4680_v37  }
  0xa6   : > { %v6364_v43 = vpop.permute.xlu1 %817  ;;  %v6366_v44 = vpop.permute.xlu0 %812 }
  0xa7   : > { %1574 = vperm.xlu1 %5682, %v4715_v41   ;;  %1569 = vperm.xlu0 %5681, %v4714_v42   ;;  %v4694_v41 = vld [vmem:[%s8552_s3 + $0x280] sm:$0xff]  ;;  %v930_v42 = vmul.f32 0.0, %v6314_v24 }
  0xa9   : > { %v2646_v28 = vpack.c.bf16 %v931_v35, %v930_v42  ;;  %v5725_v35 = vld [vmem:[%s8553_s4 + $0x148] sm:$0xff]   ;;  %v4746_v42 = vld [vmem:[%s8552_s3 + $0x520] sm:$0xff] }
  0xaa   : > { %v6374_v47 = vpop.permute.xlu1 %827  ;;  %v6376_v48 = vpop.permute.xlu0 %822 }
  0xab   : > { %1342 = vperm.xlu1 %5682, %v4683_v45   ;;  %1337 = vperm.xlu0 %5681, %v4682_v46  }
  0xae   : > { %v6384_v51 = vpop.permute.xlu1 %837  ;;  %v6386_v52 = vpop.permute.xlu0 %832 }
  0xaf   : > { %1584 = vperm.xlu1 %5682, %v4717_v49   ;;  %1579 = vperm.xlu0 %5681, %v4716_v50   ;;  %v4743_v50 = vld [vmem:[%s8552_s3 + $0x508] sm:$0xff] }
  0xb2   : > { %v6394_v55 = vpop.permute.xlu1 %847  ;;  %v6396_v56 = vpop.permute.xlu0 %842 }
  0xb3   : > { %1352 = vperm.xlu1 %5682, %v4685_v53   ;;  %1347 = vperm.xlu0 %5681, %v4684_v54   ;;  %v4742_v53 = vld [vmem:[%s8552_s3 + $0x500] sm:$0xff] }
  0xb6   : > { %v6404_v59 = vpop.permute.xlu1 %857  ;;  %v6406_v60 = vpop.permute.xlu0 %852 }
  0xb7   : > { %8643 = vst [vmem:[#allocation5_spill] sm:$0xff] %v6404_v59  ;;  %1594 = vperm.xlu1 %5682, %v4719_v57   ;;  %1589 = vperm.xlu0 %5681, %v4718_v58   ;;  %v4729_v57 = vld [vmem:[%s8552_s3 + $0x398] sm:$0xff]  ;;  %v4728_v58 = vld [vmem:[%s8552_s3 + $0x390] sm:$0xff] }
  0xba   : > { %v6414_v63 = vpop.permute.xlu1 %867  ;;  %v6416_v0 = vpop.permute.xlu0 %862 }
  0xbb   : > { %8644 = vst [vmem:[#allocation6_spill] sm:$0xff] %v6414_v63  ;;  %8645 = vst [vmem:[#allocation7_spill] sm:$0xff] %v6416_v0  ;;  %1362 = vperm.xlu1 %5682, %v4687_v61   ;;  %1357 = vperm.xlu0 %5681, %v4686_v62   ;;  %v5723_v61 = vld [vmem:[%s8553_s4 + $0x140] sm:$0xff]  }
  0xbc   : > { %5207 = vmatprep.subr.bf16.mxu1 %v5723_v61  ;;  %v4701_v61 = vld [vmem:[%s8552_s3 + $0x2b8] sm:$0xff] }
  0xbe   : > { %v6424_v3 = vpop.permute.xlu1 %877  ;;  %v6426_v4 = vpop.permute.xlu0 %872 }
  0xbf   : > { %8646 = vst [vmem:[#allocation8_spill] sm:$0xff] %v6424_v3  ;;  %8647 = vst [vmem:[#allocation9_spill] sm:$0xff] %v6426_v4  ;;  %1604 = vperm.xlu1 %5682, %v4721_v1   ;;  %1599 = vperm.xlu0 %5681, %v4720_v2   ;;  %v5724_v2 = vld [vmem:[%s8553_s4 + $0x100] sm:$0xff]  }
  0xc2   : > { %v6434_v7 = vpop.permute.xlu1 %887  ;;  %v6436_v8 = vpop.permute.xlu0 %882 }
  0xc3   : > { %8648 = vst [vmem:[#allocation10_spill] sm:$0xff] %v6434_v7  ;;  %8649 = vst [vmem:[#allocation11_spill] sm:$0xff] %v6436_v8  ;;  %1372 = vperm.xlu1 %5682, %v4689_v5   ;;  %1367 = vperm.xlu0 %5681, %v4688_v6   ;;  %v4697_v5 = vld [vmem:[%s8552_s3 + $0x298] sm:$0xff]  ;;  %v4696_v6 = vld [vmem:[%s8552_s3 + $0x290] sm:$0xff] }
  0xc6   : > { %v6444_v11 = vpop.permute.xlu1 %897  ;;  %v6446_v12 = vpop.permute.xlu0 %892 }
  0xc7   : > { %8650 = vst [vmem:[#allocation12_spill] sm:$0xff] %v6444_v11  ;;  %8651 = vst [vmem:[#allocation13_spill] sm:$0xff] %v6446_v12  ;;  %1614 = vperm.xlu1 %5682, %v4723_v9   ;;  %1609 = vperm.xlu0 %5681, %v4722_v10  }
  0xca   : > { %v6454_v15 = vpop.permute.xlu1 %907  ;;  %v6456_v16 = vpop.permute.xlu0 %902 }
  0xcb   : > { %8652 = vst [vmem:[#allocation14_spill] sm:$0xff] %v6454_v15  ;;  %8653 = vst [vmem:[#allocation15_spill] sm:$0xff] %v6456_v16  ;;  %1382 = vperm.xlu1 %5682, %v4691_v13   ;;  %1377 = vperm.xlu0 %5681, %v4690_v14   ;;  %v4745_v13 = vld [vmem:[%s8552_s3 + $0x518] sm:$0xff]  ;;  %v4744_v14 = vld [vmem:[%s8552_s3 + $0x510] sm:$0xff] }
  0xce   : > { %v6464_v19 = vpop.permute.xlu1 %917  ;;  %v6466_v20 = vpop.permute.xlu0 %912 }
  0xcf   : > { %8654 = vst [vmem:[#allocation16_spill] sm:$0xff] %v6464_v19  ;;  %8655 = vst [vmem:[#allocation17_spill] sm:$0xff] %v6466_v20  ;;  %1624 = vperm.xlu1 %5682, %v4725_v17   ;;  %1619 = vperm.xlu0 %5681, %v4724_v18   ;;  %v4751_v19 = vld [vmem:[%s8552_s3 + $0x548] sm:$0xff]  ;;  %v4750_v20 = vld [vmem:[%s8552_s3 + $0x540] sm:$0xff] }
  0xd2   : > { %v6474_v25 = vpop.permute.xlu1 %927  ;;  %v6476_v26 = vpop.permute.xlu0 %922 }
  0xd3   : > { %8656 = vst [vmem:[#allocation18_spill] sm:$0xff] %v6474_v25  ;;  %8657 = vst [vmem:[#allocation19_spill] sm:$0xff] %v6476_v26  ;;  %1392 = vperm.xlu1 %5682, %v4693_v21   ;;  %1387 = vperm.xlu0 %5681, %v4692_v22   ;;  %v4731_v21 = vld [vmem:[%s8552_s3 + $0x3a8] sm:$0xff]  ;;  %v4730_v22 = vld [vmem:[%s8552_s3 + $0x3a0] sm:$0xff] }
  0xd6   : > { %v1003_v31 = vpop.permute.xlu1 %1002  ;;  %v998_v32 = vpop.permute.xlu0 %997 }
  0xd7   : > { %v1156_v36 = vmul.f32 0.0, %v1003_v31  ;;  %v1155_v37 = vmul.f32 0.0, %v998_v32  ;;  %1634 = vperm.xlu1 %5682, %v4727_v29   ;;  %1629 = vperm.xlu0 %5681, %v4726_v30   ;;  %v4699_v31 = vld [vmem:[%s8552_s3 + $0x2a8] sm:$0xff]  ;;  %v4698_v32 = vld [vmem:[%s8552_s3 + $0x2a0] sm:$0xff] }
  0xd9   : > { %v2647_v45 = vpack.c.bf16 %v1156_v36, %v1155_v37 }
  0xda   : > { %v6492_v46 = vpop.permute.xlu1 %1012  ;;  %v6494_v49 = vpop.permute.xlu0 %1007 }
  0xdb   : > { %1402 = vperm.xlu1 %5682, %v4695_v38   ;;  %1397 = vperm.xlu0 %5681, %v4694_v41   ;;  %v5726_v38 = vld [vmem:[%s8553_s4 + $0x108] sm:$0xff]  }
  0xdc   : > { %3405 = vmatprep.mubr.bf16.mxu1 %v2647_v45  ;;  %v4747_v41 = vld [vmem:[%s8552_s3 + $0x528] sm:$0xff] }
  0xdd   : > { %3406 = vmatmul.mubr.bf16.vlgmr.msra.gmra.mrb[16].mxu1 %v2646_v28 }
  0xde   : > { %v6502_v54 = vpop.permute.xlu1 %1022  ;;  %v6504_v24 = vpop.permute.xlu0 %1017  ;;  %5208 = vmatpush3.bf16.msra.mxu1 %v5724_v2  ;;  %v4700_v2 = vld [vmem:[%s8552_s3 + $0x2b0] sm:$0xff] }
  0xdf   : > { %1784 = vperm.xlu1 %5682, %v4743_v50   ;;  %1779 = vperm.xlu0 %5681, %v4742_v53   ;;  %v4733_v50 = vld [vmem:[%s8552_s3 + $0x3b8] sm:$0xff]  ;;  %v4732_v53 = vld [vmem:[%s8552_s3 + $0x3b0] sm:$0xff] }
  0xe0   : > { %5209 = vmatprep.subr.bf16.mxu1 %v5725_v35 }
  0xe2   : > { %v6515_v62 = vpop.permute.xlu1 %1032  ;;  %v6517_v1 = vpop.permute.xlu0 %1027  ;;  %5210 = vmatpush3.bf16.msra.mxu1 %v5726_v38  ;;  %v5730_v38 = vld [vmem:[%s8553_s4 + $0x118] sm:$0xff]  }
  0xe3   : > { %1644 = vperm.xlu1 %5682, %v4729_v57   ;;  %1639 = vperm.xlu0 %5681, %v4728_v58  }
  0xe6   : > { %v6528_v9 = vpop.permute.xlu1 %1042  ;;  %v6530_v10 = vpop.permute.xlu0 %1037 }
  0xe7   : > { %1412 = vperm.xlu1 %5682, %v4697_v5   ;;  %1407 = vperm.xlu0 %5681, %v4696_v6  }
  0xea   : > { %v6538_v17 = vpop.permute.xlu1 %1052  ;;  %v6540_v18 = vpop.permute.xlu0 %1047 }
  0xeb   : > { %1794 = vperm.xlu1 %5682, %v4745_v13   ;;  %1789 = vperm.xlu0 %5681, %v4744_v14   ;;  %v5727_v13 = vld [vmem:[%s8553_s4 + $0x150] sm:$0xff]  }
  0xec   : > { %v5728_v14 = vld [vmem:[%s8553_s4 + $0x110] sm:$0xff]   ;;  %5211 = vmatprep.subr.bf16.mxu1 %v5727_v13  ;;  %v4703_v13 = vld [vmem:[%s8552_s3 + $0x2c8] sm:$0xff] }
  0xed   : > { %5212 = vmatpush3.bf16.msra.mxu1 %v5728_v14  ;;  %v4702_v14 = vld [vmem:[%s8552_s3 + $0x2c0] sm:$0xff] }
  0xee   : > { %v6548_v29 = vpop.permute.xlu1 %1062  ;;  %v6550_v30 = vpop.permute.xlu0 %1057 }
  0xef   : > { %1654 = vperm.xlu1 %5682, %v4731_v21   ;;  %1649 = vperm.xlu0 %5681, %v4730_v22   ;;  %v4749_v21 = vld [vmem:[%s8552_s3 + $0x538] sm:$0xff]  ;;  %v4748_v22 = vld [vmem:[%s8552_s3 + $0x530] sm:$0xff] }
  0xf2   : > { %v6561_v36 = vpop.permute.xlu1 %1072  ;;  %v6563_v37 = vpop.permute.xlu0 %1067 }
  0xf3   : > { %1422 = vperm.xlu1 %5682, %v4699_v31   ;;  %1417 = vperm.xlu0 %5681, %v4698_v32   ;;  %v5729_v31 = vld [vmem:[%s8553_s4 + $0x158] sm:$0xff]  }
  0xf4   : > { %5213 = vmatprep.subr.bf16.mxu1 %v5729_v31 }
  0xf5   : > { %5214 = vmatpush3.bf16.msra.mxu1 %v5730_v38 }
  0xf6   : > { %v6574_v45 = vpop.permute.xlu1 %1082  ;;  %v6576_v28 = vpop.permute.xlu0 %1077 }
  0xf7   : > { %1804 = vperm.xlu1 %5682, %v4747_v41   ;;  %1799 = vperm.xlu0 %5681, %v4746_v42   ;;  %v4735_v41 = vld [vmem:[%s8552_s3 + $0x3c8] sm:$0xff]  ;;  %v4734_v42 = vld [vmem:[%s8552_s3 + $0x3c0] sm:$0xff] }
  0xfa   : > { %v6584_v57 = vpop.permute.xlu1 %1092  ;;  %v6586_v58 = vpop.permute.xlu0 %1087 }
  0xfb   : > { %8658 = vst [vmem:[#allocation20_spill] sm:$0xff] %v6584_v57  ;;  %8659 = vst [vmem:[#allocation21_spill] sm:$0xff] %v6586_v58  ;;  %1664 = vperm.xlu1 %5682, %v4733_v50   ;;  %1659 = vperm.xlu0 %5681, %v4732_v53  }
  0xfe   : > { %v6594_v5 = vpop.permute.xlu1 %1102  ;;  %v6596_v6 = vpop.permute.xlu0 %1097 }
  0xff   : > { %8660 = vst [vmem:[#allocation22_spill] sm:$0xff] %v6594_v5  ;;  %8661 = vst [vmem:[#allocation23_spill] sm:$0xff] %v6596_v6  ;;  %1432 = vperm.xlu1 %5682, %v4701_v61   ;;  %1427 = vperm.xlu0 %5681, %v4700_v2   ;;  %v5731_v61 = vld [vmem:[%s8553_s4 + $0x160] sm:$0xff]  }
 0x100   : > { %v5732_v2 = vld [vmem:[%s8553_s4 + $0x120] sm:$0xff]   ;;  %5215 = vmatprep.subr.bf16.mxu1 %v5731_v61 }
 0x101   : > { %5216 = vmatpush3.bf16.msra.mxu1 %v5732_v2 }
 0x102   : > { %v6613_v32 = vpop.permute.xlu1 %1112  ;;  %v6615_v35 = vpop.permute.xlu0 %1107 }
 0x103   : > { %8662 = vst [vmem:[#allocation24_spill] sm:$0xff] %v6613_v32  ;;  %8663 = vst [vmem:[#allocation25_spill] sm:$0xff] %v6615_v35  ;;  %1814 = vperm.xlu1 %5682, %v4749_v21   ;;  %1809 = vperm.xlu0 %5681, %v4748_v22   ;;  %v6645_v21 = vld [vmem:[%s8551_s2] ss:$0 sm:$0xff]  ;;  %v5733_v22 = vld [vmem:[%s8553_s4 + $0x168] sm:$0xff]  }
 0x104   : > { %5217 = vmatprep.subr.bf16.mxu1 %v5733_v22 }
 0x106   : > { %v6626_v50 = vpop.permute.xlu1 %1122  ;;  %v6628_v53 = vpop.permute.xlu0 %1117 }
 0x107   : > { %8664 = vst [vmem:[#allocation26_spill] sm:$0xff] %v6626_v50  ;;  %8665 = vst [vmem:[#allocation27_spill] sm:$0xff] %v6628_v53  ;;  %1674 = vperm.xlu1 %5682, %v4735_v41   ;;  %1669 = vperm.xlu0 %5681, %v4734_v42   ;;  %v5734_v41 = vld [vmem:[%s8553_s4 + $0x128] sm:$0xff]  }
 0x108   : > { %5218 = vmatpush3.bf16.msra.mxu1 %v5734_v41 }
 0x10a   : > { %v6650_v31 = vpop.permute.xlu1 %1132  ;;  %v6652_v38 = vpop.permute.xlu0 %1127 }
 0x10b   : > { %8666 = vst [vmem:[#allocation28_spill] sm:$0xff] %v6650_v31  ;;  %8667 = vst [vmem:[#allocation29_spill] sm:$0xff] %v6652_v38  ;;  %1442 = vperm.xlu1 %5682, %v4703_v13   ;;  %1437 = vperm.xlu0 %5681, %v4702_v14   ;;  %v5497_v42 = vpop.f32.mrb[0].mxu0  ;;  %v5513_v61 = vpop.f32.mrb[0].mxu1  ;;  %v5735_v31 = vld [vmem:[%s8553_s4 + $0x170] sm:$0xff]  }
 0x10c   : > { %v6658_v26 = vadd.f32 %v5513_v61, %v6645_v21  ;;  %v458_v2 = vpop.f32.mrb[1].mxu0  ;;  %v6660_v25 = vpop.f32.mrb[1].mxu1  ;;  %v467_v11 = vadd.f32 %v5497_v42, %v6645_v21  ;;  %v4736_v42 = vld [vmem:[%s8552_s3 + $0x3d0] sm:$0xff]  ;;  %5219 = vmatprep.subr.bf16.mxu1 %v5735_v31 }
 0x10d   : > { %v459_v13 = vadd.f32 %v6645_v21, %v458_v2  ;;  %v5498_v14 = vpop.f32.mrb[2].mxu0  ;;  %v5514_v16 = vpop.f32.mrb[2].mxu1 }
 0x10e   : > { %8668 = vst [vmem:[#allocation30_spill] sm:$0xff] %v6658_v26  ;;  %v6670_v61 = vadd.f32 %v5514_v16, %v6645_v21  ;;  %v6672_v15 = vpop.permute.xlu1 %1142  ;;  %v6674_v38 = vpop.permute.xlu0 %1137  ;;  %v470_v22 = vadd.f32 %v5498_v14, %v6645_v21  ;;  %v5736_v16 = vld [vmem:[%s8553_s4 + $0x130] sm:$0xff]   ;;  %v6708_v8 = vmax.f32 %v467_v11, 0.0  ;;  %v4705_v11 = vld [vmem:[%s8552_s3 + $0x2d8] sm:$0xff] }
 0x10f   : > { %8670 = vst [vmem:[#allocation32_spill] sm:$0xff] %v6672_v15  ;;  %8671 = vst [vmem:[#allocation33_spill] sm:$0xff] %v6674_v38  ;;  %v6680_v12 = vmax.f32 %v459_v13, 0.0  ;;  %v461_v2 = vpop.f32.mrb[3].mxu0  ;;  %v6683_v53 = vpop.f32.mrb[3].mxu1  ;;  %1824 = vperm.xlu1 %5682, %v4751_v19   ;;  %1819 = vperm.xlu0 %5681, %v4750_v20   ;;  %v4737_v38 = vld [vmem:[%s8552_s3 + $0x3d8] sm:$0xff] }
 0x110   : > { %8669 = vst [vmem:[#allocation31_spill] sm:$0xff] %v6670_v61  ;;  %v462_v41 = vadd.f32 %v6645_v21, %v461_v2  ;;  %5220 = vmatpush3.bf16.msra.mxu1 %v5736_v16  ;;  %v5737_v19 = vld [vmem:[%s8553_s4 + $0x178] sm:$0xff]   ;;  %8674 = vst [vmem:[#allocation36_spill] sm:$0xff] %v6708_v8  ;;  %v6710_v31 = vmax.f32 %v470_v22, 0.0 }
 0x111   : > { %v648_v2 = vrot.slane %v6680_v12, 7  ;;  %v5738_v15 = vld [vmem:[%s8553_s4 + $0x138] sm:$0xff]   ;;  %5221 = vmatprep.subr.bf16.mxu1 %v5737_v19 }
 0x112   : > { %v6698_v20 = vmax.f32 %v462_v41, 0.0  ;;  %v6700_v13 = vpop.permute.xlu1 %1152  ;;  %v6702_v14 = vpop.permute.xlu0 %1147  ;;  %8675 = vst [vmem:[#allocation37_spill] sm:$0xff] %v6710_v31 }
 0x113   : > { %8672 = vst [vmem:[#allocation34_spill] sm:$0xff] %v6700_v13  ;;  %8673 = vst [vmem:[#allocation35_spill] sm:$0xff] %v6702_v14  ;;  %1684 = vperm.xlu1 %5682, %v4737_v38   ;;  %1679 = vperm.xlu0 %5681, %v4736_v42   ;;  %v6712_v16 = vpop.f32.mrb[4].mxu0  ;;  %v5517_v41 = vpop.f32.mrb[4].mxu1  ;;  %v4704_v38 = vld [vmem:[%s8552_s3 + $0x2d0] sm:$0xff]  ;;  %v737_v22 = vsel %vm647_vm0, 0.0, %v648_v2 }
 0x114   : > { %v6717_v14 = vadd.f32 %v5517_v41, %v6645_v21  ;;  %v474_v50 = vpop.f32.mrb[5].mxu0  ;;  %v538_v7 = vpop.f32.mrb[5].mxu1  ;;  %v649_v35 = vrot.slane %v6698_v20, 7  ;;  %5222 = vmatpush3.bf16.msra.mxu1 %v5738_v15  ;;  %v1160_v15 = vmul.f32 %v6502_v54, %v6710_v31 }
 0x115   : > { %v6727_v42 = vadd.f32 %v6645_v21, %v538_v7  ;;  %v6729_v13 = vpop.f32.mrb[6].mxu0  ;;  %v5518_v41 = vpop.f32.mrb[6].mxu1 }
 0x116   : > { %8676 = vst [vmem:[#allocation38_spill] sm:$0xff] %v6717_v14  ;;  %v1158_v14 = vmul.f32 %v6492_v46, %v6698_v20  ;;  %v6735_v32 = vadd.f32 %v5518_v41, %v6645_v21  ;;  %v1550_v3 = vpop.permute.xlu1 %1549  ;;  %v1318_v19 = vpop.permute.xlu0 %1317  ;;  %v1159_v46 = vmul.f32 %v6504_v24, %v6708_v8  ;;  %v932_v24 = vmul.f32 %v6312_v23, %v737_v22 }
 0x117   : > { %8677 = vst [vmem:[#allocation39_spill] sm:$0xff] %v6727_v42  ;;  %v477_v4 = vpop.f32.mrb[7].mxu0  ;;  %v541_v7 = vpop.f32.mrb[7].mxu1  ;;  %1452 = vperm.xlu1 %5682, %v4705_v11   ;;  %1447 = vperm.xlu0 %5681, %v4704_v38   ;;  %v1157_v42 = vmul.f32 %v6494_v49, %v6680_v12  ;;  %v4753_v11 = vld [vmem:[%s8552_s3 + $0x558] sm:$0xff]  ;;  %v651_v38 = vrot.slane %v6708_v8, 7  ;;  %v650_v54 = vsel %vm647_vm0, %v648_v2, %v649_v35  ;;  %v1475_v58 = vmul.f32 0.0, %v1318_v19 }
 0x118   : > { %8678 = vst [vmem:[#allocation40_spill] sm:$0xff] %v6735_v32  ;;  %v6745_v41 = vadd.f32 %v6645_v21, %v541_v7  ;;  %v8680_v32 = vrot.slane %v6680_v12, 1  ;;  %v4752_v7 = vld [vmem:[%s8552_s3 + $0x550] sm:$0xff]  ;;  %v1707_v5 = vmul.f32 %v1550_v3, %v737_v22  ;;  %v478_v0 = vadd.f32 %v6645_v21, %v477_v4 }
 0x119   : > { %v2656_v63 = vpack.c.bf16 %v1158_v14, %v1157_v42  ;;  %v933_v49 = vmul.f32 %v6322_v27, %v650_v54  ;;  %v2665_v57 = vpack.c.bf16 %v1160_v15, %v1159_v46  ;;  %v8681_v22 = vrot.slane %v6710_v31, 7 }
 0x11a   : > { %8679 = vst [vmem:[#allocation41_spill] sm:$0xff] %v6745_v41  ;;  %v1281_v6 = vsel %vm1188_vm1, 0.0, %v8680_v32  ;;  %v8558_v41 = vrot.slane %v6708_v8, 1  ;;  %v475_v32 = vadd.f32 %v6645_v21, %v474_v50  ;;  %v1323_v26 = vpop.permute.xlu1 %1322  ;;  %v1555_v61 = vpop.permute.xlu0 %1554 }
 0x11b   : > { %3413 = vmatprep.mubr.bf16.mxu1 %v2656_v63  ;;  %v1476_v23 = vmul.f32 %v1323_v26, %v1281_v6  ;;  %v1708_v14 = vmul.f32 %v1555_v61, %v650_v54  ;;  %1834 = vperm.xlu1 %5682, %v4753_v11   ;;  %v6764_v2 = vpop.f32.mrb[8].mxu0  ;;  %v5521_v42 = vpop.f32.mrb[8].mxu1  ;;  %v2655_v59 = vpack.c.bf16 %v933_v49, %v932_v24  ;;  %v4739_v26 = vld [vmem:[%s8552_s3 + $0x3e8] sm:$0xff]  ;;  %v4738_v11 = vld [vmem:[%s8552_s3 + $0x3e0] sm:$0xff]  ;;  %v1190_v49 = vrot.slane %v6698_v20, 1 }
 0x11c   : > { %1829 = vperm.xlu0 %5681, %v4752_v7   ;;  %v6767_v50 = vadd.f32 %v5521_v42, %v6645_v21  ;;  %v6769_v3 = vpop.f32.mrb[9].mxu0  ;;  %v554_v4 = vpop.f32.mrb[9].mxu1  ;;  %v6774_v27 = vsel %vm647_vm0, %v651_v38, %v8681_v22  ;;  %v6777_v63 = vsel %vm647_vm0, %v649_v35, %v651_v38  ;;  %v6791_v35 = vmax.f32 %v475_v32, 0.0  ;;  %v4707_v42 = vld [vmem:[%s8552_s3 + $0x2e8] sm:$0xff] }
 0x11d   : > { %8682 = vst [vmem:[#allocation42_spill] sm:$0xff] %v6774_v27  ;;  %8683 = vst [vmem:[#allocation43_spill] sm:$0xff] %v6777_v63  ;;  %v2648_v6 = vpack.c.bf16 %v1476_v23, %v1475_v58  ;;  %v2649_v61 = vpack.c.bf16 %v1708_v14, %v1707_v5  ;;  %v6783_v19 = vadd.f32 %v6645_v21, %v554_v4  ;;  %v6785_v46 = vpop.f32.mrb[10].mxu0  ;;  %v5522_v15 = vpop.f32.mrb[10].mxu1  ;;  %v6793_v38 = vmax.f32 %v478_v0, 0.0  ;;  %v5739_v0 = vld [vmem:[%s8553_s4 + $0x1c0] sm:$0xff]  }
 0x11e   : > { %8684 = vst [vmem:[#allocation44_spill] sm:$0xff] %v6791_v35  ;;  %3414 = vmatmul.mubr.bf16.gmra.mrb[20].mxu1 %v2655_v59  ;;  %v6796_v58 = vadd.f32 %v5522_v15, %v6645_v21  ;;  %v1565_v5 = vpop.permute.xlu1 %1564  ;;  %v1560_v24 = vpop.permute.xlu0 %1559  ;;  %v935_v32 = vmul.f32 %v6338_v33, %v6774_v27  ;;  %v5740_v4 = vld [vmem:[%s8553_s4 + $0x180] sm:$0xff]   ;;  %v483_v15 = vadd.f32 %v6712_v16, %v6645_v21 }
 0x11f   : > { %3421 = vmatprep.mubr.bf16.mxu1 %v2665_v57  ;;  %v1710_v54 = vmul.f32 %v1565_v5, %v6774_v27  ;;  %v1709_v7 = vmul.f32 %v1560_v24, %v6777_v63  ;;  %v6800_v23 = vpop.f32.mrb[11].mxu0  ;;  %v557_v14 = vpop.f32.mrb[11].mxu1  ;;  %1694 = vperm.xlu1 %5682, %v4739_v26   ;;  %v934_v57 = vmul.f32 %v6340_v34, %v6777_v63  ;;  %v8685_v34 = vrot.slane %v6680_v12, 1  ;;  %v4706_v33 = vld [vmem:[%s8552_s3 + $0x2e0] sm:$0xff] }
 0x120   : > { %v6806_v59 = vadd.f32 %v6645_v21, %v557_v14  ;;  %1689 = vperm.xlu0 %5681, %v4738_v11   ;;  %3566 = vmatprep.mubr.bf16.mxu0 %v2649_v61  ;;  %v6821_v26 = vsel %vm1188_vm1, %v1190_v49, %v8558_v41  ;;  %v1161_v24 = vmul.f32 %v6517_v1, %v6791_v35  ;;  %v8690_v27 = vrot.slane %v6710_v31, 7 }
 0x121   : > { %v2658_v22 = vpack.c.bf16 %v1710_v54, %v1709_v7  ;;  %3567 = vmatmul.mubr.bf16.vlgmr.msra.gmra.mrb[16].mxu0 %v2648_v6  ;;  %v6826_v61 = vsel %vm1188_vm1, %v8685_v34, %v1190_v49  ;;  %v486_v6 = vadd.f32 %v6729_v13, %v6645_v21  ;;  %v1162_v54 = vmul.f32 %v6515_v62, %v6793_v38 }
 0x122   : > { %v1333_v11 = vpop.permute.xlu1 %1332  ;;  %v1328_v5 = vpop.permute.xlu0 %1327  ;;  %5319 = vmatprep.subr.bf16.mxu0 %v5739_v0  ;;  %v655_v13 = vrot.slane %v6791_v35, 7  ;;  %v2664_v41 = vpack.c.bf16 %v935_v32, %v934_v57  ;;  %v4754_v32 = vld [vmem:[%s8552_s3 + $0x560] sm:$0xff] }
 0x123   : > { %v1478_v49 = vmul.f32 %v1333_v11, %v6821_v26  ;;  %v1477_v7 = vmul.f32 %v1328_v5, %v6826_v61  ;;  %1462 = vperm.xlu1 %5682, %v4707_v42   ;;  %v6841_v14 = vpop.f32.mrb[12].mxu0  ;;  %v5525_v16 = vpop.f32.mrb[12].mxu1  ;;  %3574 = vmatprep.mubr.bf16.mxu0 %v2658_v22  ;;  %v4755_v42 = vld [vmem:[%s8552_s3 + $0x568] sm:$0xff]  ;;  %v2674_v5 = vpack.c.bf16 %v1162_v54, %v1161_v24 }
 0x124   : > { %1457 = vperm.xlu0 %5681, %v4706_v33   ;;  %v6846_v1 = vadd.f32 %v5525_v16, %v6645_v21  ;;  %v6848_v62 = vpop.f32.mrb[13].mxu0  ;;  %v570_v0 = vpop.f32.mrb[13].mxu1  ;;  %5320 = vmatpush3.bf16.msra.mxu0 %v5740_v4  ;;  %v1194_v33 = vrot.slane %v6710_v31, 1  ;;  %v8688_v4 = vrot.slane %v6793_v38, 7 }
 0x125   : > { %v2657_v11 = vpack.c.bf16 %v1478_v49, %v1477_v7  ;;  %v6854_v22 = vadd.f32 %v6645_v21, %v570_v0  ;;  %v6856_v63 = vpop.f32.mrb[14].mxu0  ;;  %v5526_v57 = vpop.f32.mrb[14].mxu1  ;;  %v6870_v49 = vmax.f32 %v483_v15, 0.0  ;;  %v6872_v7 = vmax.f32 %v486_v6, 0.0  ;;  %v5742_v15 = vld [vmem:[%s8553_s4 + $0x188] sm:$0xff]  }
 0x126   : > { %8686 = vst [vmem:[#allocation45_spill] sm:$0xff] %v6846_v1  ;;  %3422 = vmatmul.mubr.bf16.gmra.mrb[24].mxu1 %v2664_v41  ;;  %v6863_v16 = vadd.f32 %v5526_v57, %v6645_v21  ;;  %v1575_v34 = vpop.permute.xlu1 %1574  ;;  %v6868_v24 = vsel %vm647_vm0, %v655_v13, %v8688_v4  ;;  %v1570_v54 = vpop.permute.xlu0 %1569  ;;  %v6878_v41 = vsel %vm647_vm0, %v8690_v27, %v655_v13  ;;  %v5741_v4 = vld [vmem:[%s8553_s4 + $0x1c8] sm:$0xff]   ;;  %v4741_v27 = vld [vmem:[%s8552_s3 + $0x3f8] sm:$0xff] }
 0x127   : > { %8689 = vst [vmem:[#allocation47_spill] sm:$0xff] %v6868_v24  ;;  %3429 = vmatprep.mubr.bf16.mxu1 %v2674_v5  ;;  %v1712_v0 = vmul.f32 %v1575_v34, %v6868_v24  ;;  %8691 = vst [vmem:[#allocation48_spill] sm:$0xff] %v6878_v41  ;;  %v6880_v57 = vpop.f32.mrb[15].mxu0  ;;  %1844 = vperm.xlu1 %5682, %v4755_v42   ;;  %v1711_v6 = vmul.f32 %v1570_v54, %v6878_v41  ;;  %v1196_v42 = vrot.slane %v6791_v35, 1 }
 0x128   : > { %8687 = vst [vmem:[#allocation46_spill] sm:$0xff] %v6863_v16  ;;  %v573_v16 = vpop.f32.mrb[15].mxu1  ;;  %1839 = vperm.xlu0 %5681, %v4754_v32   ;;  %v494_v13 = vadd.f32 %v6645_v21, %v6800_v23  ;;  %v8692_v5 = vrot.slane %v6708_v8, 1  ;;  %v4740_v32 = vld [vmem:[%s8552_s3 + $0x3f0] sm:$0xff]  ;;  %5321 = vmatprep.subr.bf16.mxu0 %v5741_v4  ;;  %v491_v54 = vadd.f32 %v6645_v21, %v6769_v3 }
 0x129   : > { %v6895_v34 = vadd.f32 %v6645_v21, %v573_v16  ;;  %3575 = vmatmul.mubr.bf16.gmra.mrb[20].mxu0 %v2657_v11  ;;  %v2667_v23 = vpack.c.bf16 %v1712_v0, %v1711_v6  ;;  %v936_v11 = vmul.f32 %v6356_v40, %v6878_v41  ;;  %v937_v35 = vmul.f32 %v6354_v39, %v6868_v24  ;;  %v5744_v41 = vld [vmem:[%s8553_s4 + $0x190] sm:$0xff]  }
 0x12a   : > { %v6901_v1 = vsel %vm1188_vm1, %v8692_v5, %v1194_v33  ;;  %v1343_v31 = vpop.permute.xlu1 %1342  ;;  %v1338_v16 = vpop.permute.xlu0 %1337  ;;  %5322 = vmatpush3.bf16.msra.mxu0 %v5742_v15  ;;  %v5743_v5 = vld [vmem:[%s8553_s4 + $0x1d0] sm:$0xff]   ;;  %v6916_v8 = vsel %vm1188_vm1, %v1194_v33, %v1196_v42  ;;  %v1163_v3 = vmul.f32 %v6530_v10, %v6870_v49  ;;  %v1164_v40 = vmul.f32 %v6528_v9, %v6872_v7  ;;  %v4709_v33 = vld [vmem:[%s8552_s3 + $0x2f8] sm:$0xff] }
 0x12b   : > { %v1479_v4 = vmul.f32 %v1338_v16, %v6901_v1  ;;  %1704 = vperm.xlu1 %5682, %v4741_v27   ;;  %v1480_v0 = vmul.f32 %v1343_v31, %v6916_v8  ;;  %v2673_v39 = vpack.c.bf16 %v937_v35, %v936_v11  ;;  %3582 = vmatprep.mubr.bf16.mxu0 %v2667_v23  ;;  %v659_v15 = vrot.slane %v6870_v49, 7  ;;  %v4708_v9 = vld [vmem:[%s8552_s3 + $0x2f0] sm:$0xff] }
 0x12c   : > { %1699 = vperm.xlu0 %5681, %v4740_v32   ;;  %v661_v6 = vrot.slane %v6872_v7, 7  ;;  %v6929_v27 = vmax.f32 %v494_v13, 0.0  ;;  %v2683_v16 = vpack.c.bf16 %v1164_v40, %v1163_v3  ;;  %v1198_v10 = vrot.slane %v6793_v38, 1  ;;  %5323 = vmatprep.subr.bf16.mxu0 %v5743_v5 }
 0x12d   : > { %v8568_v31 = vrot.slane %v6870_v49, 1  ;;  %v6936_v35 = vmax.f32 %v491_v54, 0.0  ;;  %v2666_v32 = vpack.c.bf16 %v1480_v0, %v1479_v4  ;;  %v8694_v3 = vrot.slane %v6793_v38, 7 }
 0x12e   : > { %3430 = vmatmul.mubr.bf16.gmra.mrb[28].mxu1 %v2673_v39  ;;  %v1585_v23 = vpop.permute.xlu1 %1584  ;;  %v6939_v11 = vsel %vm647_vm0, %v659_v15, %v661_v6  ;;  %v1580_v13 = vpop.permute.xlu0 %1579  ;;  %v6957_v0 = vsel %vm1188_vm1, %v1196_v42, %v1198_v10  ;;  %v4756_v42 = vld [vmem:[%s8552_s3 + $0x570] sm:$0xff]  ;;  %5324 = vmatpush3.bf16.msra.mxu0 %v5744_v41  ;;  %v1202_v41 = vrot.slane %v6872_v7, 1 }
 0x12f   : > { %8693 = vst [vmem:[#allocation49_spill] sm:$0xff] %v6939_v11  ;;  %v6944_v40 = vsel %vm647_vm0, %v8694_v3, %v659_v15  ;;  %3437 = vmatprep.mubr.bf16.mxu1 %v2683_v16  ;;  %v1714_v54 = vmul.f32 %v1585_v23, %v6939_v11  ;;  %1472 = vperm.xlu1 %5682, %v4709_v33   ;;  %v4757_v16 = vld [vmem:[%s8552_s3 + $0x578] sm:$0xff] }
 0x130   : > { %8695 = vst [vmem:[#allocation50_spill] sm:$0xff] %v6944_v40  ;;  %v1713_v5 = vmul.f32 %v1580_v13, %v6944_v40  ;;  %1467 = vperm.xlu0 %5681, %v4708_v9   ;;  %v6954_v4 = vsel %vm1188_vm1, %v1198_v10, %v8568_v31  ;;  %v938_v39 = vmul.f32 %v6366_v44, %v6944_v40  ;;  %v5746_v3 = vld [vmem:[%s8553_s4 + $0x198] sm:$0xff]   ;;  %v8571_v44 = vrot.slane %v6936_v35, 1 }
 0x131   : > { %v939_v15 = vmul.f32 %v6364_v43, %v6939_v11  ;;  %v502_v33 = vadd.f32 %v6785_v46, %v6645_v21  ;;  %3583 = vmatmul.mubr.bf16.gmra.mrb[24].mxu0 %v2666_v32  ;;  %v1166_v10 = vmul.f32 %v6538_v17, %v6929_v27  ;;  %v5745_v43 = vld [vmem:[%s8553_s4 + $0x1d8] sm:$0xff]   ;;  %v499_v23 = vadd.f32 %v6764_v2, %v6645_v21  ;;  %v4807_v2 = vld [vmem:[%s8552_s3 + $0x708] sm:$0xff] }
 0x132   : > { %v2676_v9 = vpack.c.bf16 %v1714_v54, %v1713_v5  ;;  %v1353_v13 = vpop.permute.xlu1 %1352  ;;  %v1348_v46 = vpop.permute.xlu0 %1347  ;;  %v663_v32 = vrot.slane %v6936_v35, 7  ;;  %v1165_v5 = vmul.f32 %v6540_v18, %v6936_v35  ;;  %v4806_v18 = vld [vmem:[%s8552_s3 + $0x700] sm:$0xff]  ;;  %5325 = vmatprep.subr.bf16.mxu0 %v5745_v43 }
 0x133   : > { %v1482_v17 = vmul.f32 %v1353_v13, %v6954_v4  ;;  %v1481_v54 = vmul.f32 %v1348_v46, %v6957_v0  ;;  %1854 = vperm.xlu1 %5682, %v4757_v16   ;;  %v2682_v31 = vpack.c.bf16 %v939_v15, %v938_v39  ;;  %v6992_v40 = vmax.f32 %v502_v33, 0.0  ;;  %v5747_v39 = vld [vmem:[%s8553_s4 + $0x1e0] sm:$0xff]   ;;  %5326 = vmatpush3.bf16.msra.mxu0 %v5746_v3  ;;  %v4775_v3 = vld [vmem:[%s8552_s3 + $0x608] sm:$0xff] }
 0x134   : > { %3590 = vmatprep.mubr.bf16.mxu0 %v2676_v9  ;;  %1849 = vperm.xlu0 %5681, %v4756_v42   ;;  %v2692_v11 = vpack.c.bf16 %v1166_v10, %v1165_v5  ;;  %v8696_v16 = vrot.slane %v6929_v27, 7  ;;  %v7006_v9 = vsel %vm647_vm0, %v661_v6, %v663_v32  ;;  %v5748_v42 = vld [vmem:[%s8553_s4 + $0x1a0] sm:$0xff]   ;;  %v7011_v10 = vmax.f32 %v499_v23, 0.0 }
 0x135   : > { %v2675_v13 = vpack.c.bf16 %v1482_v17, %v1481_v54  ;;  %8698 = vst [vmem:[#allocation52_spill] sm:$0xff] %v7006_v9  ;;  %v7020_v6 = vsel %vm1188_vm1, %v1202_v41, %v8571_v44  ;;  %v1168_v5 = vmul.f32 %v6548_v29, %v6992_v40  ;;  %5327 = vmatprep.subr.bf16.mxu0 %v5747_v39  ;;  %v5750_v29 = vld [vmem:[%s8553_s4 + $0x1a8] sm:$0xff]  }
 0x136   : > { %v6997_v46 = vsel %vm647_vm0, %v663_v32, %v8696_v16  ;;  %3438 = vmatmul.mubr.bf16.gmra.mrb[32].mxu1 %v2682_v31  ;;  %v1595_v15 = vpop.permute.xlu1 %1594  ;;  %v1590_v33 = vpop.permute.xlu0 %1589  ;;  %v510_v31 = vadd.f32 %v6645_v21, %v6880_v57  ;;  %v8699_v32 = vrot.slane %v6870_v49, 1  ;;  %v4774_v57 = vld [vmem:[%s8552_s3 + $0x600] sm:$0xff]  ;;  %v507_v16 = vadd.f32 %v6645_v21, %v6848_v62 }
 0x137   : > { %8697 = vst [vmem:[#allocation51_spill] sm:$0xff] %v6997_v46  ;;  %3445 = vmatprep.mubr.bf16.mxu1 %v2692_v11  ;;  %v1716_v43 = vmul.f32 %v1595_v15, %v6997_v46  ;;  %v1715_v17 = vmul.f32 %v1590_v33, %v7006_v9  ;;  %2236 = vperm.xlu1 %5682, %v4807_v2   ;;  %v667_v2 = vrot.slane %v7011_v10, 7 }
 0x138   : > { %2231 = vperm.xlu0 %5681, %v4806_v18   ;;  %v7025_v23 = vsel %vm1188_vm1, %v8699_v32, %v1202_v41  ;;  %v941_v11 = vmul.f32 %v6374_v47, %v6997_v46  ;;  %v8573_v41 = vrot.slane %v6992_v40, 7  ;;  %v5749_v47 = vld [vmem:[%s8553_s4 + $0x1e8] sm:$0xff]   ;;  %v940_v15 = vmul.f32 %v6376_v48, %v7006_v9  ;;  %5328 = vmatpush3.bf16.msra.mxu0 %v5748_v42 }
 0x139   : > { %v2685_v54 = vpack.c.bf16 %v1716_v43, %v1715_v17  ;;  %3591 = vmatmul.mubr.bf16.gmra.mrb[28].mxu0 %v2675_v13  ;;  %v1167_v43 = vmul.f32 %v6550_v30, %v7011_v10  ;;  %v7053_v62 = vmax.f32 %v510_v31, 0.0  ;;  %v4759_v48 = vld [vmem:[%s8552_s3 + $0x588] sm:$0xff]  ;;  %v1206_v42 = vrot.slane %v6929_v27, 1  ;;  %5329 = vmatprep.subr.bf16.mxu0 %v5749_v47 }
 0x13a   : > { %v1363_v13 = vpop.permute.xlu1 %1362  ;;  %v1358_v18 = vpop.permute.xlu0 %1357  ;;  %v2691_v17 = vpack.c.bf16 %v941_v11, %v940_v15  ;;  %v8572_v32 = vrot.slane %v7011_v10, 1  ;;  %v8702_v30 = vrot.slane %v6929_v27, 7  ;;  %v4758_v11 = vld [vmem:[%s8552_s3 + $0x580] sm:$0xff] }
 0x13b   : > { %v1484_v33 = vmul.f32 %v1363_v13, %v7020_v6  ;;  %v1483_v39 = vmul.f32 %v1358_v18, %v7025_v23  ;;  %2011 = vperm.xlu1 %5682, %v4775_v3   ;;  %3598 = vmatprep.mubr.bf16.mxu0 %v2685_v54  ;;  %8700 = vst [vmem:[#allocation53_spill] sm:$0xff] %v7053_v62  ;;  %v7073_v54 = vmax.f32 %v507_v16, 0.0  ;;  %v5751_v18 = vld [vmem:[%s8553_s4 + $0x1f0] sm:$0xff]   ;;  %v8704_v16 = vrot.slane %v6936_v35, 1 }
 0x13c   : > { %2006 = vperm.xlu0 %5681, %v4774_v57   ;;  %v2701_v44 = vpack.c.bf16 %v1168_v5, %v1167_v43  ;;  %v7063_v3 = vsel %vm647_vm0, %v667_v2, %v8573_v41  ;;  %v7068_v31 = vsel %vm647_vm0, %v8702_v30, %v667_v2  ;;  %5330 = vmatpush3.bf16.msra.mxu0 %v5750_v29 }
 0x13d   : > { %v2684_v13 = vpack.c.bf16 %v1484_v33, %v1483_v39  ;;  %8701 = vst [vmem:[#allocation54_spill] sm:$0xff] %v7063_v3  ;;  %8703 = vst [vmem:[#allocation55_spill] sm:$0xff] %v7068_v31  ;;  %v7083_v47 = vsel %vm1188_vm1, %v1206_v42, %v8572_v32  ;;  %v7088_v29 = vsel %vm1188_vm1, %v8704_v16, %v1206_v42  ;;  %v4809_v39 = vld [vmem:[%s8552_s3 + $0x718] sm:$0xff]  ;;  %5331 = vmatprep.subr.bf16.mxu0 %v5751_v18 }
 0x13e   : > { %3446 = vmatmul.mubr.bf16.gmra.mrb[36].mxu1 %v2691_v17  ;;  %v1605_v57 = vpop.permute.xlu1 %1604  ;;  %v1600_v5 = vpop.permute.xlu0 %1599  ;;  %8705 = vst [vmem:[#allocation56_spill] sm:$0xff] %v7088_v29  ;;  %v942_v33 = vmul.f32 %v6386_v52, %v7068_v31  ;;  %v518_v43 = vadd.f32 %v6856_v63, %v6645_v21  ;;  %v1170_v42 = vmul.f32 %v6561_v36, %v7053_v62  ;;  %v673_v52 = vrot.slane %v7053_v62, 7 }
 0x13f   : > { %3453 = vmatprep.mubr.bf16.mxu1 %v2701_v44  ;;  %v1718_v15 = vmul.f32 %v1605_v57, %v7063_v3  ;;  %v1717_v2 = vmul.f32 %v1600_v5, %v7068_v31  ;;  %1864 = vperm.xlu1 %5682, %v4759_v48   ;;  %v943_v44 = vmul.f32 %v6384_v51, %v7063_v3  ;;  %v4808_v48 = vld [vmem:[%s8552_s3 + $0x710] sm:$0xff]  ;;  %v5753_v57 = vld [vmem:[%s8553_s4 + $0x1f8] sm:$0xff]   ;;  %v1210_v18 = vrot.slane %v6992_v40, 1 }
 0x140   : > { %1859 = vperm.xlu0 %5681, %v4758_v11   ;;  %v5752_v51 = vld [vmem:[%s8553_s4 + $0x1b0] sm:$0xff]   ;;  %v515_v30 = vadd.f32 %v6841_v14, %v6645_v21  ;;  %v4777_v14 = vld [vmem:[%s8552_s3 + $0x618] sm:$0xff]  ;;  %v1212_v16 = vrot.slane %v7073_v54, 1  ;;  %v7123_v32 = vmax.f32 %v518_v43, 0.0 }
 0x141   : > { %v2694_v17 = vpack.c.bf16 %v1718_v15, %v1717_v2  ;;  %3599 = vmatmul.mubr.bf16.gmra.mrb[32].mxu0 %v2684_v13  ;;  %v671_v13 = vrot.slane %v7073_v54, 7  ;;  %v1169_v15 = vmul.f32 %v6563_v37, %v7073_v54  ;;  %v2700_v2 = vpack.c.bf16 %v943_v44, %v942_v33  ;;  %v4776_v37 = vld [vmem:[%s8552_s3 + $0x610] sm:$0xff] }
 0x142   : > { %v1373_v11 = vpop.permute.xlu1 %1372  ;;  %v1368_v63 = vpop.permute.xlu0 %1367  ;;  %8706 = vst [vmem:[#allocation57_spill] sm:$0xff] %v7123_v32  ;;  %5332 = vmatpush3.bf16.msra.mxu0 %v5752_v51 }
 0x143   : > { %v1486_v36 = vmul.f32 %v1373_v11, %v7083_v47  ;;  %v1485_v5 = vmul.f32 %v1368_v63, %v7088_v29  ;;  %2246 = vperm.xlu1 %5682, %v4809_v39   ;;  %3606 = vmatprep.mubr.bf16.mxu0 %v2694_v17  ;;  %v2710_v41 = vpack.c.bf16 %v1170_v42, %v1169_v15  ;;  %v8708_v17 = vrot.slane %v6992_v40, 7 }
 0x144   : > { %2241 = vperm.xlu0 %5681, %v4808_v48   ;;  %v7128_v39 = vsel %vm647_vm0, %v671_v13, %v673_v52  ;;  %5333 = vmatprep.subr.bf16.mxu0 %v5753_v57  ;;  %v5754_v48 = vld [vmem:[%s8553_s4 + $0x1b8] sm:$0xff]   ;;  %v7141_v42 = vmax.f32 %v515_v30, 0.0  ;;  %v8711_v57 = vrot.slane %v7011_v10, 1 }
 0x145   : > { %v2693_v11 = vpack.c.bf16 %v1486_v36, %v1485_v5  ;;  %8707 = vst [vmem:[#allocation58_spill] sm:$0xff] %v7128_v39  ;;  %v7136_v43 = vsel %vm647_vm0, %v8708_v17, %v671_v13  ;;  %v526_v36 = vadd.f32 %v6645_v21, %v6683_v53  ;;  %v7148_v13 = vsel %vm1188_vm1, %v1210_v18, %v1212_v16  ;;  %v4761_v30 = vld [vmem:[%s8552_s3 + $0x598] sm:$0xff]  ;;  %v4760_v53 = vld [vmem:[%s8552_s3 + $0x590] sm:$0xff] }
 0x146   : > { %3454 = vmatmul.mubr.bf16.gmra.mrb[40].mxu1 %v2700_v2  ;;  %v1615_v33 = vpop.permute.xlu1 %1614  ;;  %v1610_v44 = vpop.permute.xlu0 %1609  ;;  %8709 = vst [vmem:[#allocation59_spill] sm:$0xff] %v7136_v43  ;;  %8710 = vst [vmem:[#allocation60_spill] sm:$0xff] %v7141_v42  ;;  %v7153_v5 = vsel %vm1188_vm1, %v8711_v57, %v1210_v18  ;;  %v1172_v2 = vmul.f32 %v6574_v45, %v7123_v32  ;;  %v677_v18 = vrot.slane %v7123_v32, 7  ;;  %5334 = vmatpush3.bf16.msra.mxu0 %v5754_v48 }
 0x147   : > { %3461 = vmatprep.mubr.bf16.mxu1 %v2710_v41  ;;  %v1720_v63 = vmul.f32 %v1615_v33, %v7128_v39  ;;  %v1719_v51 = vmul.f32 %v1610_v44, %v7136_v43  ;;  %2021 = vperm.xlu1 %5682, %v4777_v14   ;;  %v945_v41 = vmul.f32 %v6394_v55, %v7128_v39  ;;  %v675_v14 = vrot.slane %v7141_v42, 7 }
 0x148   : > { %2016 = vperm.xlu0 %5681, %v4776_v37   ;;  %v523_v55 = vadd.f32 %v6645_v21, %v6660_v25  ;;  %v944_v44 = vmul.f32 %v6396_v56, %v7136_v43  ;;  %v1171_v45 = vmul.f32 %v6576_v28, %v7141_v42  ;;  %v4811_v25 = vld [vmem:[%s8552_s3 + $0x728] sm:$0xff]  ;;  %v1214_v56 = vrot.slane %v7053_v62, 1  ;;  %v8730_v43 = vld [vmem:[#allocation41_spill] sm:$0xff] }
 0x149   : > { %v2703_v15 = vpack.c.bf16 %v1720_v63, %v1719_v51  ;;  %3607 = vmatmul.mubr.bf16.gmra.mrb[36].mxu0 %v2693_v11  ;;  %v7175_v63 = vmax.f32 %v526_v36, 0.0  ;;  %v1216_v21 = vrot.slane %v7141_v42, 1  ;;  %v7188_v28 = vsel %vm647_vm0, %v673_v52, %v675_v14  ;;  %v4810_v36 = vld [vmem:[%s8552_s3 + $0x720] sm:$0xff] }
 0x14a   : > { %v1383_v37 = vpop.permute.xlu1 %1382  ;;  %v1378_v33 = vpop.permute.xlu0 %1377  ;;  %v2709_v51 = vpack.c.bf16 %v945_v41, %v944_v44  ;;  %v2719_v57 = vpack.c.bf16 %v1172_v2, %v1171_v45  ;;  %8714 = vst [vmem:[#allocation63_spill] sm:$0xff] %v7188_v28  ;;  %v7201_v52 = vsel %vm1188_vm1, %v1212_v16, %v1214_v56  ;;  %v8716_v44 = vld [vmem:[#allocation5_spill] sm:$0xff]  ;;  %v7381_v42 = vmax.f32 %v6806_v59, 0.0 }
 0x14b   : > { %v1488_v11 = vmul.f32 %v1383_v37, %v7148_v13  ;;  %v1487_v17 = vmul.f32 %v1378_v33, %v7153_v5  ;;  %1874 = vperm.xlu1 %5682, %v4761_v30   ;;  %3614 = vmatprep.mubr.bf16.mxu0 %v2703_v15  ;;  %8712 = vst [vmem:[#allocation61_spill] sm:$0xff] %v7175_v63  ;;  %v4778_v45 = vld [vmem:[%s8552_s3 + $0x620] sm:$0xff] }
 0x14c   : > { %1869 = vperm.xlu0 %5681, %v4760_v53   ;;  %v7183_v30 = vsel %vm647_vm0, %v675_v14, %v677_v18  ;;  %v7193_v53 = vmax.f32 %v523_v55, 0.0  ;;  %v7198_v33 = vsel %vm1188_vm1, %v1214_v56, %v1216_v21  ;;  %v946_v14 = vmul.f32 %v6406_v60, %v7188_v28 }
 0x14d   : > { %v2702_v48 = vpack.c.bf16 %v1488_v11, %v1487_v17  ;;  %8713 = vst [vmem:[#allocation62_spill] sm:$0xff] %v7183_v30  ;;  %v947_v55 = vmul.f32 %v8716_v44, %v7183_v30  ;;  %v4779_v11 = vld [vmem:[%s8552_s3 + $0x628] sm:$0xff]  ;;  %v1218_v44 = vrot.slane %v7123_v32, 1 }
 0x14e   : > { %3462 = vmatmul.mubr.bf16.gmra.mrb[44].mxu1 %v2709_v51  ;;  %v1625_v41 = vpop.permute.xlu1 %1624  ;;  %v1620_v15 = vpop.permute.xlu0 %1619  ;;  %8715 = vst [vmem:[#allocation64_spill] sm:$0xff] %v7193_v53  ;;  %v8717_v51 = vld [vmem:[#allocation20_spill] sm:$0xff]  ;;  %v679_v60 = vrot.slane %v7193_v53, 7  ;;  %v8742_v9 = vrot.slane %v7193_v53, 1 }
 0x14f   : > { %3469 = vmatprep.mubr.bf16.mxu1 %v2719_v57  ;;  %v1722_v2 = vmul.f32 %v1625_v41, %v7183_v30  ;;  %v1721_v37 = vmul.f32 %v1620_v15, %v7188_v28  ;;  %2256 = vperm.xlu1 %5682, %v4811_v25   ;;  %v1174_v16 = vmul.f32 %v8717_v51, %v7175_v63  ;;  %v681_v57 = vrot.slane %v7175_v63, 7  ;;  %v8719_v28 = vld [vmem:[#allocation31_spill] sm:$0xff] }
 0x150   : > { %2251 = vperm.xlu0 %5681, %v4810_v36   ;;  %v7227_v30 = vmax.f32 %v8719_v28, 0.0 }
 0x151   : > { %v2712_v17 = vpack.c.bf16 %v1722_v2, %v1721_v37  ;;  %3615 = vmatmul.mubr.bf16.gmra.mrb[40].mxu0 %v2702_v48  ;;  %v8718_v48 = vld [vmem:[#allocation21_spill] sm:$0xff]  ;;  %v2718_v2 = vpack.c.bf16 %v947_v55, %v946_v14  ;;  %v4763_v37 = vld [vmem:[%s8552_s3 + $0x5a8] sm:$0xff] }
 0x152   : > { %v1393_v25 = vpop.permute.xlu1 %1392  ;;  %v1388_v56 = vpop.permute.xlu0 %1387  ;;  %v1173_v15 = vmul.f32 %v8718_v48, %v7193_v53  ;;  %8720 = vst [vmem:[#allocation5_spill] sm:$0xff] %v7227_v30  ;;  %v4762_v14 = vld [vmem:[%s8552_s3 + $0x5a0] sm:$0xff]  ;;  %v8723_v48 = vld [vmem:[#allocation30_spill] sm:$0xff] }
 0x153   : > { %v1490_v36 = vmul.f32 %v1393_v25, %v7198_v33  ;;  %v1489_v41 = vmul.f32 %v1388_v56, %v7201_v52  ;;  %2031 = vperm.xlu1 %5682, %v4779_v11   ;;  %3622 = vmatprep.mubr.bf16.mxu0 %v2712_v17  ;;  %v7230_v11 = vsel %vm647_vm0, %v677_v18, %v679_v60  ;;  %v7239_v51 = vmax.f32 %v8723_v48, 0.0 }
 0x154   : > { %2026 = vperm.xlu0 %5681, %v4778_v45   ;;  %v2728_v56 = vpack.c.bf16 %v1174_v16, %v1173_v15  ;;  %8721 = vst [vmem:[#allocation20_spill] sm:$0xff] %v7230_v11  ;;  %v7236_v17 = vsel %vm647_vm0, %v679_v60, %v681_v57  ;;  %v8725_v18 = vrot.slane %v7193_v53, 1  ;;  %v8726_v60 = vld [vmem:[#allocation7_spill] sm:$0xff]  ;;  %v1226_v53 = vrot.slane %v7227_v30, 1 }
 0x155   : > { %v2711_v25 = vpack.c.bf16 %v1490_v36, %v1489_v41  ;;  %8722 = vst [vmem:[#allocation21_spill] sm:$0xff] %v7236_v17  ;;  %8724 = vst [vmem:[#allocation31_spill] sm:$0xff] %v7239_v51  ;;  %v7249_v41 = vsel %vm1188_vm1, %v1216_v21, %v1218_v44  ;;  %v948_v15 = vmul.f32 %v8726_v60, %v7230_v11  ;;  %v4781_v21 = vld [vmem:[%s8552_s3 + $0x638] sm:$0xff] }
 0x156   : > { %3470 = vmatmul.mubr.bf16.gmra.mrb[48].mxu1 %v2718_v2  ;;  %v1635_v55 = vpop.permute.xlu1 %1634  ;;  %v1630_v45 = vpop.permute.xlu0 %1629  ;;  %v7246_v36 = vsel %vm1188_vm1, %v1218_v44, %v8725_v18  ;;  %v4813_v2 = vld [vmem:[%s8552_s3 + $0x738] sm:$0xff]  ;;  %v8728_v18 = vld [vmem:[#allocation6_spill] sm:$0xff] }
 0x157   : > { %3477 = vmatprep.mubr.bf16.mxu1 %v2728_v56  ;;  %v1724_v28 = vmul.f32 %v1635_v55, %v7236_v17  ;;  %v1723_v16 = vmul.f32 %v1630_v45, %v7230_v11  ;;  %1884 = vperm.xlu1 %5682, %v4763_v37   ;;  %v4812_v37 = vld [vmem:[%s8552_s3 + $0x730] sm:$0xff]  ;;  %v683_v45 = vrot.slane %v7239_v51, 7  ;;  %v949_v60 = vmul.f32 %v8728_v18, %v7236_v17 }
 0x158   : > { %1879 = vperm.xlu0 %5681, %v4762_v14   ;;  %v8727_v14 = vld [vmem:[#allocation22_spill] sm:$0xff]  ;;  %v8740_v17 = vrot.slane %v7239_v51, 1 }
 0x159   : > { %v2721_v56 = vpack.c.bf16 %v1724_v28, %v1723_v16  ;;  %3623 = vmatmul.mubr.bf16.gmra.mrb[44].mxu0 %v2711_v25  ;;  %v1176_v55 = vmul.f32 %v8727_v14, %v7227_v30  ;;  %v8729_v28 = vld [vmem:[#allocation23_spill] sm:$0xff]  ;;  %v7270_v14 = vmax.f32 %v8730_v43, 0.0  ;;  %v2727_v39 = vpack.c.bf16 %v949_v60, %v948_v15 }
 0x15a   : > { %v1403_v44 = vpop.permute.xlu1 %1402  ;;  %v1398_v48 = vpop.permute.xlu0 %1397  ;;  %v1175_v16 = vmul.f32 %v8729_v28, %v7239_v51  ;;  %v7284_v43 = vsel %vm647_vm0, %v681_v57, %v683_v45  ;;  %v8737_v57 = vld [vmem:[#allocation8_spill] sm:$0xff] }
 0x15b   : > { %v1492_v11 = vmul.f32 %v1403_v44, %v7246_v36  ;;  %v1491_v25 = vmul.f32 %v1398_v48, %v7249_v41  ;;  %2266 = vperm.xlu1 %5682, %v4813_v2   ;;  %3630 = vmatprep.mubr.bf16.mxu0 %v2721_v56  ;;  %8731 = vst [vmem:[#allocation30_spill] sm:$0xff] %v7270_v14  ;;  %v4780_v44 = vld [vmem:[%s8552_s3 + $0x630] sm:$0xff]  ;;  %v8732_v2 = vrot.slane %v7227_v30, 7  ;;  %8734 = vst [vmem:[#allocation22_spill] sm:$0xff] %v7284_v43 }
 0x15c   : > { %2261 = vperm.xlu0 %5681, %v4812_v37   ;;  %v2737_v18 = vpack.c.bf16 %v1176_v55, %v1175_v16  ;;  %v8735_v37 = vld [vmem:[#allocation39_spill] sm:$0xff]  ;;  %v1222_v16 = vrot.slane %v7175_v63, 1 }
 0x15d   : > { %v2720_v31 = vpack.c.bf16 %v1492_v11, %v1491_v25  ;;  %v7281_v48 = vsel %vm647_vm0, %v683_v45, %v8732_v2  ;;  %v7287_v60 = vmax.f32 %v8735_v37, 0.0  ;;  %v8736_v25 = vld [vmem:[#allocation9_spill] sm:$0xff]  ;;  %v4765_v45 = vld [vmem:[%s8552_s3 + $0x5b8] sm:$0xff]  ;;  %v689_v2 = vrot.slane %v7270_v14, 7 }
 0x15e   : > { %8733 = vst [vmem:[#allocation7_spill] sm:$0xff] %v7281_v48  ;;  %3478 = vmatmul.mubr.bf16.gmra.mrb[52].mxu1 %v2727_v39  ;;  %v1785_v15 = vpop.permute.xlu1 %1784  ;;  %v1780_v56 = vpop.permute.xlu0 %1779  ;;  %v950_v28 = vmul.f32 %v8736_v25, %v7284_v43  ;;  %v951_v39 = vmul.f32 %v8737_v57, %v7281_v48  ;;  %v7315_v37 = vld [vmem:[%s8553_s4 + $0x200] sm:$0xff]   ;;  %v7325_v3 = vsel %vm1188_vm1, %v1222_v16, %v8740_v17 }
 0x15f   : > { %3485 = vmatprep.mubr.bf16.mxu1 %v2737_v18  ;;  %v7290_v11 = vmul.f32 %v1785_v15, %v6821_v26  ;;  %v7293_v55 = vmul.f32 %v1780_v56, %v6826_v61  ;;  %2041 = vperm.xlu1 %5682, %v4781_v21   ;;  %v4764_v21 = vld [vmem:[%s8552_s3 + $0x5b0] sm:$0xff]  ;;  %v8738_v18 = vld [vmem:[#allocation24_spill] sm:$0xff]  ;;  %v8739_v57 = vld [vmem:[#allocation25_spill] sm:$0xff]  ;;  %v687_v26 = vrot.slane %v7287_v60, 7  ;;  %8741 = vst [vmem:[#allocation6_spill] sm:$0xff] %v7325_v3  ;;  %v8596_v32 = vrot.slane %v7287_v60, 1 }
 0x160   : > { %2036 = vperm.xlu0 %5681, %v4780_v44   ;;  %v1178_v44 = vmul.f32 %v8738_v18, %v7270_v14  ;;  %v1177_v61 = vmul.f32 %v8739_v57, %v7287_v60  ;;  %v2736_v18 = vpack.c.bf16 %v951_v39, %v950_v28  ;;  %v7330_v46 = vsel %vm1188_vm1, %v8742_v9, %v1222_v16  ;;  %v4814_v17 = vld [vmem:[%s8552_s3 + $0x740] sm:$0xff]  ;;  %v8747_v57 = vld [vmem:[#allocation38_spill] sm:$0xff] }
 0x161   : > { %3631 = vmatmul.mubr.bf16.gmra.mrb[48].mxu0 %v2720_v31  ;;  %8743 = vst [vmem:[#allocation23_spill] sm:$0xff] %v7330_v46  ;;  %5527 = vmatprep.subr.bf16.mxu1 %v7315_v37 }
 0x162   : > { %v1645_v15 = vpop.permute.xlu1 %1644  ;;  %v1640_v56 = vpop.permute.xlu0 %1639  ;;  %v2746_v39 = vpack.c.bf16 %v1178_v44, %v1177_v61  ;;  %v8748_v61 = vrot.slane %v7227_v30, 7 }
 0x163   : > { %v1726_v25 = vmul.f32 %v1645_v15, %v7281_v48  ;;  %v1725_v31 = vmul.f32 %v1640_v56, %v7284_v43  ;;  %1894 = vperm.xlu1 %5682, %v4765_v45   ;;  %v4815_v45 = vld [vmem:[%s8552_s3 + $0x748] sm:$0xff]  ;;  %v8744_v15 = vld [vmem:[#allocation40_spill] sm:$0xff]  ;;  %v7346_v43 = vmax.f32 %v8747_v57, 0.0 }
 0x164   : > { %1889 = vperm.xlu0 %5681, %v4764_v21   ;;  %v7337_v56 = vmax.f32 %v8744_v15, 0.0  ;;  %v7343_v21 = vsel %vm647_vm0, %v687_v26, %v689_v2  ;;  %v7353_v44 = vsel %vm647_vm0, %v8748_v61, %v687_v26  ;;  %v8752_v61 = vld [vmem:[#allocation11_spill] sm:$0xff] }
 0x165   : > { %v2730_v28 = vpack.c.bf16 %v1726_v25, %v1725_v31  ;;  %8746 = vst [vmem:[#allocation39_spill] sm:$0xff] %v7343_v21  ;;  %8749 = vst [vmem:[#allocation9_spill] sm:$0xff] %v7353_v44  ;;  %v8750_v25 = vld [vmem:[#allocation10_spill] sm:$0xff]  ;;  %v691_v26 = vrot.slane %v7346_v43, 7  ;;  %v8770_v24 = vrot.slane %v7346_v43, 1 }
 0x166   : > { %8745 = vst [vmem:[#allocation41_spill] sm:$0xff] %v7337_v56  ;;  %3486 = vmatmul.mubr.bf16.gmra.mrb[56].mxu1 %v2736_v18  ;;  %v1413_v9 = vpop.permute.xlu1 %1412  ;;  %v1408_v16 = vpop.permute.xlu0 %1407  ;;  %v953_v31 = vmul.f32 %v8750_v25, %v7343_v21  ;;  %v4783_v18 = vld [vmem:[%s8552_s3 + $0x648] sm:$0xff]  ;;  %v952_v25 = vmul.f32 %v8752_v61, %v7353_v44 }
 0x167   : > { %3493 = vmatprep.mubr.bf16.mxu1 %v2746_v39  ;;  %v1494_v48 = vmul.f32 %v1413_v9, %v7325_v3  ;;  %v1493_v15 = vmul.f32 %v1408_v16, %v7330_v46  ;;  %2276 = vperm.xlu1 %5682, %v4815_v45   ;;  %v4782_v9 = vld [vmem:[%s8552_s3 + $0x640] sm:$0xff]  ;;  %v8751_v45 = vld [vmem:[#allocation26_spill] sm:$0xff] }
 0x168   : > { %2271 = vperm.xlu0 %5681, %v4814_v17   ;;  %3638 = vmatprep.mubr.bf16.mxu0 %v2730_v28  ;;  %v1180_v16 = vmul.f32 %v8751_v45, %v7337_v56  ;;  %v693_v17 = vrot.slane %v7337_v56, 7  ;;  %v2745_v63 = vpack.c.bf16 %v953_v31, %v952_v25  ;;  %v4767_v45 = vld [vmem:[%s8552_s3 + $0x5c8] sm:$0xff]  ;;  %v7393_v25 = vmax.f32 %v6783_v19, 0.0  ;;  %v8760_v19 = vld [vmem:[#allocation13_spill] sm:$0xff] }
 0x169   : > { %v2729_v39 = vpack.c.bf16 %v1494_v48, %v1493_v15  ;;  %v8753_v48 = vld [vmem:[#allocation27_spill] sm:$0xff] }
 0x16a   : > { %v7367_v28 = vpop.permute.xlu1 %1794  ;;  %v7369_v57 = vpop.permute.xlu0 %1789  ;;  %v1179_v15 = vmul.f32 %v8753_v48, %v7346_v43  ;;  %v7390_v31 = vsel %vm647_vm0, %v691_v26, %v693_v17  ;;  %8756 = vst [vmem:[#allocation25_spill] sm:$0xff] %v7393_v25 }
 0x16b   : > { %2051 = vperm.xlu1 %5682, %v4783_v18   ;;  %3639 = vmatmul.mubr.bf16.gmra.mrb[52].mxu0 %v2729_v39  ;;  %v4766_v18 = vld [vmem:[%s8552_s3 + $0x5c0] sm:$0xff]  ;;  %v7387_v39 = vsel %vm647_vm0, %v689_v2, %v691_v26  ;;  %8755 = vst [vmem:[#allocation24_spill] sm:$0xff] %v7390_v31  ;;  %v7400_v2 = vsel %vm1188_vm1, %v1226_v53, %v8596_v32  ;;  %v8758_v26 = vrot.slane %v7239_v51, 1  ;;  %v7429_v51 = vmax.f32 %v6796_v58, 0.0 }
 0x16c   : > { %2046 = vperm.xlu0 %5681, %v4782_v9   ;;  %v2755_v46 = vpack.c.bf16 %v1180_v16, %v1179_v15  ;;  %8754 = vst [vmem:[#allocation8_spill] sm:$0xff] %v7387_v39  ;;  %8757 = vst [vmem:[#allocation40_spill] sm:$0xff] %v7400_v2  ;;  %v954_v48 = vmul.f32 %v8760_v19, %v7387_v39 }
 0x16e   : > { %3494 = vmatmul.mubr.bf16.gmra.mrb[60].mxu1 %v2745_v63  ;;  %v1655_v9 = vpop.permute.xlu1 %1654  ;;  %v1650_v61 = vpop.permute.xlu0 %1649  ;;  %v7405_v63 = vsel %vm1188_vm1, %v8758_v26, %v1226_v53  ;;  %v697_v53 = vrot.slane %v7381_v42, 7 }
 0x16f   : > { %3501 = vmatprep.mubr.bf16.mxu1 %v2755_v46  ;;  %v1728_v59 = vmul.f32 %v1655_v9, %v7343_v21  ;;  %v1727_v16 = vmul.f32 %v1650_v61, %v7353_v44  ;;  %1904 = vperm.xlu1 %5682, %v4767_v45   ;;  %8759 = vst [vmem:[#allocation38_spill] sm:$0xff] %v7405_v63  ;;  %v8761_v46 = vld [vmem:[#allocation12_spill] sm:$0xff]  ;;  %v4816_v9 = vld [vmem:[%s8552_s3 + $0x750] sm:$0xff]  ;;  %v8763_v21 = vld [vmem:[#allocation29_spill] sm:$0xff] }
 0x170   : > { %1899 = vperm.xlu0 %5681, %v4766_v18   ;;  %v955_v15 = vmul.f32 %v8761_v46, %v7390_v31  ;;  %v4817_v45 = vld [vmem:[%s8552_s3 + $0x758] sm:$0xff]  ;;  %v1181_v30 = vmul.f32 %v8763_v21, %v7393_v25 }
 0x171   : > { %v2739_v18 = vpack.c.bf16 %v1728_v59, %v1727_v16  ;;  %v8762_v61 = vld [vmem:[#allocation28_spill] sm:$0xff]  ;;  %v695_v59 = vrot.slane %v7393_v25, 7 }
 0x172   : > { %v1182_v32 = vmul.f32 %v8762_v61, %v7381_v42  ;;  %v1423_v26 = vpop.permute.xlu1 %1422  ;;  %v1418_v44 = vpop.permute.xlu0 %1417  ;;  %v2754_v16 = vpack.c.bf16 %v955_v15, %v954_v48  ;;  %v4785_v61 = vld [vmem:[%s8552_s3 + $0x658] sm:$0xff]  ;;  %v7442_v15 = vmax.f32 %v6767_v50, 0.0  ;;  %v4768_v50 = vld [vmem:[%s8552_s3 + $0x5d0] sm:$0xff] }
 0x173   : > { %v1496_v19 = vmul.f32 %v1423_v26, %v7400_v2  ;;  %v1495_v46 = vmul.f32 %v1418_v44, %v7405_v63  ;;  %2286 = vperm.xlu1 %5682, %v4817_v45   ;;  %3646 = vmatprep.mubr.bf16.mxu0 %v2739_v18  ;;  %v4784_v44 = vld [vmem:[%s8552_s3 + $0x650] sm:$0xff]  ;;  %v7435_v21 = vsel %vm647_vm0, %v695_v59, %v697_v53  ;;  %v4769_v18 = vld [vmem:[%s8552_s3 + $0x5d8] sm:$0xff]  ;;  %v7468_v2 = vmax.f32 %v6895_v34, 0.0  ;;  %v4818_v34 = vld [vmem:[%s8552_s3 + $0x760] sm:$0xff] }
 0x174   : > { %2281 = vperm.xlu0 %5681, %v4816_v9   ;;  %v2764_v26 = vpack.c.bf16 %v1182_v32, %v1181_v30  ;;  %8764 = vst [vmem:[#allocation10_spill] sm:$0xff] %v7435_v21  ;;  %v7445_v58 = vsel %vm647_vm0, %v693_v17, %v695_v59  ;;  %v8766_v32 = vld [vmem:[#allocation14_spill] sm:$0xff]  ;;  %v1230_v9 = vrot.slane %v7270_v14, 1  ;;  %v8767_v17 = vld [vmem:[#allocation32_spill] sm:$0xff]  ;;  %v701_v59 = vrot.slane %v7429_v51, 7  ;;  %v8769_v14 = vld [vmem:[#allocation33_spill] sm:$0xff] }
 0x175   : > { %v2738_v3 = vpack.c.bf16 %v1496_v19, %v1495_v46  ;;  %8765 = vst [vmem:[#allocation26_spill] sm:$0xff] %v7445_v58  ;;  %v957_v30 = vmul.f32 %v8766_v32, %v7435_v21  ;;  %v1184_v46 = vmul.f32 %v8767_v17, %v7429_v51  ;;  %v1183_v63 = vmul.f32 %v8769_v14, %v7442_v15 }
 0x176   : > { %3502 = vmatmul.mubr.bf16.gmra.mrb[64].mxu1 %v2754_v16  ;;  %v7437_v45 = vpop.permute.xlu1 %1804  ;;  %v7439_v48 = vpop.permute.xlu0 %1799  ;;  %v7473_v62 = vsel %vm1188_vm1, %v1230_v9, %v8770_v24 }
 0x177   : > { %3509 = vmatprep.mubr.bf16.mxu1 %v2764_v26  ;;  %2061 = vperm.xlu1 %5682, %v4785_v61   ;;  %v8768_v26 = vld [vmem:[#allocation15_spill] sm:$0xff]  ;;  %8771 = vst [vmem:[#allocation11_spill] sm:$0xff] %v7473_v62 }
 0x178   : > { %2056 = vperm.xlu0 %5681, %v4784_v44   ;;  %3647 = vmatmul.mubr.bf16.gmra.mrb[56].mxu0 %v2738_v3  ;;  %v699_v3 = vrot.slane %v7442_v15, 7  ;;  %v956_v44 = vmul.f32 %v8768_v26, %v7445_v58  ;;  %v8772_v26 = vrot.slane %v7287_v60, 1 }
 0x17a   : > { %v1665_v16 = vpop.permute.xlu1 %1664  ;;  %v1660_v61 = vpop.permute.xlu0 %1659  ;;  %v2763_v17 = vpack.c.bf16 %v957_v30, %v956_v44  ;;  %v7487_v30 = vsel %vm647_vm0, %v697_v53, %v699_v3  ;;  %v7490_v24 = vsel %vm647_vm0, %v699_v3, %v701_v59  ;;  %v7493_v44 = vmax.f32 %v6854_v22, 0.0  ;;  %v8776_v53 = vld [vmem:[#allocation17_spill] sm:$0xff]  ;;  %v8777_v3 = vld [vmem:[#allocation16_spill] sm:$0xff] }
 0x17b   : > { %v1730_v32 = vmul.f32 %v1665_v16, %v7390_v31  ;;  %v1729_v19 = vmul.f32 %v1660_v61, %v7387_v39  ;;  %1914 = vperm.xlu1 %5682, %v4769_v18   ;;  %v7478_v16 = vsel %vm1188_vm1, %v8772_v26, %v1230_v9  ;;  %v4819_v18 = vld [vmem:[%s8552_s3 + $0x768] sm:$0xff]  ;;  %v2773_v61 = vpack.c.bf16 %v1184_v46, %v1183_v63  ;;  %v4786_v26 = vld [vmem:[%s8552_s3 + $0x660] sm:$0xff] }
 0x17c   : > { %1909 = vperm.xlu0 %5681, %v4768_v50   ;;  %8773 = vst [vmem:[#allocation27_spill] sm:$0xff] %v7478_v16  ;;  %8774 = vst [vmem:[#allocation13_spill] sm:$0xff] %v7487_v30  ;;  %v958_v46 = vmul.f32 %v8776_v53, %v7487_v30 }
 0x17d   : > { %v2748_v14 = vpack.c.bf16 %v1730_v32, %v1729_v19  ;;  %8775 = vst [vmem:[#allocation12_spill] sm:$0xff] %v7490_v24  ;;  %v959_v32 = vmul.f32 %v8777_v3, %v7490_v24  ;;  %v4771_v3 = vld [vmem:[%s8552_s3 + $0x5e8] sm:$0xff] }
 0x17e   : > { %3510 = vmatmul.mubr.bf16.gmra.mrb[68].mxu1 %v2763_v17  ;;  %v1433_v50 = vpop.permute.xlu1 %1432  ;;  %v1428_v9 = vpop.permute.xlu0 %1427  ;;  %v4787_v17 = vld [vmem:[%s8552_s3 + $0x668] sm:$0xff] }
 0x17f   : > { %3517 = vmatprep.mubr.bf16.mxu1 %v2773_v61  ;;  %v1498_v19 = vmul.f32 %v1433_v50, %v7473_v62  ;;  %v1497_v63 = vmul.f32 %v1428_v9, %v7478_v16  ;;  %2296 = vperm.xlu1 %5682, %v4819_v18   ;;  %v8778_v61 = vld [vmem:[#allocation34_spill] sm:$0xff]  ;;  %v8779_v9 = vld [vmem:[#allocation35_spill] sm:$0xff] }
 0x180   : > { %2291 = vperm.xlu0 %5681, %v4818_v34   ;;  %3654 = vmatprep.mubr.bf16.mxu0 %v2748_v14  ;;  %v1186_v18 = vmul.f32 %v8778_v61, %v7468_v2  ;;  %v1185_v53 = vmul.f32 %v8779_v9, %v7493_v44  ;;  %v1234_v61 = vrot.slane %v7337_v56, 1  ;;  %v1236_v14 = vrot.slane %v7393_v25, 1 }
 0x181   : > { %v2747_v22 = vpack.c.bf16 %v1498_v19, %v1497_v63  ;;  %v703_v19 = vrot.slane %v7493_v44, 7  ;;  %v2772_v63 = vpack.c.bf16 %v959_v32, %v958_v46  ;;  %v8780_v9 = vrot.slane %v7468_v2, 7 }
 0x182   : > { %v7510_v34 = vpop.permute.xlu1 %1814  ;;  %v7512_v50 = vpop.permute.xlu0 %1809  ;;  %v2782_v39 = vpack.c.bf16 %v1186_v18, %v1185_v53  ;;  %v7536_v53 = vsel %vm1188_vm1, %v1234_v61, %v1236_v14  ;;  %v8784_v25 = vrot.slane %v7346_v43, 1 }
 0x183   : > { %2071 = vperm.xlu1 %5682, %v4787_v17   ;;  %3655 = vmatmul.mubr.bf16.gmra.mrb[60].mxu0 %v2747_v22  ;;  %v4770_v17 = vld [vmem:[%s8552_s3 + $0x5e0] sm:$0xff]  ;;  %v7528_v22 = vsel %vm647_vm0, %v703_v19, %v8780_v9  ;;  %v7533_v18 = vsel %vm647_vm0, %v701_v59, %v703_v19  ;;  %8783 = vst [vmem:[#allocation14_spill] sm:$0xff] %v7536_v53  ;;  %v4820_v59 = vld [vmem:[%s8552_s3 + $0x770] sm:$0xff] }
 0x184   : > { %2066 = vperm.xlu0 %5681, %v4786_v26   ;;  %8781 = vst [vmem:[#allocation28_spill] sm:$0xff] %v7528_v22  ;;  %8782 = vst [vmem:[#allocation29_spill] sm:$0xff] %v7533_v18  ;;  %v7541_v9 = vsel %vm1188_vm1, %v8784_v25, %v1234_v61 }
 0x185   : > { %8785 = vst [vmem:[#allocation32_spill] sm:$0xff] %v7541_v9 }
 0x186   : > { %3518 = vmatmul.mubr.bf16.gmra.mrb[72].mxu1 %v2772_v63  ;;  %v1675_v46 = vpop.permute.xlu1 %1674  ;;  %v1670_v32 = vpop.permute.xlu0 %1669  ;;  %v8786_v63 = vld [vmem:[#allocation18_spill] sm:$0xff] }
 0x187   : > { %3525 = vmatprep.mubr.bf16.mxu1 %v2782_v39  ;;  %v1732_v26 = vmul.f32 %v1675_v46, %v7435_v21  ;;  %v1731_v31 = vmul.f32 %v1670_v32, %v7445_v58  ;;  %1924 = vperm.xlu1 %5682, %v4771_v3   ;;  %v961_v39 = vmul.f32 %v8786_v63, %v7528_v22  ;;  %v4821_v46 = vld [vmem:[%s8552_s3 + $0x778] sm:$0xff]  ;;  %v8787_v32 = vld [vmem:[#allocation19_spill] sm:$0xff] }
 0x188   : > { %1919 = vperm.xlu0 %5681, %v4770_v17   ;;  %v960_v58 = vmul.f32 %v8787_v32, %v7533_v18  ;;  %v4788_v21 = vld [vmem:[%s8552_s3 + $0x670] sm:$0xff] }
 0x189   : > { %v2757_v3 = vpack.c.bf16 %v1732_v26, %v1731_v31  ;;  %v4789_v31 = vld [vmem:[%s8552_s3 + $0x678] sm:$0xff] }
 0x18a   : > { %v1443_v19 = vpop.permute.xlu1 %1442  ;;  %v1438_v17 = vpop.permute.xlu0 %1437  ;;  %v2781_v63 = vpack.c.bf16 %v961_v39, %v960_v58  ;;  %v4773_v58 = vld [vmem:[%s8552_s3 + $0x5f8] sm:$0xff]  ;;  %v1238_v39 = vrot.slane %v7381_v42, 1 }
 0x18b   : > { %v1500_v25 = vmul.f32 %v1443_v19, %v7536_v53  ;;  %v1499_v61 = vmul.f32 %v1438_v17, %v7541_v9  ;;  %2306 = vperm.xlu1 %5682, %v4821_v46   ;;  %3662 = vmatprep.mubr.bf16.mxu0 %v2757_v3  ;;  %v8788_v46 = vpack.c.bf16 %v7290_v11, %v7293_v55  ;;  %v1240_v3 = vrot.slane %v7442_v15, 1  ;;  %v4772_v11 = vld [vmem:[%s8552_s3 + $0x5f0] sm:$0xff] }
 0x18c   : > { %2301 = vperm.xlu0 %5681, %v4820_v59   ;;  %v1940_v59 = vmul.f32 %v7367_v28, %v6916_v8  ;;  %v1939_v19 = vmul.f32 %v7369_v57, %v6901_v1  ;;  %v7588_v28 = vsel %vm1188_vm1, %v1236_v14, %v1238_v39  ;;  %v4823_v57 = vld [vmem:[%s8552_s3 + $0x788] sm:$0xff] }
 0x18d   : > { %v2756_v26 = vpack.c.bf16 %v1500_v25, %v1499_v61  ;;  %v7585_v61 = vsel %vm1188_vm1, %v1238_v39, %v1240_v3  ;;  %8790 = vst [vmem:[#allocation33_spill] sm:$0xff] %v7588_v28  ;;  %v5756_v14 = vld [vmem:[%s8553_s4 + $0x208] sm:$0xff]  }
 0x18e   : > { %3526 = vmatmul.mubr.bf16.gmra.mrb[76].mxu1 %v2781_v63  ;;  %v7561_v56 = vpop.permute.xlu1 %1824  ;;  %v7563_v32 = vpop.permute.xlu0 %1819  ;;  %8789 = vst [vmem:[#allocation15_spill] sm:$0xff] %v7585_v61  ;;  %v2660_v63 = vpack.c.bf16 %v1940_v59, %v1939_v19  ;;  %v4791_v19 = vld [vmem:[%s8552_s3 + $0x688] sm:$0xff] }
 0x18f   : > { %3727 = vmatprep.mubr.bf16.mxu1 %v8788_v46  ;;  %2081 = vperm.xlu1 %5682, %v4789_v31   ;;  %v8791_v46 = vpack.c.bf16 %v6698_v20, %v6680_v12  ;;  %v1942_v12 = vmul.f32 %v7437_v45, %v6954_v4  ;;  %v1941_v20 = vmul.f32 %v7439_v48, %v6957_v0  ;;  %v8792_v45 = vld [vmem:[#allocation36_spill] sm:$0xff]  ;;  %v8793_v48 = vld [vmem:[#allocation37_spill] sm:$0xff] }
 0x190   : > { %2076 = vperm.xlu0 %5681, %v4788_v21   ;;  %3663 = vmatmul.mubr.bf16.gmra.mrb[64].mxu0 %v2756_v26  ;;  %v4822_v26 = vld [vmem:[%s8552_s3 + $0x780] sm:$0xff] }
 0x192   : > { %v1685_v55 = vpop.permute.xlu1 %1684  ;;  %v1680_v21 = vpop.permute.xlu0 %1679 }
 0x193   : > { %v1734_v17 = vmul.f32 %v1685_v55, %v7490_v24  ;;  %v1733_v25 = vmul.f32 %v1680_v21, %v7487_v30  ;;  %1934 = vperm.xlu1 %5682, %v4773_v58   ;;  %v4790_v21 = vld [vmem:[%s8552_s3 + $0x680] sm:$0xff]  ;;  %v4843_v30 = vld [vmem:[%s8552_s3 + $0x828] sm:$0xff] }
 0x194   : > { %1929 = vperm.xlu0 %5681, %v4772_v11  }
 0x195   : > { %v2766_v31 = vpack.c.bf16 %v1734_v17, %v1733_v25  ;;  %v5757_v25 = vld [vmem:[%s8553_s4 + $0x210] sm:$0xff]  }
 0x196   : > { %3728 = vmatmul.mubr.bf16.vlgmr.msra.gmra.mrb[80].mxu1 %v8791_v46  ;;  %v1453_v58 = vpop.permute.xlu1 %1452  ;;  %v1448_v11 = vpop.permute.xlu0 %1447  ;;  %v2669_v46 = vpack.c.bf16 %v1942_v12, %v1941_v20  ;;  %v8795_v12 = vld [vmem:[#allocation46_spill] sm:$0xff] }
 0x197   : > { %3735 = vmatprep.mubr.bf16.mxu1 %v2660_v63  ;;  %v1502_v39 = vmul.f32 %v1453_v58, %v7585_v61  ;;  %v1501_v59 = vmul.f32 %v1448_v11, %v7588_v28  ;;  %2316 = vperm.xlu1 %5682, %v4823_v57   ;;  %v2659_v63 = vpack.c.bf16 %v8793_v48, %v8792_v45  ;;  %v4838_v58 = vld [vmem:[%s8552_s3 + $0x800] sm:$0xff]  ;;  %v7640_v20 = vmax.f32 %v8795_v12, 0.0 }
 0x198   : > { %2311 = vperm.xlu0 %5681, %v4822_v26   ;;  %3670 = vmatprep.mubr.bf16.mxu0 %v2766_v31  ;;  %v4839_v31 = vld [vmem:[%s8552_s3 + $0x808] sm:$0xff]  ;;  %v8622_v26 = vrot.slane %v7493_v44, 1 }
 0x199   : > { %v2765_v55 = vpack.c.bf16 %v1502_v39, %v1501_v59  ;;  %5528 = vmatpush3.bf16.msra.mxu1 %v7315_v37  ;;  %v1242_v37 = vrot.slane %v7429_v51, 1  ;;  %v5758_v39 = vld [vmem:[%s8553_s4 + $0x218] sm:$0xff]  }
 0x19a   : > { %v7615_v17 = vpop.permute.xlu1 %1834  ;;  %5529 = vmatprep.subr.bf16.mxu1 %v5756_v14 }
 0x19b   : > { %v7620_v57 = vpop.permute.xlu0 %1829  ;;  %2091 = vperm.xlu1 %5682, %v4791_v19   ;;  %3671 = vmatmul.mubr.bf16.gmra.mrb[68].mxu0 %v2765_v55  ;;  %v8794_v55 = vld [vmem:[#allocation45_spill] sm:$0xff] }
 0x19c   : > { %2086 = vperm.xlu0 %5681, %v4790_v21   ;;  %v7637_v21 = vmax.f32 %v8794_v55, 0.0 }
 0x19d   : > { %5530 = vmatpush3.bf16.msra.mxu1 %v5756_v14 }
 0x19e   : > { %3736 = vmatmul.mubr.bf16.gmra.mrb[84].mxu1 %v2659_v63  ;;  %v1695_v11 = vpop.permute.xlu1 %1694  ;;  %5531 = vmatprep.subr.bf16.mxu1 %v5757_v25  ;;  %v7646_v63 = vsel %vm1188_vm1, %v1242_v37, %v8622_v26 }
 0x19f   : > { %3743 = vmatprep.mubr.bf16.mxu1 %v2669_v46  ;;  %v1736_v59 = vmul.f32 %v1695_v11, %v7528_v22  ;;  %v1690_v19 = vpop.permute.xlu0 %1689  ;;  %2461 = vperm.xlu1 %5682, %v4839_v31   ;;  %v4841_v46 = vld [vmem:[%s8552_s3 + $0x818] sm:$0xff]  ;;  %v1944_v31 = vmul.f32 %v7510_v34, %v7020_v6  ;;  %v1943_v11 = vmul.f32 %v7512_v50, %v7025_v23  ;;  %v5759_v34 = vld [vmem:[%s8553_s4 + $0x220] sm:$0xff]  }
 0x1a0   : > { %v1735_v14 = vmul.f32 %v1690_v19, %v7533_v18  ;;  %2456 = vperm.xlu0 %5681, %v4838_v58   ;;  %v7658_v19 = vsel %vm1188_vm1, %v1240_v3, %v1242_v37  ;;  %v4840_v58 = vld [vmem:[%s8552_s3 + $0x810] sm:$0xff]  ;;  %v8796_v3 = vld [vmem:[#allocation44_spill] sm:$0xff] }
 0x1a1   : > { %5532 = vmatpush3.bf16.msra.mxu1 %v5757_v25  ;;  %v2668_v37 = vpack.c.bf16 %v6793_v38, %v8796_v3  ;;  %v4825_v25 = vld [vmem:[%s8552_s3 + $0x798] sm:$0xff]  ;;  %v2678_v22 = vpack.c.bf16 %v1944_v31, %v1943_v11  ;;  %v1945_v11 = vmul.f32 %v7563_v32, %v7088_v29 }
 0x1a2   : > { %v2775_v55 = vpack.c.bf16 %v1736_v59, %v1735_v14  ;;  %v1463_v12 = vpop.permute.xlu1 %1462  ;;  %5533 = vmatprep.subr.bf16.mxu1 %v5758_v39  ;;  %v1508_v59 = vrot.slane %v7637_v21, 7  ;;  %v8625_v14 = vrot.slane %v7640_v20, 7 }
 0x1a3   : > { %v1504_v26 = vmul.f32 %v1463_v12, %v7646_v63  ;;  %v1458_v50 = vpop.permute.xlu0 %1457  ;;  %2471 = vperm.xlu1 %5682, %v4841_v46   ;;  %v4824_v46 = vld [vmem:[%s8552_s3 + $0x790] sm:$0xff] }
 0x1a4   : > { %v1503_v18 = vmul.f32 %v1458_v50, %v7658_v19  ;;  %2466 = vperm.xlu0 %5681, %v4840_v58   ;;  %3678 = vmatprep.mubr.bf16.mxu0 %v2775_v55  ;;  %v5760_v58 = vld [vmem:[%s8553_s4 + $0x228] sm:$0xff]   ;;  %v7688_v31 = vsel %vm647_vm0, %v1508_v59, %v8625_v14  ;;  %v5761_v14 = vld [vmem:[%s8553_s4 + $0x230] sm:$0xff]  }
 0x1a5   : > { %5534 = vmatpush3.bf16.msra.mxu1 %v5758_v39  ;;  %8797 = vst [vmem:[#allocation17_spill] sm:$0xff] %v7688_v31 }
 0x1a6   : > { %v2774_v12 = vpack.c.bf16 %v1504_v26, %v1503_v18  ;;  %3744 = vmatmul.mubr.bf16.gmra.mrb[88].mxu1 %v2668_v37  ;;  %v7678_v50 = vpop.permute.xlu1 %1844  ;;  %5535 = vmatprep.subr.bf16.mxu1 %v5759_v34  ;;  %v4793_v18 = vld [vmem:[%s8552_s3 + $0x698] sm:$0xff]  ;;  %v1246_v26 = vrot.slane %v7468_v2, 1  ;;  %v8798_v37 = vrot.slane %v7468_v2, 7 }
 0x1a7   : > { %3751 = vmatprep.mubr.bf16.mxu1 %v2678_v22  ;;  %v7683_v55 = vpop.permute.xlu0 %1839  ;;  %2326 = vperm.xlu1 %5682, %v4825_v25   ;;  %v1946_v22 = vmul.f32 %v7561_v56, %v7083_v47 }
 0x1a8   : > { %2321 = vperm.xlu0 %5681, %v4824_v46   ;;  %3679 = vmatmul.mubr.bf16.gmra.mrb[72].mxu0 %v2774_v12  ;;  %v7702_v25 = vsel %vm647_vm0, %v8798_v37, %v1508_v59  ;;  %v4792_v46 = vld [vmem:[%s8552_s3 + $0x690] sm:$0xff]  ;;  %v2677_v59 = vpack.c.bf16 %v6872_v7, %v6870_v49  ;;  %v8800_v37 = vrot.slane %v7637_v21, 1 }
 0x1a9   : > { %8799 = vst [vmem:[#allocation16_spill] sm:$0xff] %v7702_v25  ;;  %5536 = vmatpush3.bf16.msra.mxu1 %v5759_v34  ;;  %v2687_v24 = vpack.c.bf16 %v1946_v22, %v1945_v11 }
 0x1aa   : > { %v1705_v12 = vpop.permute.xlu1 %1704  ;;  %5537 = vmatprep.subr.bf16.mxu1 %v5760_v58  ;;  %v7717_v34 = vsel %vm1188_vm1, %v1246_v26, %v8800_v37  ;;  %v5762_v37 = vld [vmem:[%s8553_s4 + $0x238] sm:$0xff]  }
 0x1ab   : > { %v1738_v56 = vmul.f32 %v1705_v12, %v7688_v31  ;;  %v1700_v39 = vpop.permute.xlu0 %1699  ;;  %2101 = vperm.xlu1 %5682, %v4793_v18   ;;  %8801 = vst [vmem:[#allocation34_spill] sm:$0xff] %v7717_v34  ;;  %v8802_v12 = vrot.slane %v7493_v44, 1 }
 0x1ac   : > { %v1737_v32 = vmul.f32 %v1700_v39, %v7702_v25  ;;  %2096 = vperm.xlu0 %5681, %v4792_v46   ;;  %v4842_v39 = vld [vmem:[%s8552_s3 + $0x820] sm:$0xff] }
 0x1ad   : > { %v7725_v18 = vsel %vm1188_vm1, %v8802_v12, %v1246_v26  ;;  %5538 = vmatpush3.bf16.msra.mxu1 %v5760_v58  ;;  %v4845_v58 = vld [vmem:[%s8552_s3 + $0x838] sm:$0xff] }
 0x1ae   : > { %8803 = vst [vmem:[#allocation35_spill] sm:$0xff] %v7725_v18  ;;  %v2784_v46 = vpack.c.bf16 %v1738_v56, %v1737_v32  ;;  %3752 = vmatmul.mubr.bf16.gmra.mrb[92].mxu1 %v2677_v59  ;;  %v1473_v25 = vpop.permute.xlu1 %1472  ;;  %5539 = vmatprep.subr.bf16.mxu1 %v5761_v14  ;;  %v1948_v56 = vmul.f32 %v7615_v17, %v7148_v13 }
 0x1af   : > { %3759 = vmatprep.mubr.bf16.mxu1 %v2687_v24  ;;  %v1506_v22 = vmul.f32 %v1473_v25, %v7717_v34  ;;  %v1468_v11 = vpop.permute.xlu0 %1467  ;;  %2481 = vperm.xlu1 %5682, %v4843_v30   ;;  %v1947_v32 = vmul.f32 %v7620_v57, %v7153_v5  ;;  %v4844_v30 = vld [vmem:[%s8552_s3 + $0x830] sm:$0xff]  ;;  %v2686_v17 = vpack.c.bf16 %v6929_v27, %v6936_v35  ;;  %v4827_v57 = vld [vmem:[%s8552_s3 + $0x7a8] sm:$0xff] }
 0x1b0   : > { %v1505_v26 = vmul.f32 %v1468_v11, %v7725_v18  ;;  %2476 = vperm.xlu0 %5681, %v4842_v39   ;;  %v4999_v12 = vpop.f32.mrb[16].mxu1  ;;  %3686 = vmatprep.mubr.bf16.mxu0 %v2784_v46 }
 0x1b1   : > { %v5000_v24 = vpop.f32.mrb[17].mxu1  ;;  %5540 = vmatpush3.bf16.msra.mxu1 %v5761_v14  ;;  %v2696_v14 = vpack.c.bf16 %v1948_v56, %v1947_v32  ;;  %v1950_v56 = vmul.f32 %v7678_v50, %v7198_v33  ;;  %v4794_v32 = vld [vmem:[%s8552_s3 + $0x6a0] sm:$0xff]  ;;  %v4847_v50 = vld [vmem:[%s8552_s3 + $0x848] sm:$0xff] }
 0x1b2   : > { %v2783_v25 = vpack.c.bf16 %v1506_v22, %v1505_v26  ;;  %v7745_v59 = vadd.f32 %v5000_v24, %v4999_v12  ;;  %v5002_v39 = vpop.f32.mrb[18].mxu1  ;;  %v1855_v46 = vpop.permute.xlu1 %1854  ;;  %5541 = vmatprep.subr.bf16.mxu1 %v5762_v37  ;;  %v4826_v22 = vld [vmem:[%s8552_s3 + $0x7a0] sm:$0xff]  ;;  %v4795_v24 = vld [vmem:[%s8552_s3 + $0x6a8] sm:$0xff] }
 0x1b3   : > { %v1850_v11 = vpop.permute.xlu0 %1849  ;;  %v5003_v31 = vpop.f32.mrb[19].mxu1  ;;  %2491 = vperm.xlu1 %5682, %v4845_v58  }
 0x1b4   : > { %v7747_v29 = vadd.f32 %v5003_v31, %v5002_v39  ;;  %2486 = vperm.xlu0 %5681, %v4844_v30   ;;  %3687 = vmatmul.mubr.bf16.gmra.mrb[76].mxu0 %v2783_v25  ;;  %v8804_v25 = vld [vmem:[#allocation42_spill] sm:$0xff] }
 0x1b5   : > { %5542 = vmatpush3.bf16.msra.mxu1 %v5762_v37  ;;  %v1949_v37 = vmul.f32 %v7683_v55, %v7201_v52 }
 0x1b6   : > { %3760 = vmatmul.mubr.bf16.gmra.mrb[96].mxu1 %v2686_v17  ;;  %v2237_v26 = vpop.permute.xlu1 %2236  ;;  %v8805_v17 = vld [vmem:[#allocation43_spill] sm:$0xff] }
 0x1b7   : > { %3767 = vmatprep.mubr.bf16.mxu1 %v2696_v14  ;;  %v2390_v31 = vmul.f32 %v2237_v26, %v8793_v48  ;;  %v2232_v12 = vpop.permute.xlu0 %2231  ;;  %2336 = vperm.xlu1 %5682, %v4827_v57   ;;  %v2695_v14 = vpack.c.bf16 %v6992_v40, %v7011_v10  ;;  %v2705_v55 = vpack.c.bf16 %v1950_v56, %v1949_v37  ;;  %v4848_v37 = vld [vmem:[%s8552_s3 + $0x850] sm:$0xff] }
 0x1b8   : > { %v2389_v58 = vmul.f32 %v2232_v12, %v8792_v45  ;;  %2331 = vperm.xlu0 %5681, %v4826_v22   ;;  %v4846_v22 = vld [vmem:[%s8552_s3 + $0x840] sm:$0xff]  ;;  %v1951_v56 = vmul.f32 %v1850_v11, %v7249_v41 }
 0x1ba   : > { %v2653_v48 = vpack.c.bf16 %v2390_v31, %v2389_v58  ;;  %v2012_v30 = vpop.permute.xlu1 %2011  ;;  %v4849_v58 = vld [vmem:[%s8552_s3 + $0x858] sm:$0xff] }
 0x1bb   : > { %v2165_v39 = vmul.f32 %v2012_v30, %v8804_v25  ;;  %v2007_v45 = vpop.permute.xlu0 %2006  ;;  %2111 = vperm.xlu1 %5682, %v4795_v24   ;;  %v1952_v24 = vmul.f32 %v1855_v46, %v7246_v36  ;;  %v4829_v46 = vld [vmem:[%s8552_s3 + $0x7b8] sm:$0xff] }
 0x1bc   : > { %v2164_v57 = vmul.f32 %v2007_v45, %v8805_v17  ;;  %2106 = vperm.xlu0 %5681, %v4794_v32   ;;  %3888 = vmatprep.mubr.bf16.mxu0 %v2653_v48  ;;  %v4828_v17 = vld [vmem:[%s8552_s3 + $0x7b0] sm:$0xff] }
 0x1bd   : > { %v2714_v11 = vpack.c.bf16 %v1952_v24, %v1951_v56  ;;  %v8810_v56 = vld [vmem:[#allocation23_spill] sm:$0xff] }
 0x1be   : > { %v2652_v26 = vpack.c.bf16 %v2165_v39, %v2164_v57  ;;  %3768 = vmatmul.mubr.bf16.gmra.mrb[100].mxu1 %v2695_v14  ;;  %v1865_v31 = vpop.permute.xlu1 %1864  ;;  %v8806_v39 = vld [vmem:[#allocation53_spill] sm:$0xff]  ;;  %v8807_v14 = vld [vmem:[#allocation47_spill] sm:$0xff] }
 0x1bf   : > { %3775 = vmatprep.mubr.bf16.mxu1 %v2705_v55  ;;  %v1860_v12 = vpop.permute.xlu0 %1859  ;;  %2501 = vperm.xlu1 %5682, %v4847_v50   ;;  %v2704_v45 = vpack.c.bf16 %v8806_v39, %v7073_v54  ;;  %v8808_v55 = vld [vmem:[#allocation48_spill] sm:$0xff] }
 0x1c0   : > { %2496 = vperm.xlu0 %5681, %v4846_v22   ;;  %3889 = vmatmul.mubr.bf16.vlgmr.msra.gmra.mrb[80].mxu0 %v2652_v26  ;;  %v4797_v26 = vld [vmem:[%s8552_s3 + $0x6b8] sm:$0xff] }
 0x1c2   : > { %v2247_v32 = vpop.permute.xlu1 %2246 }
 0x1c3   : > { %v2392_v48 = vmul.f32 %v2247_v32, %v6793_v38  ;;  %v2242_v30 = vpop.permute.xlu0 %2241  ;;  %2511 = vperm.xlu1 %5682, %v4849_v58   ;;  %v8809_v58 = vld [vmem:[#allocation6_spill] sm:$0xff]  ;;  %v4796_v32 = vld [vmem:[%s8552_s3 + $0x6b0] sm:$0xff] }
 0x1c4   : > { %v2391_v25 = vmul.f32 %v2242_v30, %v8796_v3  ;;  %2506 = vperm.xlu0 %5681, %v4848_v37   ;;  %v1954_v24 = vmul.f32 %v1865_v31, %v8809_v58  ;;  %v1953_v37 = vmul.f32 %v1860_v12, %v8810_v56  ;;  %v4850_v12 = vld [vmem:[%s8552_s3 + $0x860] sm:$0xff] }
 0x1c6   : > { %v2662_v57 = vpack.c.bf16 %v2392_v48, %v2391_v25  ;;  %3776 = vmatmul.mubr.bf16.gmra.mrb[104].mxu1 %v2704_v45  ;;  %v2022_v38 = vpop.permute.xlu1 %2021  ;;  %v8811_v45 = vld [vmem:[#allocation60_spill] sm:$0xff]  ;;  %v2723_v31 = vpack.c.bf16 %v1954_v24, %v1953_v37  ;;  %v4852_v37 = vld [vmem:[%s8552_s3 + $0x870] sm:$0xff] }
 0x1c7   : > { %3783 = vmatprep.mubr.bf16.mxu1 %v2714_v11  ;;  %v2167_v50 = vmul.f32 %v2022_v38, %v8807_v14  ;;  %v2017_v3 = vpop.permute.xlu0 %2016  ;;  %2346 = vperm.xlu1 %5682, %v4829_v46   ;;  %v8812_v46 = vld [vmem:[#allocation57_spill] sm:$0xff] }
 0x1c8   : > { %v2166_v22 = vmul.f32 %v2017_v3, %v8808_v55  ;;  %2341 = vperm.xlu0 %5681, %v4828_v17   ;;  %3896 = vmatprep.mubr.bf16.mxu0 %v2662_v57  ;;  %v2713_v11 = vpack.c.bf16 %v8812_v46, %v8811_v45  ;;  %v4851_v17 = vld [vmem:[%s8552_s3 + $0x868] sm:$0xff]  ;;  %v4853_v3 = vld [vmem:[%s8552_s3 + $0x878] sm:$0xff] }
 0x1c9   : > { %v8813_v55 = vld [vmem:[#allocation40_spill] sm:$0xff] }
 0x1ca   : > { %v2661_v48 = vpack.c.bf16 %v2167_v50, %v2166_v22  ;;  %v1875_v30 = vpop.permute.xlu1 %1874 }
 0x1cb   : > { %v1870_v25 = vpop.permute.xlu0 %1869  ;;  %2121 = vperm.xlu1 %5682, %v4797_v26   ;;  %v1956_v22 = vmul.f32 %v1875_v30, %v8813_v55  ;;  %v8814_v26 = vld [vmem:[#allocation38_spill] sm:$0xff] }
 0x1cc   : > { %2116 = vperm.xlu0 %5681, %v4796_v32   ;;  %3897 = vmatmul.mubr.bf16.gmra.mrb[84].mxu0 %v2661_v48  ;;  %v1955_v24 = vmul.f32 %v1870_v25, %v8814_v26  ;;  %v4831_v30 = vld [vmem:[%s8552_s3 + $0x7c8] sm:$0xff] }
 0x1ce   : > { %3784 = vmatmul.mubr.bf16.gmra.mrb[108].mxu1 %v2713_v11  ;;  %v2257_v57 = vpop.permute.xlu1 %2256  ;;  %v2732_v25 = vpack.c.bf16 %v1956_v22, %v1955_v24  ;;  %v4799_v22 = vld [vmem:[%s8552_s3 + $0x6c8] sm:$0xff]  ;;  %v4798_v24 = vld [vmem:[%s8552_s3 + $0x6c0] sm:$0xff] }
 0x1cf   : > { %3791 = vmatprep.mubr.bf16.mxu1 %v2723_v31  ;;  %v2394_v38 = vmul.f32 %v2257_v57, %v6872_v7  ;;  %v2252_v14 = vpop.permute.xlu0 %2251  ;;  %2521 = vperm.xlu1 %5682, %v4851_v17   ;;  %v8815_v7 = vld [vmem:[#allocation49_spill] sm:$0xff] }
 0x1d0   : > { %v2393_v50 = vmul.f32 %v2252_v14, %v6870_v49  ;;  %2516 = vperm.xlu0 %5681, %v4850_v12   ;;  %v8816_v49 = vld [vmem:[#allocation50_spill] sm:$0xff]  ;;  %v8817_v12 = vld [vmem:[#allocation64_spill] sm:$0xff]  ;;  %v8818_v57 = vld [vmem:[#allocation61_spill] sm:$0xff] }
 0x1d1   : > { %v2722_v14 = vpack.c.bf16 %v8818_v57, %v8817_v12 }
 0x1d2   : > { %v2671_v32 = vpack.c.bf16 %v2394_v38, %v2393_v50  ;;  %v2032_v48 = vpop.permute.xlu1 %2031  ;;  %v4830_v38 = vld [vmem:[%s8552_s3 + $0x7c0] sm:$0xff] }
 0x1d3   : > { %v2169_v11 = vmul.f32 %v2032_v48, %v8815_v7  ;;  %v2027_v17 = vpop.permute.xlu0 %2026  ;;  %2531 = vperm.xlu1 %5682, %v4853_v3  }
 0x1d4   : > { %v2168_v31 = vmul.f32 %v2027_v17, %v8816_v49  ;;  %2526 = vperm.xlu0 %5681, %v4852_v37   ;;  %3904 = vmatprep.mubr.bf16.mxu0 %v2671_v32 }
 0x1d6   : > { %v2670_v50 = vpack.c.bf16 %v2169_v11, %v2168_v31  ;;  %3792 = vmatmul.mubr.bf16.gmra.mrb[112].mxu1 %v2722_v14  ;;  %v1885_v48 = vpop.permute.xlu1 %1884  ;;  %v8819_v14 = vld [vmem:[#allocation31_spill] sm:$0xff] }
 0x1d7   : > { %3799 = vmatprep.mubr.bf16.mxu1 %v2732_v25  ;;  %v1958_v3 = vmul.f32 %v1885_v48, %v7473_v62  ;;  %v1880_v7 = vpop.permute.xlu0 %1879  ;;  %2356 = vperm.xlu1 %5682, %v4831_v30   ;;  %v8820_v30 = vld [vmem:[#allocation5_spill] sm:$0xff] }
 0x1d8   : > { %v1957_v37 = vmul.f32 %v1880_v7, %v7478_v16  ;;  %2351 = vperm.xlu0 %5681, %v4830_v38   ;;  %3905 = vmatmul.mubr.bf16.gmra.mrb[88].mxu0 %v2670_v50  ;;  %v2731_v25 = vpack.c.bf16 %v8820_v30, %v8819_v14  ;;  %v4855_v38 = vld [vmem:[%s8552_s3 + $0x888] sm:$0xff]  ;;  %v4854_v50 = vld [vmem:[%s8552_s3 + $0x880] sm:$0xff]  ;;  %v8829_v16 = vld [vmem:[#allocation59_spill] sm:$0xff] }
 0x1da   : > { %v2267_v32 = vpop.permute.xlu1 %2266  ;;  %v2741_v11 = vpack.c.bf16 %v1958_v3, %v1957_v37 }
 0x1db   : > { %v2396_v17 = vmul.f32 %v2267_v32, %v6929_v27  ;;  %v2262_v49 = vpop.permute.xlu0 %2261  ;;  %2131 = vperm.xlu1 %5682, %v4799_v22   ;;  %v8821_v27 = vld [vmem:[#allocation51_spill] sm:$0xff] }
 0x1dc   : > { %v2395_v31 = vmul.f32 %v2262_v49, %v6936_v35  ;;  %2126 = vperm.xlu0 %5681, %v4798_v24   ;;  %v8822_v35 = vld [vmem:[#allocation52_spill] sm:$0xff]  ;;  %v4856_v32 = vld [vmem:[%s8552_s3 + $0x890] sm:$0xff] }
 0x1dd   : > { %v4857_v24 = vld [vmem:[%s8552_s3 + $0x898] sm:$0xff] }
 0x1de   : > { %v2680_v48 = vpack.c.bf16 %v2396_v17, %v2395_v31  ;;  %3800 = vmatmul.mubr.bf16.gmra.mrb[116].mxu1 %v2731_v25  ;;  %v2042_v3 = vpop.permute.xlu1 %2041 }
 0x1df   : > { %3807 = vmatprep.mubr.bf16.mxu1 %v2741_v11  ;;  %v2171_v7 = vmul.f32 %v2042_v3, %v8821_v27  ;;  %v2037_v37 = vpop.permute.xlu0 %2036  ;;  %2541 = vperm.xlu1 %5682, %v4855_v38   ;;  %v8823_v38 = vld [vmem:[#allocation30_spill] sm:$0xff]  ;;  %v4832_v3 = vld [vmem:[%s8552_s3 + $0x7d0] sm:$0xff] }
 0x1e0   : > { %v2170_v22 = vmul.f32 %v2037_v37, %v8822_v35  ;;  %2536 = vperm.xlu0 %5681, %v4854_v50   ;;  %3912 = vmatprep.mubr.bf16.mxu0 %v2680_v48  ;;  %v2740_v50 = vpack.c.bf16 %v8823_v38, %v7287_v60  ;;  %v4833_v48 = vld [vmem:[%s8552_s3 + $0x7d8] sm:$0xff] }
 0x1e2   : > { %v2679_v17 = vpack.c.bf16 %v2171_v7, %v2170_v22  ;;  %v1895_v49 = vpop.permute.xlu1 %1894 }
 0x1e3   : > { %v1960_v11 = vmul.f32 %v1895_v49, %v7536_v53  ;;  %v1890_v31 = vpop.permute.xlu0 %1889  ;;  %2551 = vperm.xlu1 %5682, %v4857_v24   ;;  %v4801_v24 = vld [vmem:[%s8552_s3 + $0x6d8] sm:$0xff] }
 0x1e4   : > { %v1959_v25 = vmul.f32 %v1890_v31, %v7541_v9  ;;  %2546 = vperm.xlu0 %5681, %v4856_v32   ;;  %3913 = vmatmul.mubr.bf16.gmra.mrb[92].mxu0 %v2679_v17  ;;  %v4800_v32 = vld [vmem:[%s8552_s3 + $0x6d0] sm:$0xff] }
 0x1e6   : > { %v2750_v27 = vpack.c.bf16 %v1960_v11, %v1959_v25  ;;  %3808 = vmatmul.mubr.bf16.gmra.mrb[120].mxu1 %v2740_v50  ;;  %v2277_v7 = vpop.permute.xlu1 %2276  ;;  %v8824_v11 = vld [vmem:[#allocation54_spill] sm:$0xff] }
 0x1e7   : > { %v2398_v37 = vmul.f32 %v2277_v7, %v6992_v40  ;;  %v2272_v35 = vpop.permute.xlu0 %2271  ;;  %2366 = vperm.xlu1 %5682, %v4833_v48   ;;  %v8825_v40 = vld [vmem:[#allocation55_spill] sm:$0xff] }
 0x1e8   : > { %v2397_v22 = vmul.f32 %v2272_v35, %v7011_v10  ;;  %2361 = vperm.xlu0 %5681, %v4832_v3   ;;  %3815 = vmatprep.mubr.bf16.mxu1 %v2750_v27  ;;  %v8826_v10 = vld [vmem:[#allocation41_spill] sm:$0xff]  ;;  %v4859_v3 = vld [vmem:[%s8552_s3 + $0x8a8] sm:$0xff] }
 0x1e9   : > { %v2749_v48 = vpack.c.bf16 %v8826_v10, %v7346_v43  ;;  %v4858_v27 = vld [vmem:[%s8552_s3 + $0x8a0] sm:$0xff] }
 0x1ea   : > { %v2689_v17 = vpack.c.bf16 %v2398_v37, %v2397_v22  ;;  %v2052_v49 = vpop.permute.xlu1 %2051 }
 0x1eb   : > { %v2173_v31 = vmul.f32 %v2052_v49, %v8824_v11  ;;  %v2047_v25 = vpop.permute.xlu0 %2046  ;;  %2141 = vperm.xlu1 %5682, %v4801_v24   ;;  %v4860_v49 = vld [vmem:[%s8552_s3 + $0x8b0] sm:$0xff] }
 0x1ec   : > { %v2172_v50 = vmul.f32 %v2047_v25, %v8825_v40  ;;  %2136 = vperm.xlu0 %5681, %v4800_v32   ;;  %3920 = vmatprep.mubr.bf16.mxu0 %v2689_v17  ;;  %v4861_v32 = vld [vmem:[%s8552_s3 + $0x8b8] sm:$0xff]  ;;  %v7900_v40 = vld [vmem:[%s8554_s5] ss:$0 sm:$0xff] }
 0x1ee   : > { %v2688_v7 = vpack.c.bf16 %v2173_v31, %v2172_v50  ;;  %3816 = vmatmul.mubr.bf16.gmra.mrb[124].mxu1 %v2749_v48  ;;  %v1905_v37 = vpop.permute.xlu1 %1904 }
 0x1ef   : > { %v1962_v35 = vmul.f32 %v1905_v37, %v7585_v61  ;;  %v1900_v22 = vpop.permute.xlu0 %1899  ;;  %2561 = vperm.xlu1 %5682, %v4859_v3  }
 0x1f0   : > { %v1961_v24 = vmul.f32 %v1900_v22, %v7588_v28  ;;  %2556 = vperm.xlu0 %5681, %v4858_v27   ;;  %3921 = vmatmul.mubr.bf16.gmra.mrb[96].mxu0 %v2688_v7  ;;  %v4835_v28 = vld [vmem:[%s8552_s3 + $0x7e8] sm:$0xff] }
 0x1f1   : > { %v5005_v17 = vpop.f32.mrb[20].mxu1 }
 0x1f2   : > { %v2759_v11 = vpack.c.bf16 %v1962_v35, %v1961_v24  ;;  %v5006_v31 = vpop.f32.mrb[21].mxu1  ;;  %v2287_v25 = vpop.permute.xlu1 %2286  ;;  %v8827_v35 = vld [vmem:[#allocation25_spill] sm:$0xff] }
 0x1f3   : > { %v5007_v50 = vadd.f32 %v5006_v31, %v5005_v17  ;;  %v5008_v48 = vpop.f32.mrb[22].mxu1  ;;  %v2400_v3 = vmul.f32 %v2287_v25, %v8806_v39  ;;  %v2282_v27 = vpop.permute.xlu0 %2281  ;;  %2571 = vperm.xlu1 %5682, %v4861_v32   ;;  %v2758_v24 = vpack.c.bf16 %v7381_v42, %v8827_v35  ;;  %v4834_v39 = vld [vmem:[%s8552_s3 + $0x7e0] sm:$0xff]  ;;  %v3408_v32 = vadd.f32 %v7745_v59, %v7900_v40  ;;  %v4803_v59 = vld [vmem:[%s8552_s3 + $0x6e8] sm:$0xff] }
 0x1f4   : > { %v5009_v7 = vpop.f32.mrb[23].mxu1  ;;  %v2399_v37 = vmul.f32 %v2282_v27, %v7073_v54  ;;  %2566 = vperm.xlu0 %5681, %v4860_v49   ;;  %v5111_v22 = vpop.f32.mrb[16].mxu0  ;;  %3823 = vmatprep.mubr.bf16.mxu1 %v2759_v11  ;;  %v3411_v25 = vadd.f32 %v7747_v29, %v7900_v40  ;;  %v8828_v27 = vld [vmem:[#allocation58_spill] sm:$0xff]  ;;  %v4802_v29 = vld [vmem:[%s8552_s3 + $0x6e0] sm:$0xff] }
 0x1f5   : > { %v5010_v61 = vadd.f32 %v5009_v7, %v5008_v48  ;;  %v5112_v17 = vpop.f32.mrb[17].mxu0 }
 0x1f6   : > { %v2698_v54 = vpack.c.bf16 %v2400_v3, %v2399_v37  ;;  %v5113_v49 = vadd.f32 %v5112_v17, %v5111_v22  ;;  %3824 = vmatmul.mubr.bf16.gmra.mrb[128].mxu1 %v2758_v24  ;;  %v5114_v11 = vpop.f32.mrb[18].mxu0  ;;  %v2062_v31 = vpop.permute.xlu1 %2061 }
 0x1f7   : > { %v2175_v9 = vmul.f32 %v2062_v31, %v8828_v27  ;;  %v2057_v53 = vpop.permute.xlu0 %2056  ;;  %v5115_v48 = vpop.f32.mrb[19].mxu0  ;;  %2376 = vperm.xlu1 %5682, %v4835_v28   ;;  %v3416_v31 = vadd.f32 %v5007_v50, %v7900_v40  ;;  %v4865_v50 = vld [vmem:[%s8552_s3 + $0x8d8] sm:$0xff] }
 0x1f8   : > { %v7917_v7 = vadd.f32 %v5113_v49, %v3408_v32  ;;  %v2174_v62 = vmul.f32 %v2057_v53, %v8829_v16  ;;  %v5116_v26 = vadd.f32 %v5115_v48, %v5114_v11  ;;  %2371 = vperm.xlu0 %5681, %v4834_v39   ;;  %3928 = vmatprep.mubr.bf16.mxu0 %v2698_v54  ;;  %v4862_v11 = vld [vmem:[%s8552_s3 + $0x8c0] sm:$0xff] }
 0x1f9   : > { %v5011_v3 = vpop.f32.mrb[24].mxu1 }
 0x1fa   : > { %v2697_v37 = vpack.c.bf16 %v2175_v9, %v2174_v62  ;;  %v5012_v22 = vpop.f32.mrb[25].mxu1  ;;  %v7926_v24 = vadd.f32 %v5116_v26, %v3411_v25  ;;  %v1915_v28 = vpop.permute.xlu1 %1914  ;;  %v4863_v62 = vld [vmem:[%s8552_s3 + $0x8c8] sm:$0xff] }
 0x1fb   : > { %v5013_v17 = vadd.f32 %v5012_v22, %v5011_v3  ;;  %v5014_v32 = vpop.f32.mrb[26].mxu1  ;;  %v1964_v16 = vmul.f32 %v1915_v28, %v7646_v63  ;;  %v1910_v53 = vpop.permute.xlu0 %1909  ;;  %2151 = vperm.xlu1 %5682, %v4803_v59   ;;  %v3419_v3 = vadd.f32 %v5010_v61, %v7900_v40  ;;  %v2767_v28 = vpack.c.bf16 %v7429_v51, %v7442_v15 }
 0x1fc   : > { %v5015_v39 = vpop.f32.mrb[27].mxu1  ;;  %v1963_v54 = vmul.f32 %v1910_v53, %v7658_v19  ;;  %2146 = vperm.xlu0 %5681, %v4802_v29   ;;  %v5117_v49 = vpop.f32.mrb[20].mxu0  ;;  %3929 = vmatmul.mubr.bf16.gmra.mrb[100].mxu0 %v2697_v37 }
 0x1fd   : > { %v5016_v9 = vadd.f32 %v5015_v39, %v5014_v32  ;;  %v5118_v26 = vpop.f32.mrb[21].mxu0 }
 0x1fe   : > { %v2768_v25 = vpack.c.bf16 %v1964_v16, %v1963_v54  ;;  %v5119_v27 = vadd.f32 %v5118_v26, %v5117_v49  ;;  %v5120_v48 = vpop.f32.mrb[22].mxu0  ;;  %v2297_v59 = vpop.permute.xlu1 %2296 }
 0x1ff   : > { %v2402_v29 = vmul.f32 %v2297_v59, %v8812_v46  ;;  %v2292_v37 = vpop.permute.xlu0 %2291  ;;  %v5121_v22 = vpop.f32.mrb[23].mxu0  ;;  %2581 = vperm.xlu1 %5682, %v4863_v62   ;;  %v4864_v46 = vld [vmem:[%s8552_s3 + $0x8d0] sm:$0xff] }
 0x200   : > { %v7941_v32 = vadd.f32 %v5119_v27, %v3416_v31  ;;  %v2401_v53 = vmul.f32 %v2292_v37, %v8811_v45  ;;  %v5122_v39 = vadd.f32 %v5121_v22, %v5120_v48  ;;  %2576 = vperm.xlu0 %5681, %v4862_v11   ;;  %3831 = vmatprep.mubr.bf16.mxu1 %v2768_v25  ;;  %v8830_v31 = vld [vmem:[#allocation62_spill] sm:$0xff]  ;;  %v8831_v48 = vld [vmem:[#allocation63_spill] sm:$0xff] }
 0x201   : > { %v5017_v61 = vpop.f32.mrb[28].mxu1  ;;  %3832 = vmatmul.mubr.bf16.gmra.mrb[132].mxu1 %v2767_v28  ;;  %v4836_v28 = vld [vmem:[%s8552_s3 + $0x7f0] sm:$0xff] }
 0x202   : > { %v2707_v16 = vpack.c.bf16 %v2402_v29, %v2401_v53  ;;  %v5018_v54 = vpop.f32.mrb[29].mxu1  ;;  %v7950_v49 = vadd.f32 %v5122_v39, %v3419_v3  ;;  %v2072_v62 = vpop.permute.xlu1 %2071  ;;  %v4837_v29 = vld [vmem:[%s8552_s3 + $0x7f8] sm:$0xff]  ;;  %v3424_v53 = vadd.f32 %v5013_v17, %v7900_v40 }
 0x203   : > { %v5019_v26 = vadd.f32 %v5018_v54, %v5017_v61  ;;  %v5020_v45 = vpop.f32.mrb[30].mxu1  ;;  %v2177_v11 = vmul.f32 %v2072_v62, %v8830_v31  ;;  %v2067_v25 = vpop.permute.xlu0 %2066  ;;  %2591 = vperm.xlu1 %5682, %v4865_v50   ;;  %v4805_v17 = vld [vmem:[%s8552_s3 + $0x6f8] sm:$0xff] }
 0x204   : > { %v5021_v27 = vpop.f32.mrb[31].mxu1  ;;  %v2176_v59 = vmul.f32 %v2067_v25, %v8831_v48  ;;  %2586 = vperm.xlu0 %5681, %v4864_v46   ;;  %v5123_v37 = vpop.f32.mrb[24].mxu0  ;;  %3936 = vmatprep.mubr.bf16.mxu0 %v2707_v16  ;;  %v3427_v46 = vadd.f32 %v5016_v9, %v7900_v40  ;;  %v4804_v9 = vld [vmem:[%s8552_s3 + $0x6f0] sm:$0xff] }
 0x205   : > { %v5022_v22 = vadd.f32 %v5021_v27, %v5020_v45  ;;  %v5124_v3 = vpop.f32.mrb[25].mxu0 }
 0x206   : > { %v2706_v39 = vpack.c.bf16 %v2177_v11, %v2176_v59  ;;  %v5125_v50 = vadd.f32 %v5124_v3, %v5123_v37  ;;  %v5126_v61 = vpop.f32.mrb[26].mxu0  ;;  %v1925_v54 = vpop.permute.xlu1 %1924 }
 0x207   : > { %v1966_v16 = vmul.f32 %v1925_v54, %v7717_v34  ;;  %v1920_v62 = vpop.permute.xlu0 %1919  ;;  %v5127_v31 = vpop.f32.mrb[27].mxu0  ;;  %2386 = vperm.xlu1 %5682, %v4837_v29  }
 0x208   : > { %v7963_v25 = vadd.f32 %v5125_v50, %v3424_v53  ;;  %v1965_v45 = vmul.f32 %v1920_v62, %v7725_v18  ;;  %v5128_v27 = vadd.f32 %v5127_v31, %v5126_v61  ;;  %2381 = vperm.xlu0 %5681, %v4836_v28   ;;  %3937 = vmatmul.mubr.bf16.gmra.mrb[104].mxu0 %v2706_v39 }
 0x209   : > { %v5023_v11 = vpop.f32.mrb[32].mxu1  ;;  %v2776_v39 = vpack.c.bf16 %v7468_v2, %v7493_v44 }
 0x20a   : > { %v2777_v48 = vpack.c.bf16 %v1966_v16, %v1965_v45  ;;  %v5024_v59 = vpop.f32.mrb[33].mxu1  ;;  %v7972_v37 = vadd.f32 %v5128_v27, %v3427_v46  ;;  %v2307_v29 = vpop.permute.xlu1 %2306  ;;  %v4867_v46 = vld [vmem:[%s8552_s3 + $0x8e8] sm:$0xff]  ;;  %v3432_v45 = vadd.f32 %v5019_v26, %v7900_v40  ;;  %v4869_v26 = vld [vmem:[%s8552_s3 + $0x8f8] sm:$0xff] }
 0x20b   : > { %v5025_v3 = vadd.f32 %v5024_v59, %v5023_v11  ;;  %v5026_v53 = vpop.f32.mrb[34].mxu1  ;;  %v2404_v50 = vmul.f32 %v2307_v29, %v8818_v57  ;;  %v2302_v28 = vpop.permute.xlu0 %2301  ;;  %2161 = vperm.xlu1 %5682, %v4805_v17   ;;  %v4866_v57 = vld [vmem:[%s8552_s3 + $0x8e0] sm:$0xff] }
 0x20c   : > { %v5027_v61 = vpop.f32.mrb[35].mxu1  ;;  %v2403_v54 = vmul.f32 %v2302_v28, %v8817_v12  ;;  %2156 = vperm.xlu0 %5681, %v4804_v9   ;;  %v5129_v62 = vpop.f32.mrb[28].mxu0  ;;  %3839 = vmatprep.mubr.bf16.mxu1 %v2777_v48  ;;  %v1739_v9 = vrot.slane %v7640_v20, 1  ;;  %v3435_v48 = vadd.f32 %v5022_v22, %v7900_v40  ;;  %v8832_v59 = vld [vmem:[#allocation21_spill] sm:$0xff]  ;;  %v4868_v22 = vld [vmem:[%s8552_s3 + $0x8f0] sm:$0xff] }
 0x20d   : > { %v5028_v16 = vadd.f32 %v5027_v61, %v5026_v53  ;;  %v5130_v31 = vpop.f32.mrb[29].mxu0  ;;  %3840 = vmatmul.mubr.bf16.gmra.mrb[136].mxu1 %v2776_v39  ;;  %v8834_v61 = vld [vmem:[#allocation20_spill] sm:$0xff] }
 0x20e   : > { %v2716_v27 = vpack.c.bf16 %v2404_v50, %v2403_v54  ;;  %v5131_v17 = vadd.f32 %v5130_v31, %v5129_v62  ;;  %v5132_v11 = vpop.f32.mrb[30].mxu0  ;;  %v2082_v12 = vpop.permute.xlu1 %2081 }
 0x20f   : > { %v2179_v29 = vmul.f32 %v2082_v12, %v8832_v59  ;;  %v2077_v28 = vpop.permute.xlu0 %2076  ;;  %v5133_v53 = vpop.f32.mrb[31].mxu0  ;;  %2601 = vperm.xlu1 %5682, %v4867_v46   ;;  %v8837_v12 = vrot.slane %v7637_v21, 1 }
 0x210   : > { %v7988_v39 = vadd.f32 %v5131_v17, %v3432_v45  ;;  %v2178_v18 = vmul.f32 %v2077_v28, %v8834_v61  ;;  %v5134_v34 = vadd.f32 %v5133_v53, %v5132_v11  ;;  %2596 = vperm.xlu0 %5681, %v4866_v57   ;;  %3944 = vmatprep.mubr.bf16.mxu0 %v2716_v27  ;;  %v8000_v45 = vsel %vm1188_vm1, %v1739_v9, 0.0 }
 0x211   : > { %v5029_v50 = vpop.f32.mrb[36].mxu1  ;;  %8836 = vst [vmem:[#allocation36_spill] sm:$0xff] %v8000_v45  ;;  %v8006_v59 = vsel %vm1188_vm1, %v8837_v12, %v1739_v9  ;;  %v3440_v53 = vadd.f32 %v5025_v3, %v7900_v40 }
 0x212   : > { %8833 = vst [vmem:[#allocation18_spill] sm:$0xff] %v7988_v39  ;;  %v2715_v54 = vpack.c.bf16 %v2179_v29, %v2178_v18  ;;  %v5030_v62 = vpop.f32.mrb[37].mxu1  ;;  %v7997_v31 = vadd.f32 %v5134_v34, %v3435_v48  ;;  %v1935_v46 = vpop.permute.xlu1 %1934  ;;  %8838 = vst [vmem:[#allocation37_spill] sm:$0xff] %v8006_v59 }
 0x213   : > { %v5031_v17 = vadd.f32 %v5030_v62, %v5029_v50  ;;  %v5032_v57 = vpop.f32.mrb[38].mxu1  ;;  %v1968_v27 = vmul.f32 %v1935_v46, %v8000_v45  ;;  %v1930_v11 = vpop.permute.xlu0 %1929  ;;  %2611 = vperm.xlu1 %5682, %v4869_v26   ;;  %v2785_v26 = vpack.c.bf16 %v7640_v20, %v7637_v21 }
 0x214   : > { %8835 = vst [vmem:[#allocation19_spill] sm:$0xff] %v7997_v31  ;;  %v5033_v28 = vpop.f32.mrb[39].mxu1  ;;  %v1967_v18 = vmul.f32 %v1930_v11, %v8006_v59  ;;  %2606 = vperm.xlu0 %5681, %v4868_v22   ;;  %v5135_v34 = vpop.f32.mrb[32].mxu0  ;;  %3945 = vmatmul.mubr.bf16.gmra.mrb[108].mxu0 %v2715_v54  ;;  %v3443_v11 = vadd.f32 %v5028_v16, %v7900_v40  ;;  %v8840_v16 = vld [vmem:[#allocation22_spill] sm:$0xff] }
 0x215   : > { %v5034_v48 = vadd.f32 %v5033_v28, %v5032_v57  ;;  %v5136_v29 = vpop.f32.mrb[33].mxu0 }
 0x216   : > { %v2786_v61 = vpack.c.bf16 %v1968_v27, %v1967_v18  ;;  %v5137_v50 = vadd.f32 %v5136_v29, %v5135_v34  ;;  %v5138_v62 = vpop.f32.mrb[34].mxu0  ;;  %v2317_v46 = vpop.permute.xlu1 %2316  ;;  %v8839_v29 = vld [vmem:[#allocation7_spill] sm:$0xff] }
 0x217   : > { %v2406_v45 = vmul.f32 %v2317_v46, %v8820_v30  ;;  %v2312_v31 = vpop.permute.xlu0 %2311  ;;  %v5139_v9 = vpop.f32.mrb[35].mxu0 }
 0x218   : > { %v8014_v22 = vadd.f32 %v5137_v50, %v3440_v53  ;;  %v2405_v54 = vmul.f32 %v2312_v31, %v8819_v14  ;;  %v5140_v57 = vadd.f32 %v5139_v9, %v5138_v62  ;;  %3847 = vmatprep.mubr.bf16.mxu1 %v2786_v61  ;;  %v3448_v61 = vadd.f32 %v5031_v17, %v7900_v40 }
 0x219   : > { %v5035_v3 = vpop.f32.mrb[40].mxu1  ;;  %3848 = vmatmul.mubr.bf16.gmra.mrb[140].mxu1 %v2785_v26 }
 0x21a   : > { %v2725_v27 = vpack.c.bf16 %v2406_v45, %v2405_v54  ;;  %v5036_v12 = vpop.f32.mrb[41].mxu1  ;;  %v8017_v28 = vadd.f32 %v5140_v57, %v3443_v11  ;;  %v2092_v30 = vpop.permute.xlu1 %2091 }
 0x21b   : > { %v5037_v18 = vadd.f32 %v5036_v12, %v5035_v3  ;;  %v5038_v34 = vpop.f32.mrb[42].mxu1  ;;  %v2181_v46 = vmul.f32 %v2092_v30, %v8839_v29  ;;  %v2087_v59 = vpop.permute.xlu0 %2086  ;;  %v3451_v3 = vadd.f32 %v5034_v48, %v7900_v40 }
 0x21c   : > { %v5039_v39 = vpop.f32.mrb[43].mxu1  ;;  %v2180_v53 = vmul.f32 %v2087_v59, %v8840_v16  ;;  %v5141_v50 = vpop.f32.mrb[36].mxu0  ;;  %3952 = vmatprep.mubr.bf16.mxu0 %v2725_v27 }
 0x21d   : > { %v5040_v14 = vadd.f32 %v5039_v39, %v5038_v34  ;;  %v5142_v31 = vpop.f32.mrb[37].mxu0 }
 0x21e   : > { %v2724_v62 = vpack.c.bf16 %v2181_v46, %v2180_v53  ;;  %v5143_v45 = vadd.f32 %v5142_v31, %v5141_v50  ;;  %v5144_v9 = vpop.f32.mrb[38].mxu0  ;;  %v2462_v26 = vpop.permute.xlu1 %2461 }
 0x21f   : > { %v2615_v11 = vmul.f32 %v2462_v26, %v6916_v8  ;;  %v2457_v54 = vpop.permute.xlu0 %2456  ;;  %v5145_v57 = vpop.f32.mrb[39].mxu0 }
 0x220   : > { %v8024_v12 = vadd.f32 %v5143_v45, %v3448_v61  ;;  %v2614_v59 = vmul.f32 %v2457_v54, %v6901_v1  ;;  %v5146_v30 = vadd.f32 %v5145_v57, %v5144_v9  ;;  %3953 = vmatmul.mubr.bf16.gmra.mrb[112].mxu0 %v2724_v62  ;;  %v3456_v62 = vadd.f32 %v5037_v18, %v7900_v40 }
 0x221   : > { %v5041_v39 = vpop.f32.mrb[44].mxu1 }
 0x222   : > { %v2654_v27 = vpack.c.bf16 %v2615_v11, %v2614_v59  ;;  %v5042_v34 = vpop.f32.mrb[45].mxu1  ;;  %v8027_v17 = vadd.f32 %v5146_v30, %v3451_v3  ;;  %v2472_v29 = vpop.permute.xlu1 %2471 }
 0x223   : > { %v5043_v46 = vadd.f32 %v5042_v34, %v5041_v39  ;;  %v5044_v16 = vpop.f32.mrb[46].mxu1  ;;  %v2617_v8 = vmul.f32 %v2472_v29, %v6954_v4  ;;  %v2467_v53 = vpop.permute.xlu0 %2466  ;;  %v3459_v4 = vadd.f32 %v5040_v14, %v7900_v40 }
 0x224   : > { %v5045_v50 = vpop.f32.mrb[47].mxu1  ;;  %v2616_v48 = vmul.f32 %v2467_v53, %v6957_v0  ;;  %v5147_v31 = vpop.f32.mrb[40].mxu0  ;;  %5543 = vmatprep.mubr.bf16.mxu1 %v2654_v27  ;;  %v8841_v53 = vld [vmem:[#allocation39_spill] sm:$0xff] }
 0x225   : > { %v5046_v61 = vadd.f32 %v5045_v50, %v5044_v16  ;;  %v5148_v1 = vpop.f32.mrb[41].mxu0 }
 0x226   : > { %v2663_v45 = vpack.c.bf16 %v2617_v8, %v2616_v48  ;;  %v5149_v9 = vadd.f32 %v5148_v1, %v5147_v31  ;;  %v5150_v26 = vpop.f32.mrb[42].mxu0  ;;  %v2327_v11 = vpop.permute.xlu1 %2326  ;;  %v8842_v31 = vld [vmem:[#allocation9_spill] sm:$0xff] }
 0x227   : > { %v2408_v54 = vmul.f32 %v2327_v11, %v8823_v38  ;;  %v2322_v57 = vpop.permute.xlu0 %2321  ;;  %v5151_v3 = vpop.f32.mrb[43].mxu0 }
 0x228   : > { %v8034_v59 = vadd.f32 %v5149_v9, %v3456_v62  ;;  %v2407_v0 = vmul.f32 %v2322_v57, %v7287_v60  ;;  %v5152_v30 = vadd.f32 %v5151_v3, %v5150_v26  ;;  %5544 = vmatmul.mubr.bf16.vlgmr.msra.gmra.mrb[144].mxu1 %v2663_v45  ;;  %v3464_v45 = vadd.f32 %v5043_v46, %v7900_v40 }
 0x229   : > { %v5047_v39 = vpop.f32.mrb[48].mxu1 }
 0x22a   : > { %v2734_v27 = vpack.c.bf16 %v2408_v54, %v2407_v0  ;;  %v5048_v34 = vpop.f32.mrb[49].mxu1  ;;  %v8037_v18 = vadd.f32 %v5152_v30, %v3459_v4  ;;  %v2102_v29 = vpop.permute.xlu1 %2101  ;;  %v3467_v0 = vadd.f32 %v5046_v61, %v7900_v40 }
 0x22b   : > { %v5049_v16 = vadd.f32 %v5048_v34, %v5047_v39  ;;  %v5050_v8 = vpop.f32.mrb[50].mxu1  ;;  %v2183_v38 = vmul.f32 %v2102_v29, %v8841_v53  ;;  %v2097_v50 = vpop.permute.xlu0 %2096 }
 0x22c   : > { %v5051_v48 = vpop.f32.mrb[51].mxu1  ;;  %v2182_v14 = vmul.f32 %v2097_v50, %v8842_v31  ;;  %v5153_v1 = vpop.f32.mrb[44].mxu0  ;;  %3960 = vmatprep.mubr.bf16.mxu0 %v2734_v27 }
 0x22d   : > { %v5052_v62 = vadd.f32 %v5051_v48, %v5050_v8  ;;  %v5154_v60 = vpop.f32.mrb[45].mxu0 }
 0x22e   : > { %v2733_v9 = vpack.c.bf16 %v2183_v38, %v2182_v14  ;;  %v5155_v26 = vadd.f32 %v5154_v60, %v5153_v1  ;;  %v5156_v11 = vpop.f32.mrb[46].mxu0  ;;  %v2482_v54 = vpop.permute.xlu1 %2481  ;;  %v8843_v14 = vld [vmem:[#allocation56_spill] sm:$0xff] }
 0x22f   : > { %v2619_v57 = vmul.f32 %v2482_v54, %v7020_v6  ;;  %v2477_v3 = vpop.permute.xlu0 %2476  ;;  %v5157_v4 = vpop.f32.mrb[47].mxu0 }
 0x230   : > { %v8044_v30 = vadd.f32 %v5155_v26, %v3464_v45  ;;  %v2618_v39 = vmul.f32 %v2477_v3, %v7025_v23  ;;  %v5158_v34 = vadd.f32 %v5157_v4, %v5156_v11  ;;  %3961 = vmatmul.mubr.bf16.gmra.mrb[116].mxu0 %v2733_v9  ;;  %v3472_v45 = vadd.f32 %v5049_v16, %v7900_v40 }
 0x231   : > { %v5053_v27 = vpop.f32.mrb[52].mxu1 }
 0x232   : > { %v2672_v29 = vpack.c.bf16 %v2619_v57, %v2618_v39  ;;  %v5054_v8 = vpop.f32.mrb[53].mxu1  ;;  %v8047_v46 = vadd.f32 %v5158_v34, %v3467_v0  ;;  %v2492_v53 = vpop.permute.xlu1 %2491 }
 0x233   : > { %v5055_v38 = vadd.f32 %v5054_v8, %v5053_v27  ;;  %v5056_v50 = vpop.f32.mrb[54].mxu1  ;;  %v2621_v6 = vmul.f32 %v2492_v53, %v7083_v47  ;;  %v2487_v48 = vpop.permute.xlu0 %2486  ;;  %v3475_v47 = vadd.f32 %v5052_v62, %v7900_v40 }
 0x234   : > { %v5057_v31 = vpop.f32.mrb[55].mxu1  ;;  %v2620_v61 = vmul.f32 %v2487_v48, %v8843_v14  ;;  %v5159_v1 = vpop.f32.mrb[48].mxu0  ;;  %5547 = vmatprep.mubr.bf16.mxu1 %v2672_v29  ;;  %v8844_v48 = vld [vmem:[#allocation24_spill] sm:$0xff] }
 0x235   : > { %v5058_v60 = vadd.f32 %v5057_v31, %v5056_v50  ;;  %v5160_v23 = vpop.f32.mrb[49].mxu0 }
 0x236   : > { %v2681_v9 = vpack.c.bf16 %v2621_v6, %v2620_v61  ;;  %v5161_v26 = vadd.f32 %v5160_v23, %v5159_v1  ;;  %v5162_v11 = vpop.f32.mrb[50].mxu0  ;;  %v2337_v54 = vpop.permute.xlu1 %2336  ;;  %v8845_v61 = vld [vmem:[#allocation8_spill] sm:$0xff] }
 0x237   : > { %v2410_v57 = vmul.f32 %v2337_v54, %v8826_v10  ;;  %v2332_v3 = vpop.permute.xlu0 %2331  ;;  %v5163_v4 = vpop.f32.mrb[51].mxu0  ;;  %v5763_v54 = vld [vmem:[%s8555_s6] sm:$0xff]  }
 0x238   : > { %v8054_v0 = vadd.f32 %v5161_v26, %v3472_v45  ;;  %v2409_v39 = vmul.f32 %v2332_v3, %v7346_v43  ;;  %v5164_v34 = vadd.f32 %v5163_v4, %v5162_v11  ;;  %5548 = vmatmul.mubr.bf16.gmra.mrb[148].mxu1 %v2681_v9  ;;  %5575 = vmatprep.subr.bf16.mxu0 %v5763_v54 }
 0x239   : > { %v5059_v27 = vpop.f32.mrb[56].mxu1  ;;  %5576 = vmatpush3.bf16.msra.mxu0 %v5763_v54 }
 0x23a   : > { %v2743_v29 = vpack.c.bf16 %v2410_v57, %v2409_v39  ;;  %v5060_v8 = vpop.f32.mrb[57].mxu1  ;;  %v8057_v16 = vadd.f32 %v5164_v34, %v3475_v47  ;;  %v2112_v53 = vpop.permute.xlu1 %2111  ;;  %v3480_v57 = vadd.f32 %v5055_v38, %v7900_v40 }
 0x23b   : > { %v5061_v50 = vadd.f32 %v5060_v8, %v5059_v27  ;;  %v5062_v6 = vpop.f32.mrb[58].mxu1  ;;  %v2185_v10 = vmul.f32 %v2112_v53, %v8844_v48  ;;  %v2107_v31 = vpop.permute.xlu0 %2106  ;;  %v3483_v27 = vadd.f32 %v5058_v60, %v7900_v40 }
 0x23c   : > { %v5063_v14 = vpop.f32.mrb[59].mxu1  ;;  %v2184_v62 = vmul.f32 %v2107_v31, %v8845_v61  ;;  %3968 = vmatprep.mubr.bf16.mxu0 %v2743_v29 }
 0x23d   : > { %v5064_v1 = vadd.f32 %v5063_v14, %v5062_v6 }
 0x23e   : > { %v2742_v23 = vpack.c.bf16 %v2185_v10, %v2184_v62  ;;  %v2502_v43 = vpop.permute.xlu1 %2501  ;;  %v5165_v45 = vpop.f32.mrb[52].mxu0 }
 0x23f   : > { %v2623_v9 = vmul.f32 %v2502_v43, %v7148_v13  ;;  %v2497_v26 = vpop.permute.xlu0 %2496  ;;  %v5166_v11 = vpop.f32.mrb[53].mxu0 }
 0x240   : > { %v2622_v3 = vmul.f32 %v2497_v26, %v7153_v5  ;;  %v5167_v4 = vadd.f32 %v5166_v11, %v5165_v45  ;;  %3969 = vmatmul.mubr.bf16.gmra.mrb[120].mxu0 %v2742_v23  ;;  %v5168_v47 = vpop.f32.mrb[54].mxu0 }
 0x241   : > { %v5065_v39 = vpop.f32.mrb[60].mxu1  ;;  %v5169_v34 = vpop.f32.mrb[55].mxu0 }
 0x242   : > { %v2690_v29 = vpack.c.bf16 %v2623_v9, %v2622_v3  ;;  %v5066_v13 = vpop.f32.mrb[61].mxu1  ;;  %v8068_v8 = vadd.f32 %v5167_v4, %v3480_v57  ;;  %v5170_v53 = vadd.f32 %v5169_v34, %v5168_v47  ;;  %v2512_v6 = vpop.permute.xlu1 %2511  ;;  %v8846_v4 = vld [vmem:[#allocation10_spill] sm:$0xff] }
 0x243   : > { %v8070_v48 = vadd.f32 %v5066_v13, %v5065_v39  ;;  %v5068_v38 = vpop.f32.mrb[62].mxu1  ;;  %v2625_v5 = vmul.f32 %v2512_v6, %v7198_v33  ;;  %v2507_v10 = vpop.permute.xlu0 %2506  ;;  %v8847_v34 = vld [vmem:[#allocation26_spill] sm:$0xff] }
 0x244   : > { %v5069_v31 = vpop.f32.mrb[63].mxu1  ;;  %v8073_v14 = vadd.f32 %v5170_v53, %v3483_v27  ;;  %v2624_v61 = vmul.f32 %v2507_v10, %v7201_v52  ;;  %5551 = vmatprep.mubr.bf16.mxu1 %v2690_v29 }
 0x245   : > { %v8076_v60 = vadd.f32 %v5069_v31, %v5068_v38 }
 0x246   : > { %v2699_v62 = vpack.c.bf16 %v2625_v5, %v2624_v61  ;;  %v2347_v23 = vpop.permute.xlu1 %2346 }
 0x247   : > { %v2412_v43 = vmul.f32 %v2347_v23, %v7381_v42  ;;  %v2342_v45 = vpop.permute.xlu0 %2341  ;;  %v3491_v23 = vadd.f32 %v5064_v1, %v7900_v40 }
 0x248   : > { %v2411_v9 = vmul.f32 %v2342_v45, %v8827_v35  ;;  %5552 = vmatmul.mubr.bf16.gmra.mrb[152].mxu1 %v2699_v62  ;;  %v3488_v35 = vadd.f32 %v5061_v50, %v7900_v40  ;;  %v5764_v62 = vld [vmem:[%s8555_s6 + $0x8] sm:$0xff]  }
 0x249   : > { %v5071_v26 = vpop.f32.mrb[64].mxu1  ;;  %5577 = vmatprep.subr.bf16.mxu0 %v5764_v62 }
 0x24a   : > { %v2752_v11 = vpack.c.bf16 %v2412_v43, %v2411_v9  ;;  %v5072_v33 = vpop.f32.mrb[65].mxu1  ;;  %v2122_v54 = vpop.permute.xlu1 %2121  ;;  %5578 = vmatpush3.bf16.msra.mxu0 %v5764_v62 }
 0x24b   : > { %v8080_v57 = vadd.f32 %v5072_v33, %v5071_v26  ;;  %v5074_v3 = vpop.f32.mrb[66].mxu1  ;;  %v2187_v52 = vmul.f32 %v2122_v54, %v8846_v4  ;;  %v2117_v47 = vpop.permute.xlu0 %2116 }
 0x24c   : > { %v5075_v39 = vpop.f32.mrb[67].mxu1  ;;  %v2186_v27 = vmul.f32 %v2117_v47, %v8847_v34  ;;  %v5171_v29 = vpop.f32.mrb[56].mxu0  ;;  %3976 = vmatprep.mubr.bf16.mxu0 %v2752_v11 }
 0x24d   : > { %v8084_v42 = vadd.f32 %v5075_v39, %v5074_v3  ;;  %v5172_v13 = vpop.f32.mrb[57].mxu0 }
 0x24e   : > { %v2751_v53 = vpack.c.bf16 %v2187_v52, %v2186_v27  ;;  %v5173_v6 = vadd.f32 %v5172_v13, %v5171_v29  ;;  %v5174_v38 = vpop.f32.mrb[58].mxu0  ;;  %v2522_v5 = vpop.permute.xlu1 %2521 }
 0x24f   : > { %v5175_v10 = vpop.f32.mrb[59].mxu0  ;;  %v2627_v31 = vmul.f32 %v2522_v5, %v7246_v36  ;;  %v2517_v61 = vpop.permute.xlu0 %2516 }
 0x250   : > { %v8092_v43 = vadd.f32 %v5173_v6, %v3488_v35  ;;  %v5176_v45 = vadd.f32 %v5175_v10, %v5174_v38  ;;  %v2626_v9 = vmul.f32 %v2517_v61, %v7249_v41  ;;  %3977 = vmatmul.mubr.bf16.gmra.mrb[124].mxu0 %v2751_v53  ;;  %v3496_v53 = vadd.f32 %v8070_v48, %v7900_v40  ;;  %v8848_v48 = vld [vmem:[#allocation12_spill] sm:$0xff] }
 0x251   : > { %v5077_v50 = vpop.f32.mrb[68].mxu1  ;;  %v3499_v10 = vadd.f32 %v8076_v60, %v7900_v40  ;;  %v5765_v60 = vld [vmem:[%s8555_s6 + $0x10] sm:$0xff]  }
 0x252   : > { %v8095_v26 = vadd.f32 %v5176_v45, %v3491_v23  ;;  %v2708_v11 = vpack.c.bf16 %v2627_v31, %v2626_v9  ;;  %v5078_v33 = vpop.f32.mrb[69].mxu1  ;;  %v2532_v36 = vpop.permute.xlu1 %2531  ;;  %5579 = vmatprep.subr.bf16.mxu0 %v5765_v60 }
 0x253   : > { %v8097_v54 = vadd.f32 %v5078_v33, %v5077_v50  ;;  %v5080_v3 = vpop.f32.mrb[70].mxu1  ;;  %v2629_v4 = vmul.f32 %v2532_v36, %v8809_v58  ;;  %v2527_v1 = vpop.permute.xlu0 %2526  ;;  %v8849_v36 = vld [vmem:[#allocation13_spill] sm:$0xff]  ;;  %5580 = vmatpush3.bf16.msra.mxu0 %v5765_v60 }
 0x254   : > { %v5081_v52 = vpop.f32.mrb[71].mxu1  ;;  %v2628_v47 = vmul.f32 %v2527_v1, %v8810_v56  ;;  %5555 = vmatprep.mubr.bf16.mxu1 %v2708_v11 }
 0x255   : > { %v8101_v41 = vadd.f32 %v5081_v52, %v5080_v3 }
 0x256   : > { %v2717_v39 = vpack.c.bf16 %v2629_v4, %v2628_v47  ;;  %v2357_v34 = vpop.permute.xlu1 %2356  ;;  %v5177_v27 = vpop.f32.mrb[60].mxu0 }
 0x257   : > { %v2414_v29 = vmul.f32 %v2357_v34, %v7429_v51  ;;  %v2352_v13 = vpop.permute.xlu0 %2351  ;;  %v5178_v35 = vpop.f32.mrb[61].mxu0  ;;  %v8850_v34 = vld [vmem:[#allocation38_spill] sm:$0xff] }
 0x258   : > { %v2413_v6 = vmul.f32 %v2352_v13, %v7442_v15  ;;  %v5179_v58 = vadd.f32 %v5178_v35, %v5177_v27  ;;  %5556 = vmatmul.mubr.bf16.gmra.mrb[156].mxu1 %v2717_v39  ;;  %v5180_v38 = vpop.f32.mrb[62].mxu0 }
 0x259   : > { %v5083_v5 = vpop.f32.mrb[72].mxu1  ;;  %v5181_v56 = vpop.f32.mrb[63].mxu0 }
 0x25a   : > { %v2761_v31 = vpack.c.bf16 %v2414_v29, %v2413_v6  ;;  %v5084_v61 = vpop.f32.mrb[73].mxu1  ;;  %v8109_v62 = vadd.f32 %v5179_v58, %v3496_v53  ;;  %v5182_v51 = vadd.f32 %v5181_v56, %v5180_v38  ;;  %v2132_v23 = vpop.permute.xlu1 %2131  ;;  %v8851_v38 = vld [vmem:[#allocation11_spill] sm:$0xff] }
 0x25b   : > { %v8111_v45 = vadd.f32 %v5084_v61, %v5083_v5  ;;  %v5086_v9 = vpop.f32.mrb[74].mxu1  ;;  %v2189_v50 = vmul.f32 %v2132_v23, %v8848_v48  ;;  %v2127_v15 = vpop.permute.xlu0 %2126 }
 0x25c   : > { %v5087_v11 = vpop.f32.mrb[75].mxu1  ;;  %v8114_v33 = vadd.f32 %v5182_v51, %v3499_v10  ;;  %v2188_v3 = vmul.f32 %v2127_v15, %v8849_v36  ;;  %3984 = vmatprep.mubr.bf16.mxu0 %v2761_v31  ;;  %v8852_v31 = vld [vmem:[#allocation27_spill] sm:$0xff] }
 0x25d   : > { %v8117_v4 = vadd.f32 %v5087_v11, %v5086_v9  ;;  %v3504_v9 = vadd.f32 %v8080_v57, %v7900_v40 }
 0x25e   : > { %v2760_v1 = vpack.c.bf16 %v2189_v50, %v2188_v3  ;;  %v2542_v52 = vpop.permute.xlu1 %2541 }
 0x25f   : > { %v2631_v47 = vmul.f32 %v2542_v52, %v8813_v55  ;;  %v2537_v39 = vpop.permute.xlu0 %2536 }
 0x260   : > { %v2630_v27 = vmul.f32 %v2537_v39, %v8850_v34  ;;  %3985 = vmatmul.mubr.bf16.gmra.mrb[128].mxu0 %v2760_v1  ;;  %v3507_v1 = vadd.f32 %v8084_v42, %v7900_v40 }
 0x261   : > { %v5089_v29 = vpop.f32.mrb[76].mxu1 }
 0x262   : > { %v2726_v13 = vpack.c.bf16 %v2631_v47, %v2630_v27  ;;  %v5090_v35 = vpop.f32.mrb[77].mxu1  ;;  %v2552_v53 = vpop.permute.xlu1 %2551 }
 0x263   : > { %v8124_v6 = vadd.f32 %v5090_v35, %v5089_v29  ;;  %v5092_v58 = vpop.f32.mrb[78].mxu1  ;;  %v2633_v5 = vmul.f32 %v2552_v53, %v8851_v38  ;;  %v2547_v56 = vpop.permute.xlu0 %2546 }
 0x264   : > { %v5093_v10 = vpop.f32.mrb[79].mxu1  ;;  %v2632_v61 = vmul.f32 %v2547_v56, %v8852_v31  ;;  %v5183_v55 = vpop.f32.mrb[64].mxu0  ;;  %5559 = vmatprep.mubr.bf16.mxu1 %v2726_v13  ;;  %v8854_v56 = vld [vmem:[#allocation29_spill] sm:$0xff] }
 0x265   : > { %v8128_v51 = vadd.f32 %v5093_v10, %v5092_v58  ;;  %v5184_v23 = vpop.f32.mrb[65].mxu0  ;;  %v8853_v58 = vld [vmem:[#allocation28_spill] sm:$0xff] }
 0x266   : > { %v2735_v48 = vpack.c.bf16 %v2633_v5, %v2632_v61  ;;  %v5185_v50 = vadd.f32 %v5184_v23, %v5183_v55  ;;  %v5186_v15 = vpop.f32.mrb[66].mxu0  ;;  %v2367_v11 = vpop.permute.xlu1 %2366 }
 0x267   : > { %v5187_v36 = vpop.f32.mrb[67].mxu0  ;;  %v2416_v3 = vmul.f32 %v2367_v11, %v7468_v2  ;;  %v2362_v60 = vpop.permute.xlu0 %2361  ;;  %v3512_v11 = vadd.f32 %v8097_v54, %v7900_v40 }
 0x268   : > { %v8135_v52 = vadd.f32 %v5185_v50, %v3504_v9  ;;  %v5188_v47 = vadd.f32 %v5187_v36, %v5186_v15  ;;  %v2415_v39 = vmul.f32 %v2362_v60, %v7493_v44  ;;  %5560 = vmatmul.mubr.bf16.gmra.mrb[160].mxu1 %v2735_v48  ;;  %v8855_v9 = vld [vmem:[#allocation14_spill] sm:$0xff]  ;;  %v8856_v36 = vld [vmem:[#allocation32_spill] sm:$0xff] }
 0x269   : > { %v5223_v34 = vpop.f32.mrb[80].mxu1 }
 0x26a   : > { %v8138_v27 = vadd.f32 %v5188_v47, %v3507_v1  ;;  %v2770_v57 = vpack.c.bf16 %v2416_v3, %v2415_v39  ;;  %v5224_v29 = vpop.f32.mrb[81].mxu1  ;;  %v2142_v13 = vpop.permute.xlu1 %2141  ;;  %v5766_v1 = vld [vmem:[%s8555_s6 + $0x18] sm:$0xff]  }
 0x26b   : > { %v5225_v35 = vadd.f32 %v5224_v29, %v5223_v34  ;;  %v5226_v53 = vpop.f32.mrb[82].mxu1  ;;  %v2191_v2 = vmul.f32 %v2142_v13, %v8853_v58  ;;  %v2137_v38 = vpop.permute.xlu0 %2136  ;;  %5581 = vmatprep.subr.bf16.mxu0 %v5766_v1  ;;  %v8857_v58 = vld [vmem:[#allocation15_spill] sm:$0xff] }
 0x26c   : > { %v5227_v5 = vpop.f32.mrb[83].mxu1  ;;  %v2190_v42 = vmul.f32 %v2137_v38, %v8854_v56  ;;  %3992 = vmatprep.mubr.bf16.mxu0 %v2770_v57  ;;  %5582 = vmatpush3.bf16.msra.mxu0 %v5766_v1  ;;  %v8859_v1 = vld [vmem:[#allocation17_spill] sm:$0xff] }
 0x26d   : > { %v8143_v10 = vadd.f32 %v5225_v35, %v7917_v7  ;;  %v5228_v44 = vadd.f32 %v5227_v5, %v5226_v53 }
 0x26e   : > { %v2769_v31 = vpack.c.bf16 %v2191_v2, %v2190_v42  ;;  %v2562_v61 = vpop.permute.xlu1 %2561  ;;  %v5189_v55 = vpop.f32.mrb[68].mxu0  ;;  %v8858_v42 = vld [vmem:[#allocation33_spill] sm:$0xff] }
 0x26f   : > { %v8146_v23 = vadd.f32 %v5228_v44, %v7926_v24  ;;  %v2635_v48 = vmul.f32 %v2562_v61, %v8855_v9  ;;  %v2557_v50 = vpop.permute.xlu0 %2556  ;;  %v5190_v15 = vpop.f32.mrb[69].mxu0  ;;  %v3515_v24 = vadd.f32 %v8101_v41, %v7900_v40 }
 0x270   : > { %v2634_v3 = vmul.f32 %v2557_v50, %v8856_v36  ;;  %v5191_v60 = vadd.f32 %v5190_v15, %v5189_v55  ;;  %3993 = vmatmul.mubr.bf16.gmra.mrb[132].mxu0 %v2769_v31  ;;  %v5192_v7 = vpop.f32.mrb[70].mxu0  ;;  %v5767_v50 = vld [vmem:[%s8555_s6 + $0x20] sm:$0xff]   ;;  %v5768_v15 = vld [vmem:[%s8555_s6 + $0x28] sm:$0xff]  }
 0x271   : > { %v5229_v47 = vpop.f32.mrb[84].mxu1  ;;  %v5193_v39 = vpop.f32.mrb[71].mxu0  ;;  %5583 = vmatprep.subr.bf16.mxu0 %v5767_v50 }
 0x272   : > { %v2744_v34 = vpack.c.bf16 %v2635_v48, %v2634_v3  ;;  %v5230_v57 = vpop.f32.mrb[85].mxu1  ;;  %v8157_v29 = vadd.f32 %v5191_v60, %v3512_v11  ;;  %v5194_v13 = vadd.f32 %v5193_v39, %v5192_v7  ;;  %v2572_v54 = vpop.permute.xlu1 %2571  ;;  %5584 = vmatpush3.bf16.msra.mxu0 %v5767_v50 }
 0x273   : > { %v5231_v35 = vadd.f32 %v5230_v57, %v5229_v47  ;;  %v5232_v53 = vpop.f32.mrb[86].mxu1  ;;  %v2637_v2 = vmul.f32 %v2572_v54, %v8857_v58  ;;  %v2567_v38 = vpop.permute.xlu0 %2566  ;;  %5585 = vmatprep.subr.bf16.mxu0 %v5768_v15 }
 0x274   : > { %v5233_v5 = vpop.f32.mrb[87].mxu1  ;;  %v8160_v56 = vadd.f32 %v5194_v13, %v3515_v24  ;;  %v2636_v44 = vmul.f32 %v2567_v38, %v8858_v42  ;;  %5563 = vmatprep.mubr.bf16.mxu1 %v2744_v34  ;;  %v8860_v34 = vld [vmem:[#allocation16_spill] sm:$0xff] }
 0x275   : > { %v8164_v40 = vadd.f32 %v5231_v35, %v7941_v32  ;;  %v5234_v41 = vadd.f32 %v5233_v5, %v5232_v53  ;;  %v5771_v53 = vld [vmem:[%s8554_s5] ss:$0 sm:$0xff] }
 0x276   : > { %v2753_v31 = vpack.c.bf16 %v2637_v2, %v2636_v44  ;;  %v2377_v61 = vpop.permute.xlu1 %2376  ;;  %v3520_v58 = vadd.f32 %v5771_v53, %v8111_v45  ;;  %5586 = vmatpush3.bf16.msra.mxu0 %v5768_v15 }
 0x277   : > { %v8167_v55 = vadd.f32 %v5234_v41, %v7950_v49  ;;  %v2418_v9 = vmul.f32 %v2377_v61, %v7640_v20  ;;  %v2372_v48 = vpop.permute.xlu0 %2371  ;;  %v3523_v61 = vadd.f32 %v5771_v53, %v8117_v4  ;;  %v5769_v4 = vld [vmem:[%s8555_s6 + $0x30] sm:$0xff]  }
 0x278   : > { %v2417_v32 = vmul.f32 %v2372_v48, %v7637_v21  ;;  %5564 = vmatmul.mubr.bf16.gmra.mrb[164].mxu1 %v2753_v31  ;;  %5587 = vmatprep.subr.bf16.mxu0 %v5769_v4 }
 0x279   : > { %v5235_v11 = vpop.f32.mrb[88].mxu1 }
 0x27a   : > { %v2779_v36 = vpack.c.bf16 %v2418_v9, %v2417_v32  ;;  %v5236_v3 = vpop.f32.mrb[89].mxu1  ;;  %v2152_v49 = vpop.permute.xlu1 %2151  ;;  %5588 = vmatpush3.bf16.msra.mxu0 %v5769_v4 }
 0x27b   : > { %v5237_v60 = vadd.f32 %v5236_v3, %v5235_v11  ;;  %v5238_v7 = vpop.f32.mrb[90].mxu1  ;;  %v2193_v47 = vmul.f32 %v2152_v49, %v8859_v1  ;;  %v2147_v39 = vpop.permute.xlu0 %2146  ;;  %v8861_v49 = vld [vmem:[#allocation34_spill] sm:$0xff]  ;;  %v8862_v1 = vld [vmem:[#allocation35_spill] sm:$0xff] }
 0x27c   : > { %v5239_v24 = vpop.f32.mrb[91].mxu1  ;;  %v2192_v57 = vmul.f32 %v2147_v39, %v8860_v34  ;;  %v5195_v13 = vpop.f32.mrb[72].mxu0  ;;  %4000 = vmatprep.mubr.bf16.mxu0 %v2779_v36  ;;  %v8863_v39 = vld [vmem:[#allocation18_spill] sm:$0xff] }
 0x27d   : > { %v8180_v21 = vadd.f32 %v5237_v60, %v7963_v25  ;;  %v5240_v54 = vadd.f32 %v5239_v24, %v5238_v7  ;;  %v5196_v35 = vpop.f32.mrb[73].mxu0 }
 0x27e   : > { %v2778_v2 = vpack.c.bf16 %v2193_v47, %v2192_v57  ;;  %v5197_v38 = vadd.f32 %v5196_v35, %v5195_v13  ;;  %v5198_v5 = vpop.f32.mrb[74].mxu0  ;;  %v2582_v42 = vpop.permute.xlu1 %2581 }
 0x27f   : > { %v8187_v44 = vadd.f32 %v5240_v54, %v7972_v37  ;;  %v5199_v41 = vpop.f32.mrb[75].mxu0  ;;  %v2639_v25 = vmul.f32 %v2582_v42, %v7646_v63  ;;  %v2577_v31 = vpop.permute.xlu0 %2576  ;;  %v8864_v54 = vld [vmem:[#allocation19_spill] sm:$0xff] }
 0x280   : > { %v8191_v9 = vadd.f32 %v5197_v38, %v3520_v58  ;;  %v5200_v48 = vadd.f32 %v5199_v41, %v5198_v5  ;;  %v2638_v50 = vmul.f32 %v2577_v31, %v7658_v19  ;;  %4001 = vmatmul.mubr.bf16.gmra.mrb[136].mxu0 %v2778_v2  ;;  %v5770_v19 = vld [vmem:[%s8555_s6 + $0x38] sm:$0xff]   ;;  %v3528_v41 = vadd.f32 %v5771_v53, %v8124_v6 }
 0x281   : > { %v5241_v45 = vpop.f32.mrb[92].mxu1  ;;  %5589 = vmatprep.subr.bf16.mxu0 %v5770_v19  ;;  %v8865_v6 = vrot.slane %v7640_v20, 7  ;;  %v8867_v20 = vld [vmem:[#allocation37_spill] sm:$0xff] }
 0x282   : > { %v8194_v32 = vadd.f32 %v5200_v48, %v3523_v61  ;;  %v2762_v11 = vpack.c.bf16 %v2639_v25, %v2638_v50  ;;  %v5242_v15 = vpop.f32.mrb[93].mxu1  ;;  %v2592_v36 = vpop.permute.xlu1 %2591  ;;  %5590 = vmatpush3.bf16.msra.mxu0 %v5770_v19 }
 0x283   : > { %v5243_v37 = vadd.f32 %v5242_v15, %v5241_v45  ;;  %v5244_v3 = vpop.f32.mrb[94].mxu1  ;;  %v2641_v60 = vmul.f32 %v2592_v36, %v8861_v49  ;;  %v2587_v63 = vpop.permute.xlu0 %2586 }
 0x284   : > { %v5245_v7 = vpop.f32.mrb[95].mxu1  ;;  %v2640_v47 = vmul.f32 %v2587_v63, %v8862_v1  ;;  %5567 = vmatprep.mubr.bf16.mxu1 %v2762_v11  ;;  %v3531_v11 = vadd.f32 %v5771_v53, %v8128_v51 }
 0x285   : > { %v8205_v24 = vadd.f32 %v5243_v37, %v8863_v39  ;;  %v5246_v34 = vadd.f32 %v5245_v7, %v5244_v3  ;;  %v1970_v7 = vsel %vm647_vm0, %v8865_v6, 0.0 }
 0x286   : > { %v2771_v57 = vpack.c.bf16 %v2641_v60, %v2640_v47  ;;  %v2387_v13 = vpop.permute.xlu1 %2386 }
 0x287   : > { %v8208_v35 = vadd.f32 %v5246_v34, %v8864_v54  ;;  %v2420_v58 = vmul.f32 0.0, %v2387_v13  ;;  %v2382_v2 = vpop.permute.xlu0 %2381  ;;  %v5201_v38 = vpop.f32.mrb[76].mxu0 }
 0x288   : > { %v2419_v5 = vmul.f32 0.0, %v2382_v2  ;;  %v5202_v42 = vpop.f32.mrb[77].mxu0  ;;  %5568 = vmatmul.mubr.bf16.gmra.mrb[168].mxu1 %v2771_v57  ;;  %v8866_v57 = vld [vmem:[#allocation36_spill] sm:$0xff] }
 0x289   : > { %v5247_v25 = vpop.f32.mrb[96].mxu1  ;;  %v5203_v31 = vadd.f32 %v5202_v42, %v5201_v38  ;;  %v5204_v61 = vpop.f32.mrb[78].mxu0 }
 0x28a   : > { %v2788_v48 = vpack.c.bf16 %v2420_v58, %v2419_v5  ;;  %v5248_v50 = vpop.f32.mrb[97].mxu1  ;;  %v5205_v45 = vpop.f32.mrb[79].mxu0 }
 0x28b   : > { %v5249_v15 = vadd.f32 %v5248_v50, %v5247_v25  ;;  %v8212_v36 = vadd.f32 %v5203_v31, %v3528_v41  ;;  %v5250_v37 = vpop.f32.mrb[98].mxu1  ;;  %v5206_v3 = vadd.f32 %v5205_v45, %v5204_v61  ;;  %v2162_v49 = vpop.permute.xlu1 %2161 }
 0x28c   : > { %v5251_v60 = vpop.f32.mrb[99].mxu1  ;;  %v2195_v63 = vmul.f32 0.0, %v2162_v49  ;;  %v2157_v4 = vpop.permute.xlu0 %2156  ;;  %4008 = vmatprep.mubr.bf16.mxu0 %v2788_v48 }
 0x28d   : > { %v8218_v1 = vadd.f32 %v5249_v15, %v8014_v22  ;;  %v5252_v19 = vadd.f32 %v5251_v60, %v5250_v37  ;;  %v8220_v47 = vadd.f32 %v5206_v3, %v3531_v11  ;;  %v2194_v51 = vmul.f32 %v2157_v4, %v1970_v7 }
 0x28f   : > { %v8223_v53 = vadd.f32 %v5252_v19, %v8017_v28  ;;  %v2787_v39 = vpack.c.bf16 %v2195_v63, %v2194_v51  ;;  %v2602_v34 = vpop.permute.xlu1 %2601 }
 0x290   : > { %v2643_v13 = vmul.f32 %v2602_v34, %v8866_v57  ;;  %v2597_v54 = vpop.permute.xlu0 %2596 }
 0x291   : > { %v5253_v58 = vpop.f32.mrb[100].mxu1  ;;  %v2642_v2 = vmul.f32 %v2597_v54, %v8867_v20  ;;  %4009 = vmatmul.mubr.bf16.gmra.mrb[140].mxu0 %v2787_v39 }
 0x292   : > { %v5254_v38 = vpop.f32.mrb[101].mxu1 }
 0x293   : > { %v2780_v5 = vpack.c.bf16 %v2643_v13, %v2642_v2  ;;  %v5255_v22 = vadd.f32 %v5254_v38, %v5253_v58  ;;  %v5256_v42 = vpop.f32.mrb[102].mxu1  ;;  %v2612_v41 = vpop.permute.xlu1 %2611 }
 0x294   : > { %v5257_v25 = vpop.f32.mrb[103].mxu1  ;;  %v2645_v31 = vmul.f32 0.0, %v2612_v41  ;;  %v2607_v61 = vpop.permute.xlu0 %2606 }
 0x295   : > { %v8228_v28 = vadd.f32 %v5255_v22, %v8024_v12  ;;  %v5258_v48 = vadd.f32 %v5257_v25, %v5256_v42  ;;  %v2644_v50 = vmul.f32 0.0, %v2607_v61  ;;  %v5335_v45 = vpop.f32.mrb[80].mxu0  ;;  %5571 = vmatprep.mubr.bf16.mxu1 %v2780_v5 }
 0x296   : > { %v5336_v11 = vpop.f32.mrb[81].mxu0 }
 0x297   : > { %v8231_v15 = vadd.f32 %v5258_v48, %v8027_v17  ;;  %v2789_v37 = vpack.c.bf16 %v2645_v31, %v2644_v50  ;;  %v5337_v3 = vadd.f32 %v5336_v11, %v5335_v45  ;;  %v5338_v49 = vpop.f32.mrb[82].mxu0 }
 0x298   : > { %v5339_v60 = vpop.f32.mrb[83].mxu0 }
 0x299   : > { %v5259_v63 = vpop.f32.mrb[104].mxu1  ;;  %v5340_v4 = vadd.f32 %v5339_v60, %v5338_v49  ;;  %5572 = vmatmul.mubr.bf16.gmra.mrb[172].mxu1 %v2789_v37  ;;  %v8234_v6 = vadd.f32 %v5337_v3, %v8143_v10 }
 0x29a   : > { %v5260_v12 = vpop.f32.mrb[105].mxu1 }
 0x29b   : > { %v5261_v7 = vadd.f32 %v5260_v12, %v5259_v63  ;;  %v5262_v19 = vpop.f32.mrb[106].mxu1  ;;  %v8237_v51 = vadd.f32 %v5340_v4, %v8146_v23 }
 0x29c   : > { %v5263_v39 = vpop.f32.mrb[107].mxu1 }
 0x29d   : > { %v8240_v17 = vadd.f32 %v5261_v7, %v8034_v59  ;;  %v5264_v34 = vadd.f32 %v5263_v39, %v5262_v19 }
 0x29f   : > { %v8243_v57 = vadd.f32 %v5264_v34, %v8037_v18  ;;  %v5341_v13 = vpop.f32.mrb[84].mxu0 }
 0x2a0   : > { %v5342_v54 = vpop.f32.mrb[85].mxu0 }
 0x2a1   : > { %v5265_v58 = vpop.f32.mrb[108].mxu1  ;;  %v5343_v20 = vadd.f32 %v5342_v54, %v5341_v13  ;;  %v5344_v10 = vpop.f32.mrb[86].mxu0 }
 0x2a2   : > { %v5266_v2 = vpop.f32.mrb[109].mxu1  ;;  %v5345_v38 = vpop.f32.mrb[87].mxu0 }
 0x2a3   : > { %v5267_v5 = vadd.f32 %v5266_v2, %v5265_v58  ;;  %v5268_v22 = vpop.f32.mrb[110].mxu1  ;;  %v5346_v42 = vadd.f32 %v5345_v38, %v5344_v10  ;;  %v8246_v23 = vadd.f32 %v5343_v20, %v8164_v40 }
 0x2a4   : > { %v5269_v41 = vpop.f32.mrb[111].mxu1 }
 0x2a5   : > { %v8249_v59 = vadd.f32 %v5267_v5, %v8044_v30  ;;  %v5270_v25 = vadd.f32 %v5269_v41, %v5268_v22  ;;  %v8252_v18 = vadd.f32 %v5346_v42, %v8167_v55 }
 0x2a7   : > { %v8255_v31 = vadd.f32 %v5270_v25, %v8047_v46 }
 0x2a9   : > { %v5271_v61 = vpop.f32.mrb[112].mxu1 }
 0x2aa   : > { %v5272_v48 = vpop.f32.mrb[113].mxu1 }
 0x2ab   : > { %v5273_v50 = vadd.f32 %v5272_v48, %v5271_v61  ;;  %v5274_v45 = vpop.f32.mrb[114].mxu1  ;;  %v5347_v11 = vpop.f32.mrb[88].mxu0 }
 0x2ac   : > { %v5275_v37 = vpop.f32.mrb[115].mxu1  ;;  %v5348_v3 = vpop.f32.mrb[89].mxu0 }
 0x2ad   : > { %v8258_v40 = vadd.f32 %v5273_v50, %v8054_v0  ;;  %v5276_v49 = vadd.f32 %v5275_v37, %v5274_v45  ;;  %v5349_v30 = vadd.f32 %v5348_v3, %v5347_v11  ;;  %v5350_v60 = vpop.f32.mrb[90].mxu0 }
 0x2ae   : > { %v5351_v63 = vpop.f32.mrb[91].mxu0 }
 0x2af   : > { %v8261_v55 = vadd.f32 %v5276_v49, %v8057_v16  ;;  %v5352_v4 = vadd.f32 %v5351_v63, %v5350_v60  ;;  %v8264_v46 = vadd.f32 %v5349_v30, %v8180_v21 }
 0x2b1   : > { %v5277_v12 = vpop.f32.mrb[116].mxu1  ;;  %v8267_v7 = vadd.f32 %v5352_v4, %v8187_v44 }
 0x2b2   : > { %v5278_v19 = vpop.f32.mrb[117].mxu1 }
 0x2b3   : > { %v5279_v39 = vadd.f32 %v5278_v19, %v5277_v12  ;;  %v5280_v34 = vpop.f32.mrb[118].mxu1 }
 0x2b4   : > { %v5281_v0 = vpop.f32.mrb[119].mxu1 }
 0x2b5   : > { %v8270_v13 = vadd.f32 %v5279_v39, %v8068_v8  ;;  %v5282_v54 = vadd.f32 %v5281_v0, %v5280_v34 }
 0x2b7   : > { %v8273_v58 = vadd.f32 %v5282_v54, %v8073_v14  ;;  %v5353_v16 = vpop.f32.mrb[92].mxu0 }
 0x2b8   : > { %v5354_v20 = vpop.f32.mrb[93].mxu0 }
 0x2b9   : > { %v5283_v10 = vpop.f32.mrb[120].mxu1  ;;  %v5355_v21 = vadd.f32 %v5354_v20, %v5353_v16  ;;  %v5356_v2 = vpop.f32.mrb[94].mxu0 }
 0x2ba   : > { %v5284_v38 = vpop.f32.mrb[121].mxu1  ;;  %v5357_v5 = vpop.f32.mrb[95].mxu0 }
 0x2bb   : > { %v5285_v44 = vadd.f32 %v5284_v38, %v5283_v10  ;;  %v5286_v22 = vpop.f32.mrb[122].mxu1  ;;  %v5358_v42 = vadd.f32 %v5357_v5, %v5356_v2  ;;  %v8276_v41 = vadd.f32 %v5355_v21, %v8205_v24 }
 0x2bc   : > { %v5287_v25 = vpop.f32.mrb[123].mxu1 }
 0x2bd   : > { %v8279_v8 = vadd.f32 %v5285_v44, %v8092_v43  ;;  %v5288_v61 = vadd.f32 %v5287_v25, %v5286_v22  ;;  %v8282_v14 = vadd.f32 %v5358_v42, %v8208_v35 }
 0x2bf   : > { %v8285_v48 = vadd.f32 %v5288_v61, %v8095_v26 }
 0x2c1   : > { %v5289_v50 = vpop.f32.mrb[124].mxu1 }
 0x2c2   : > { %v5290_v45 = vpop.f32.mrb[125].mxu1 }
 0x2c3   : > { %v5291_v11 = vadd.f32 %v5290_v45, %v5289_v50  ;;  %v5292_v37 = vpop.f32.mrb[126].mxu1  ;;  %v5359_v3 = vpop.f32.mrb[96].mxu0 }
 0x2c4   : > { %v5293_v49 = vpop.f32.mrb[127].mxu1  ;;  %v5360_v30 = vpop.f32.mrb[97].mxu0 }
 0x2c5   : > { %v8288_v24 = vadd.f32 %v5291_v11, %v8109_v62  ;;  %v5294_v60 = vadd.f32 %v5293_v49, %v5292_v37  ;;  %v5361_v43 = vadd.f32 %v5360_v30, %v5359_v3  ;;  %v5362_v63 = vpop.f32.mrb[98].mxu0 }
 0x2c6   : > { %v5363_v4 = vpop.f32.mrb[99].mxu0 }
 0x2c7   : > { %v8291_v35 = vadd.f32 %v5294_v60, %v8114_v33  ;;  %v5364_v12 = vadd.f32 %v5363_v4, %v5362_v63  ;;  %v8294_v26 = vadd.f32 %v5361_v43, %v8218_v1 }
 0x2c9   : > { %v5295_v19 = vpop.f32.mrb[128].mxu1  ;;  %v8297_v39 = vadd.f32 %v5364_v12, %v8223_v53 }
 0x2ca   : > { %v5296_v34 = vpop.f32.mrb[129].mxu1 }
 0x2cb   : > { %v5297_v0 = vadd.f32 %v5296_v34, %v5295_v19  ;;  %v5298_v54 = vpop.f32.mrb[130].mxu1 }
 0x2cc   : > { %v5299_v62 = vpop.f32.mrb[131].mxu1 }
 0x2cd   : > { %v8300_v16 = vadd.f32 %v5297_v0, %v8135_v52  ;;  %v5300_v20 = vadd.f32 %v5299_v62, %v5298_v54 }
 0x2cf   : > { %v8303_v10 = vadd.f32 %v5300_v20, %v8138_v27  ;;  %v5365_v33 = vpop.f32.mrb[100].mxu0 }
 0x2d0   : > { %v5366_v21 = vpop.f32.mrb[101].mxu0 }
 0x2d1   : > { %v5367_v2 = vadd.f32 %v5366_v21, %v5365_v33  ;;  %v5368_v1 = vpop.f32.mrb[102].mxu0 }
 0x2d2   : > { %v5369_v38 = vpop.f32.mrb[103].mxu0 }
 0x2d3   : > { %v5370_v5 = vadd.f32 %v5369_v38, %v5368_v1  ;;  %v8306_v53 = vadd.f32 %v5367_v2, %v8228_v28 }
 0x2d4   : > { %v5301_v44 = vpop.f32.mrb[132].mxu1 }
 0x2d5   : > { %v5302_v22 = vpop.f32.mrb[133].mxu1  ;;  %v8309_v42 = vadd.f32 %v5370_v5, %v8231_v15 }
 0x2d6   : > { %v5303_v52 = vadd.f32 %v5302_v22, %v5301_v44  ;;  %v5304_v25 = vpop.f32.mrb[134].mxu1 }
 0x2d7   : > { %v5305_v61 = vpop.f32.mrb[135].mxu1 }
 0x2d8   : > { %v8312_v27 = vadd.f32 %v5303_v52, %v8157_v29  ;;  %v5306_v50 = vadd.f32 %v5305_v61, %v5304_v25 }
 0x2da   : > { %v8315_v45 = vadd.f32 %v5306_v50, %v8160_v56 }
 0x2db   : > { %v5371_v11 = vpop.f32.mrb[104].mxu0 }
 0x2dc   : > { %v5372_v37 = vpop.f32.mrb[105].mxu0 }
 0x2dd   : > { %v5373_v3 = vadd.f32 %v5372_v37, %v5371_v11  ;;  %v5374_v28 = vpop.f32.mrb[106].mxu0 }
 0x2de   : > { %v5375_v49 = vpop.f32.mrb[107].mxu0 }
 0x2df   : > { %v5376_v30 = vadd.f32 %v5375_v49, %v5374_v28  ;;  %v8318_v60 = vadd.f32 %v5373_v3, %v8240_v17 }
 0x2e0   : > { %v5307_v15 = vpop.f32.mrb[136].mxu1 }
 0x2e1   : > { %v5308_v43 = vpop.f32.mrb[137].mxu1  ;;  %v8321_v63 = vadd.f32 %v5376_v30, %v8243_v57 }
 0x2e2   : > { %v5309_v29 = vadd.f32 %v5308_v43, %v5307_v15  ;;  %v5310_v4 = vpop.f32.mrb[138].mxu1 }
 0x2e3   : > { %v5311_v12 = vpop.f32.mrb[139].mxu1 }
 0x2e4   : > { %v8324_v56 = vadd.f32 %v5309_v29, %v8191_v9  ;;  %v5312_v19 = vadd.f32 %v5311_v12, %v5310_v4 }
 0x2e6   : > { %v8327_v34 = vadd.f32 %v5312_v19, %v8194_v32 }
 0x2e7   : > { %v5377_v0 = vpop.f32.mrb[108].mxu0 }
 0x2e8   : > { %v5378_v54 = vpop.f32.mrb[109].mxu0 }
 0x2e9   : > { %v5379_v62 = vadd.f32 %v5378_v54, %v5377_v0  ;;  %v5380_v17 = vpop.f32.mrb[110].mxu0 }
 0x2ea   : > { %v5381_v20 = vpop.f32.mrb[111].mxu0 }
 0x2eb   : > { %v5382_v33 = vadd.f32 %v5381_v20, %v5380_v17  ;;  %v8330_v21 = vadd.f32 %v5379_v62, %v8249_v59 }
 0x2ec   : > { %v5313_v57 = vpop.f32.mrb[140].mxu1 }
 0x2ed   : > { %v5314_v2 = vpop.f32.mrb[141].mxu1  ;;  %v8333_v1 = vadd.f32 %v5382_v33, %v8255_v31 }
 0x2ee   : > { %v5315_v9 = vadd.f32 %v5314_v2, %v5313_v57  ;;  %v5316_v38 = vpop.f32.mrb[142].mxu1 }
 0x2ef   : > { %v5317_v5 = vpop.f32.mrb[143].mxu1 }
 0x2f0   : > { %v8336_v32 = vadd.f32 %v5315_v9, %v8212_v36  ;;  %v5318_v44 = vadd.f32 %v5317_v5, %v5316_v38 }
 0x2f2   : > { %v8339_v22 = vadd.f32 %v5318_v44, %v8220_v47 }
 0x2f3   : > { %v5383_v52 = vpop.f32.mrb[112].mxu0 }
 0x2f4   : > { %v5384_v25 = vpop.f32.mrb[113].mxu0 }
 0x2f5   : > { %v5385_v61 = vadd.f32 %v5384_v25, %v5383_v52  ;;  %v5386_v59 = vpop.f32.mrb[114].mxu0 }
 0x2f6   : > { %v5387_v50 = vpop.f32.mrb[115].mxu0 }
 0x2f7   : > { %v5388_v11 = vadd.f32 %v5387_v50, %v5386_v59  ;;  %v8342_v37 = vadd.f32 %v5385_v61, %v8258_v40 }
 0x2f9   : > { %v8345_v31 = vadd.f32 %v5388_v11, %v8261_v55 }
 0x2fb   : > { %v5545_v3 = vpop.f32.mrb[144].mxu1 }
 0x2fc   : > { %v4060_v36 = vadd.f32 %v5545_v3, %v8246_v23  ;;  %v4051_v28 = vpop.f32.mrb[145].mxu1 }
 0x2fd   : > { %v4052_v49 = vadd.f32 %v4051_v28, %v8234_v6  ;;  %v5546_v47 = vpop.f32.mrb[146].mxu1 }
 0x2fe   : > { %v4063_v30 = vadd.f32 %v5546_v47, %v8252_v18  ;;  %v4054_v15 = vpop.f32.mrb[147].mxu1  ;;  %v4180_v29 = vmax.f32 %v4060_v36, 0.0 }
 0x2ff   : > { %v4055_v43 = vadd.f32 %v4054_v15, %v8237_v51  ;;  %v4178_v12 = vmax.f32 %v4052_v49, 0.0 }
 0x300   : > { %v4181_v4 = vmax.f32 %v4063_v30, 0.0 }
 0x301   : > { %v4179_v40 = vmax.f32 %v4055_v43, 0.0 }
 0x302   : > { %v4211_v19 = vpack.c.bf16 %v4181_v4, %v4180_v29 }
 0x303   : > { %v4210_v0 = vpack.c.bf16 %v4179_v40, %v4178_v12  ;;  %v5389_v55 = vpop.f32.mrb[116].mxu0 }
 0x304   : > { %v5390_v54 = vpop.f32.mrb[117].mxu0 }
 0x305   : > { %v5391_v62 = vadd.f32 %v5390_v54, %v5389_v55  ;;  %v5392_v17 = vpop.f32.mrb[118].mxu0  ;;  %5591 = vmatprep.mubr.bf16.mxu0 %v4210_v0 }
 0x306   : > { %v5393_v23 = vpop.f32.mrb[119].mxu0  ;;  %5592 = vmatmul.mubr.bf16.vlgmr.msra.gmra.mrb[144].mxu0 %v4211_v19 }
 0x307   : > { %v5394_v6 = vadd.f32 %v5393_v23, %v5392_v17  ;;  %v8352_v20 = vadd.f32 %v5391_v62, %v8270_v13 }
 0x309   : > { %v8355_v18 = vadd.f32 %v5394_v6, %v8273_v58 }
 0x30b   : > { %v5549_v51 = vpop.f32.mrb[148].mxu1 }
 0x30c   : > { %v4076_v33 = vadd.f32 %v5549_v51, %v8276_v41  ;;  %v4067_v57 = vpop.f32.mrb[149].mxu1 }
 0x30d   : > { %v4068_v2 = vadd.f32 %v4067_v57, %v8264_v46  ;;  %v5550_v9 = vpop.f32.mrb[150].mxu1 }
 0x30e   : > { %v4079_v38 = vadd.f32 %v5550_v9, %v8282_v14  ;;  %v4070_v5 = vpop.f32.mrb[151].mxu1  ;;  %v4184_v52 = vmax.f32 %v4076_v33, 0.0 }
 0x30f   : > { %v4071_v44 = vadd.f32 %v4070_v5, %v8267_v7  ;;  %v4182_v61 = vmax.f32 %v4068_v2, 0.0 }
 0x310   : > { %v4185_v25 = vmax.f32 %v4079_v38, 0.0 }
 0x311   : > { %v4183_v13 = vmax.f32 %v4071_v44, 0.0 }
 0x312   : > { %v4213_v59 = vpack.c.bf16 %v4185_v25, %v4184_v52 }
 0x313   : > { %v4212_v50 = vpack.c.bf16 %v4183_v13, %v4182_v61  ;;  %v5395_v58 = vpop.f32.mrb[120].mxu0 }
 0x314   : > { %v5396_v11 = vpop.f32.mrb[121].mxu0 }
 0x315   : > { %v5397_v3 = vadd.f32 %v5396_v11, %v5395_v58  ;;  %v5398_v36 = vpop.f32.mrb[122].mxu0  ;;  %5595 = vmatprep.mubr.bf16.mxu0 %v4212_v50 }
 0x316   : > { %v5399_v41 = vpop.f32.mrb[123].mxu0  ;;  %5596 = vmatmul.mubr.bf16.gmra.mrb[148].mxu0 %v4213_v59 }
 0x317   : > { %v5400_v46 = vadd.f32 %v5399_v41, %v5398_v36  ;;  %v8362_v28 = vadd.f32 %v5397_v3, %v8279_v8 }
 0x319   : > { %v8365_v14 = vadd.f32 %v5400_v46, %v8285_v48 }
 0x31b   : > { %v5553_v7 = vpop.f32.mrb[152].mxu1 }
 0x31c   : > { %v4092_v49 = vadd.f32 %v5553_v7, %v8306_v53  ;;  %v4083_v47 = vpop.f32.mrb[153].mxu1 }
 0x31d   : > { %v4084_v30 = vadd.f32 %v4083_v47, %v8294_v26  ;;  %v5554_v15 = vpop.f32.mrb[154].mxu1 }
 0x31e   : > { %v4095_v43 = vadd.f32 %v5554_v15, %v8309_v42  ;;  %v4086_v29 = vpop.f32.mrb[155].mxu1  ;;  %v4188_v12 = vmax.f32 %v4092_v49, 0.0 }
 0x31f   : > { %v4087_v4 = vadd.f32 %v4086_v29, %v8297_v39  ;;  %v4186_v19 = vmax.f32 %v4084_v30, 0.0 }
 0x320   : > { %v4189_v40 = vmax.f32 %v4095_v43, 0.0 }
 0x321   : > { %v4187_v8 = vmax.f32 %v4087_v4, 0.0 }
 0x322   : > { %v4215_v0 = vpack.c.bf16 %v4189_v40, %v4188_v12 }
 0x323   : > { %v4214_v55 = vpack.c.bf16 %v4187_v8, %v4186_v19  ;;  %v5401_v48 = vpop.f32.mrb[124].mxu0 }
 0x324   : > { %v5402_v54 = vpop.f32.mrb[125].mxu0 }
 0x325   : > { %v5403_v62 = vadd.f32 %v5402_v54, %v5401_v48  ;;  %v5404_v17 = vpop.f32.mrb[126].mxu0  ;;  %5599 = vmatprep.mubr.bf16.mxu0 %v4214_v55 }
 0x326   : > { %v5405_v53 = vpop.f32.mrb[127].mxu0  ;;  %5600 = vmatmul.mubr.bf16.gmra.mrb[152].mxu0 %v4215_v0 }
 0x327   : > { %v5406_v26 = vadd.f32 %v5405_v53, %v5404_v17  ;;  %v3979_v23 = vadd.f32 %v5403_v62, %v8288_v24 }
 0x329   : > { %v3982_v42 = vadd.f32 %v5406_v26, %v8291_v35 }
 0x32b   : > { %v5557_v6 = vpop.f32.mrb[156].mxu1 }
 0x32c   : > { %v4108_v39 = vadd.f32 %v5557_v6, %v8330_v21  ;;  %v4099_v51 = vpop.f32.mrb[157].mxu1 }
 0x32d   : > { %v4100_v33 = vadd.f32 %v4099_v51, %v8318_v60  ;;  %v5558_v57 = vpop.f32.mrb[158].mxu1 }
 0x32e   : > { %v4111_v2 = vadd.f32 %v5558_v57, %v8333_v1  ;;  %v4102_v9 = vpop.f32.mrb[159].mxu1  ;;  %v4192_v5 = vmax.f32 %v4108_v39, 0.0 }
 0x32f   : > { %v4103_v38 = vadd.f32 %v4102_v9, %v8321_v63  ;;  %v4190_v52 = vmax.f32 %v4100_v33, 0.0 }
 0x330   : > { %v4193_v44 = vmax.f32 %v4111_v2, 0.0 }
 0x331   : > { %v4191_v25 = vmax.f32 %v4103_v38, 0.0 }
 0x332   : > { %v4217_v61 = vpack.c.bf16 %v4193_v44, %v4192_v5 }
 0x333   : > { %v4216_v24 = vpack.c.bf16 %v4191_v25, %v4190_v52  ;;  %v5407_v13 = vpop.f32.mrb[128].mxu0 }
 0x334   : > { %v5408_v35 = vpop.f32.mrb[129].mxu0 }
 0x335   : > { %v5409_v59 = vadd.f32 %v5408_v35, %v5407_v13  ;;  %v5410_v50 = vpop.f32.mrb[130].mxu0  ;;  %5603 = vmatprep.mubr.bf16.mxu0 %v4216_v24 }
 0x336   : > { %v5411_v21 = vpop.f32.mrb[131].mxu0  ;;  %5604 = vmatmul.mubr.bf16.gmra.mrb[156].mxu0 %v4217_v61 }
 0x337   : > { %v5412_v60 = vadd.f32 %v5411_v21, %v5410_v50  ;;  %v3987_v58 = vadd.f32 %v5409_v59, %v8300_v16 }
 0x339   : > { %v3990_v1 = vadd.f32 %v5412_v60, %v8303_v10 }
 0x33b   : > { %v5561_v11 = vpop.f32.mrb[160].mxu1 }
 0x33c   : > { %v4124_v63 = vadd.f32 %v5561_v11, %v8352_v20  ;;  %v4115_v3 = vpop.f32.mrb[161].mxu1 }
 0x33d   : > { %v4116_v36 = vadd.f32 %v4115_v3, %v8342_v37  ;;  %v5562_v41 = vpop.f32.mrb[162].mxu1 }
 0x33e   : > { %v4127_v46 = vadd.f32 %v5562_v41, %v8355_v18  ;;  %v4118_v7 = vpop.f32.mrb[163].mxu1  ;;  %v4196_v47 = vmax.f32 %v4124_v63, 0.0 }
 0x33f   : > { %v4119_v49 = vadd.f32 %v4118_v7, %v8345_v31  ;;  %v4194_v15 = vmax.f32 %v4116_v36, 0.0 }
 0x340   : > { %v4197_v30 = vmax.f32 %v4127_v46, 0.0 }
 0x341   : > { %v4195_v43 = vmax.f32 %v4119_v49, 0.0 }
 0x342   : > { %v4219_v29 = vpack.c.bf16 %v4197_v30, %v4196_v47 }
 0x343   : > { %v4218_v16 = vpack.c.bf16 %v4195_v43, %v4194_v15  ;;  %v5413_v4 = vpop.f32.mrb[132].mxu0 }
 0x344   : > { %v5414_v10 = vpop.f32.mrb[133].mxu0 }
 0x345   : > { %v5415_v12 = vadd.f32 %v5414_v10, %v5413_v4  ;;  %v5416_v40 = vpop.f32.mrb[134].mxu0  ;;  %5607 = vmatprep.mubr.bf16.mxu0 %v4218_v16 }
 0x346   : > { %v5417_v20 = vpop.f32.mrb[135].mxu0  ;;  %5608 = vmatmul.mubr.bf16.gmra.mrb[160].mxu0 %v4219_v29 }
 0x347   : > { %v5418_v37 = vadd.f32 %v5417_v20, %v5416_v40  ;;  %v3995_v19 = vadd.f32 %v5415_v12, %v8312_v27 }
 0x349   : > { %v3998_v18 = vadd.f32 %v5418_v37, %v8315_v45 }
 0x34b   : > { %v5565_v8 = vpop.f32.mrb[164].mxu1 }
 0x34c   : > { %v4140_v31 = vadd.f32 %v5565_v8, %v3979_v23  ;;  %v4131_v0 = vpop.f32.mrb[165].mxu1  ;;  %v5772_v8 = vld [vmem:[%s6008_s13 + $0x10] sm:$0xff] }
 0x34d   : > { %v4132_v55 = vadd.f32 %v4131_v0, %v8362_v28  ;;  %v5566_v48 = vpop.f32.mrb[166].mxu1 }
 0x34e   : > { %v4143_v54 = vadd.f32 %v5566_v48, %v3982_v42  ;;  %v4134_v62 = vpop.f32.mrb[167].mxu1  ;;  %v4200_v53 = vmax.f32 %v4140_v31, 0.0  ;;  %v5773_v48 = vld [vmem:[%s6008_s13] sm:$0xff] }
 0x34f   : > { %v4135_v17 = vadd.f32 %v4134_v62, %v8365_v14  ;;  %v4198_v6 = vmax.f32 %v4132_v55, 0.0 }
 0x350   : > { %v4201_v26 = vmax.f32 %v4143_v54, 0.0 }
 0x351   : > { %v4199_v39 = vmax.f32 %v4135_v17, 0.0 }
 0x352   : > { %v4221_v51 = vpack.c.bf16 %v4201_v26, %v4200_v53  ;;  %v5774_v53 = vld [vmem:[%s6008_s13 + $0x18] sm:$0xff] }
 0x353   : > { %v4220_v33 = vpack.c.bf16 %v4199_v39, %v4198_v6  ;;  %v5419_v57 = vpop.f32.mrb[136].mxu0  ;;  %v5775_v39 = vld [vmem:[%s6008_s13 + $0x8] sm:$0xff] }
 0x354   : > { %v5420_v27 = vpop.f32.mrb[137].mxu0 }
 0x355   : > { %v5421_v2 = vadd.f32 %v5420_v27, %v5419_v57  ;;  %v5422_v45 = vpop.f32.mrb[138].mxu0  ;;  %5611 = vmatprep.mubr.bf16.mxu0 %v4220_v33 }
 0x356   : > { %v5423_v23 = vpop.f32.mrb[139].mxu0  ;;  %5612 = vmatmul.mubr.bf16.gmra.mrb[164].mxu0 %v4221_v51 }
 0x357   : > { %v5424_v9 = vadd.f32 %v5423_v23, %v5422_v45  ;;  %v4003_v28 = vadd.f32 %v5421_v2, %v8324_v56 }
 0x359   : > { %v4006_v42 = vadd.f32 %v5424_v9, %v8327_v34 }
 0x35b   : > { %v5569_v38 = vpop.f32.mrb[168].mxu1 }
 0x35c   : > { %v4156_v14 = vadd.f32 %v5569_v38, %v3995_v19  ;;  %v4147_v5 = vpop.f32.mrb[169].mxu1 }
 0x35d   : > { %v4148_v44 = vadd.f32 %v4147_v5, %v3987_v58  ;;  %v5570_v52 = vpop.f32.mrb[170].mxu1  ;;  %v5777_v5 = vld [vmem:[%s6008_s13 + $0x20] sm:$0xff] }
 0x35e   : > { %v4159_v25 = vadd.f32 %v5570_v52, %v3998_v18  ;;  %v4150_v61 = vpop.f32.mrb[171].mxu1  ;;  %v4204_v13 = vmax.f32 %v4156_v14, 0.0 }
 0x35f   : > { %v4151_v24 = vadd.f32 %v4150_v61, %v3990_v1  ;;  %v4202_v59 = vmax.f32 %v4148_v44, 0.0  ;;  %v5778_v61 = vld [vmem:[%s6008_s13 + $0x38] sm:$0xff] }
 0x360   : > { %v4205_v35 = vmax.f32 %v4159_v25, 0.0 }
 0x361   : > { %v4203_v50 = vmax.f32 %v4151_v24, 0.0 }
 0x362   : > { %v4223_v21 = vpack.c.bf16 %v4205_v35, %v4204_v13  ;;  %v5779_v35 = vld [vmem:[%s6008_s13 + $0x28] sm:$0xff] }
 0x363   : > { %v4222_v60 = vpack.c.bf16 %v4203_v50, %v4202_v59 }
 0x364   : > { %v5425_v11 = vpop.f32.mrb[140].mxu0 }
 0x365   : > { %v5426_v63 = vpop.f32.mrb[141].mxu0  ;;  %5615 = vmatprep.mubr.bf16.mxu0 %v4222_v60 }
 0x366   : > { %v5427_v56 = vadd.f32 %v5426_v63, %v5425_v11  ;;  %v5428_v3 = vpop.f32.mrb[142].mxu0  ;;  %5616 = vmatmul.mubr.bf16.gmra.mrb[168].mxu0 %v4223_v21 }
 0x367   : > { %v5429_v34 = vpop.f32.mrb[143].mxu0 }
 0x368   : > { %v5430_v36 = vadd.f32 %v5429_v34, %v5428_v3  ;;  %v4011_v58 = vadd.f32 %v5427_v56, %v8336_v32  ;;  %v5780_v34 = vld [vmem:[%s6008_s13 + $0x50] sm:$0xff] }
 0x36a   : > { %v4014_v41 = vadd.f32 %v5430_v36, %v8339_v22  ;;  %v8395_v22 = vld [vmem:[%s8556_s7] ss:$0 sm:$0xff] }
 0x36c   : > { %v5573_v46 = vpop.f32.mrb[172].mxu1 }
 0x36d   : > { %v4172_v1 = vadd.f32 %v5573_v46, %v4011_v58  ;;  %v4163_v7 = vpop.f32.mrb[173].mxu1  ;;  %v5781_v46 = vld [vmem:[%s6008_s13 + $0x40] sm:$0xff] }
 0x36e   : > { %v4164_v49 = vadd.f32 %v4163_v7, %v4003_v28  ;;  %v5574_v47 = vpop.f32.mrb[174].mxu1  ;;  %v5776_v28 = vld [vmem:[%s6008_s13 + $0x30] sm:$0xff] }
 0x36f   : > { %v4175_v30 = vadd.f32 %v5574_v47, %v4014_v41  ;;  %v4166_v15 = vpop.f32.mrb[175].mxu1  ;;  %v4208_v29 = vmax.f32 %v4172_v1, 0.0  ;;  %v5782_v47 = vld [vmem:[%s6008_s13 + $0x58] sm:$0xff] }
 0x370   : > { %v4167_v43 = vadd.f32 %v4166_v15, %v4006_v42  ;;  %v4206_v4 = vmax.f32 %v4164_v49, 0.0 }
 0x371   : > { %v4209_v16 = vmax.f32 %v4175_v30, 0.0 }
 0x372   : > { %v4207_v10 = vmax.f32 %v4167_v43, 0.0  ;;  %v5783_v43 = vld [vmem:[%s6008_s13 + $0x48] sm:$0xff] }
 0x373   : > { %v4225_v12 = vpack.c.bf16 %v4209_v16, %v4208_v29 }
 0x374   : > { %v4224_v32 = vpack.c.bf16 %v4207_v10, %v4206_v4 }
 0x376   : > { %5619 = vmatprep.mubr.bf16.mxu0 %v4224_v32 }
 0x377   : > { %5620 = vmatmul.mubr.bf16.gmra.mrb[172].mxu0 %v4225_v12 }
 0x3d9   : > { %v5593_v40 = vpop.f32.mrb[144].mxu0 }
 0x3da   : > { %v4340_v20 = vadd.f32 %v5593_v40, %v8395_v22  ;;  %v4331_v37 = vpop.f32.mrb[145].mxu0 }
 0x3db   : > { %v4332_v19 = vadd.f32 %v8395_v22, %v4331_v37  ;;  %v5594_v18 = vpop.f32.mrb[146].mxu0  ;;  %v5784_v37 = vld [vmem:[%s6008_s13 + $0x70] sm:$0xff] }
 0x3dc   : > { %v4460_v31 = vadd.f32 %v5772_v8, %v4340_v20  ;;  %v4343_v0 = vadd.f32 %v5594_v18, %v8395_v22  ;;  %v4334_v55 = vpop.f32.mrb[147].mxu0 }
 0x3dd   : > { %v4458_v54 = vadd.f32 %v5773_v48, %v4332_v19  ;;  %v4335_v62 = vadd.f32 %v8395_v22, %v4334_v55 }
 0x3de   : > { %v4492_v17 = vmax.f32 %v4460_v31, 0.0  ;;  %v4461_v26 = vadd.f32 %v5774_v53, %v4343_v0  ;;  %v5785_v31 = vld [vmem:[%s6008_s13 + $0x60] sm:$0xff]  ;;  %v5787_v53 = vld [vmem:[%s6008_s13 + $0x68] sm:$0xff] }
 0x3df   : > { %v4490_v6 = vmax.f32 %v4458_v54, 0.0  ;;  %v4459_v51 = vadd.f32 %v5775_v39, %v4335_v62  ;;  %v5786_v54 = vld [vmem:[%s6008_s13 + $0x78] sm:$0xff] }
 0x3e0   : > { %4524 = vst [vmem:[%s8407_s22 + $0x10] sm:$0xff] %v4492_v17  ;;  %v4493_v33 = vmax.f32 %v4461_v26, 0.0 }
 0x3e1   : > { %4522 = vst [vmem:[%s8407_s22] sm:$0xff] %v4490_v6  ;;  %v4491_v57 = vmax.f32 %v4459_v51, 0.0 }
 0x3e2   : > { %4525 = vst [vmem:[%s8407_s22 + $0x18] sm:$0xff] %v4493_v33 }
 0x3e3   : > { %4523 = vst [vmem:[%s8407_s22 + $0x8] sm:$0xff] %v4491_v57 }
 0x3e9   : > { %v5597_v27 = vpop.f32.mrb[148].mxu0 }
 0x3ea   : > { %v4356_v2 = vadd.f32 %v5597_v27, %v8395_v22  ;;  %v4347_v45 = vpop.f32.mrb[149].mxu0 }
 0x3eb   : > { %v4348_v23 = vadd.f32 %v8395_v22, %v4347_v45  ;;  %v5598_v9 = vpop.f32.mrb[150].mxu0  ;;  %v5788_v45 = vld [vmem:[%s6008_s13 + $0x90] sm:$0xff] }
 0x3ec   : > { %v4464_v42 = vadd.f32 %v5776_v28, %v4356_v2  ;;  %v4359_v38 = vadd.f32 %v5598_v9, %v8395_v22  ;;  %v4350_v14 = vpop.f32.mrb[151].mxu0 }
 0x3ed   : > { %v4462_v44 = vadd.f32 %v5777_v5, %v4348_v23  ;;  %v4351_v52 = vadd.f32 %v8395_v22, %v4350_v14 }
 0x3ee   : > { %v4496_v25 = vmax.f32 %v4464_v42, 0.0  ;;  %v4465_v24 = vadd.f32 %v5778_v61, %v4359_v38  ;;  %v5789_v42 = vld [vmem:[%s6008_s13 + $0x80] sm:$0xff]  ;;  %v5791_v61 = vld [vmem:[%s6008_s13 + $0x88] sm:$0xff] }
 0x3ef   : > { %v4494_v13 = vmax.f32 %v4462_v44, 0.0  ;;  %v4463_v59 = vadd.f32 %v5779_v35, %v4351_v52  ;;  %v5790_v44 = vld [vmem:[%s6008_s13 + $0x98] sm:$0xff] }
 0x3f0   : > { %4528 = vst [vmem:[%s8407_s22 + $0x30] sm:$0xff] %v4496_v25  ;;  %v4497_v50 = vmax.f32 %v4465_v24, 0.0 }
 0x3f1   : > { %4526 = vst [vmem:[%s8407_s22 + $0x20] sm:$0xff] %v4494_v13  ;;  %v4495_v21 = vmax.f32 %v4463_v59, 0.0 }
 0x3f2   : > { %4529 = vst [vmem:[%s8407_s22 + $0x38] sm:$0xff] %v4497_v50 }
 0x3f3   : > { %4527 = vst [vmem:[%s8407_s22 + $0x28] sm:$0xff] %v4495_v21 }
 0x3f9   : > { %v5601_v60 = vpop.f32.mrb[152].mxu0 }
 0x3fa   : > { %v4372_v11 = vadd.f32 %v5601_v60, %v8395_v22  ;;  %v4363_v63 = vpop.f32.mrb[153].mxu0 }
 0x3fb   : > { %v4364_v56 = vadd.f32 %v8395_v22, %v4363_v63  ;;  %v5602_v3 = vpop.f32.mrb[154].mxu0  ;;  %v5792_v63 = vld [vmem:[%s6008_s13 + $0xb0] sm:$0xff] }
 0x3fc   : > { %v4468_v36 = vadd.f32 %v5780_v34, %v4372_v11  ;;  %v4375_v58 = vadd.f32 %v5602_v3, %v8395_v22  ;;  %v4366_v41 = vpop.f32.mrb[155].mxu0 }
 0x3fd   : > { %v4466_v1 = vadd.f32 %v5781_v46, %v4364_v56  ;;  %v4367_v7 = vadd.f32 %v8395_v22, %v4366_v41 }
 0x3fe   : > { %v4500_v49 = vmax.f32 %v4468_v36, 0.0  ;;  %v4469_v30 = vadd.f32 %v5782_v47, %v4375_v58  ;;  %v5793_v36 = vld [vmem:[%s6008_s13 + $0xa0] sm:$0xff]  ;;  %v5795_v47 = vld [vmem:[%s6008_s13 + $0xa8] sm:$0xff] }
 0x3ff   : > { %v4498_v15 = vmax.f32 %v4466_v1, 0.0  ;;  %v4467_v29 = vadd.f32 %v5783_v43, %v4367_v7  ;;  %v5794_v1 = vld [vmem:[%s6008_s13 + $0xb8] sm:$0xff] }
 0x400   : > { %4532 = vst [vmem:[%s8407_s22 + $0x50] sm:$0xff] %v4500_v49  ;;  %v4501_v16 = vmax.f32 %v4469_v30, 0.0 }
 0x401   : > { %4530 = vst [vmem:[%s8407_s22 + $0x40] sm:$0xff] %v4498_v15  ;;  %v4499_v4 = vmax.f32 %v4467_v29, 0.0 }
 0x402   : > { %4533 = vst [vmem:[%s8407_s22 + $0x58] sm:$0xff] %v4501_v16 }
 0x403   : > { %4531 = vst [vmem:[%s8407_s22 + $0x48] sm:$0xff] %v4499_v4 }
 0x409   : > { %v5605_v10 = vpop.f32.mrb[156].mxu0 }
 0x40a   : > { %v4388_v12 = vadd.f32 %v5605_v10, %v8395_v22  ;;  %v4379_v32 = vpop.f32.mrb[157].mxu0 }
 0x40b   : > { %v4380_v40 = vadd.f32 %v8395_v22, %v4379_v32  ;;  %v5606_v20 = vpop.f32.mrb[158].mxu0  ;;  %v5796_v32 = vld [vmem:[%s6008_s13 + $0xd0] sm:$0xff] }
 0x40c   : > { %v4472_v19 = vadd.f32 %v5784_v37, %v4388_v12  ;;  %v4391_v18 = vadd.f32 %v5606_v20, %v8395_v22  ;;  %v4382_v8 = vpop.f32.mrb[159].mxu0 }
 0x40d   : > { %v4470_v0 = vadd.f32 %v5785_v31, %v4380_v40  ;;  %v4383_v55 = vadd.f32 %v8395_v22, %v4382_v8 }
 0x40e   : > { %v4504_v48 = vmax.f32 %v4472_v19, 0.0  ;;  %v4473_v62 = vadd.f32 %v5786_v54, %v4391_v18  ;;  %v5797_v19 = vld [vmem:[%s6008_s13 + $0xc0] sm:$0xff]  ;;  %v5799_v54 = vld [vmem:[%s6008_s13 + $0xc8] sm:$0xff] }
 0x40f   : > { %v4502_v17 = vmax.f32 %v4470_v0, 0.0  ;;  %v4471_v26 = vadd.f32 %v5787_v53, %v4383_v55  ;;  %v5798_v0 = vld [vmem:[%s6008_s13 + $0xd8] sm:$0xff] }
 0x410   : > { %4536 = vst [vmem:[%s8407_s22 + $0x70] sm:$0xff] %v4504_v48  ;;  %v4505_v6 = vmax.f32 %v4473_v62, 0.0 }
 0x411   : > { %4534 = vst [vmem:[%s8407_s22 + $0x60] sm:$0xff] %v4502_v17  ;;  %v4503_v39 = vmax.f32 %v4471_v26, 0.0 }
 0x412   : > { %4537 = vst [vmem:[%s8407_s22 + $0x78] sm:$0xff] %v4505_v6 }
 0x413   : > { %4535 = vst [vmem:[%s8407_s22 + $0x68] sm:$0xff] %v4503_v39 }
 0x419   : > { %v5609_v51 = vpop.f32.mrb[160].mxu0 }
 0x41a   : > { %v4404_v33 = vadd.f32 %v5609_v51, %v8395_v22  ;;  %v4395_v57 = vpop.f32.mrb[161].mxu0 }
 0x41b   : > { %v4396_v27 = vadd.f32 %v8395_v22, %v4395_v57  ;;  %v5610_v2 = vpop.f32.mrb[162].mxu0  ;;  %v5800_v57 = vld [vmem:[%s6008_s13 + $0xf0] sm:$0xff] }
 0x41c   : > { %v4476_v23 = vadd.f32 %v5788_v45, %v4404_v33  ;;  %v4407_v9 = vadd.f32 %v5610_v2, %v8395_v22  ;;  %v4398_v28 = vpop.f32.mrb[163].mxu0 }
 0x41d   : > { %v4474_v38 = vadd.f32 %v5789_v42, %v4396_v27  ;;  %v4399_v14 = vadd.f32 %v8395_v22, %v4398_v28 }
 0x41e   : > { %v4508_v5 = vmax.f32 %v4476_v23, 0.0  ;;  %v4477_v52 = vadd.f32 %v5790_v44, %v4407_v9  ;;  %v5801_v23 = vld [vmem:[%s6008_s13 + $0xe0] sm:$0xff]  ;;  %v5803_v44 = vld [vmem:[%s6008_s13 + $0xe8] sm:$0xff] }
 0x41f   : > { %v4506_v25 = vmax.f32 %v4474_v38, 0.0  ;;  %v4475_v24 = vadd.f32 %v5791_v61, %v4399_v14  ;;  %v5802_v38 = vld [vmem:[%s6008_s13 + $0xf8] sm:$0xff]  ;;  %s5804_s13 = scalar_lea.vmem %s8501_s24, 4096 }
 0x420   : > { %4540 = vst [vmem:[%s8407_s22 + $0x90] sm:$0xff] %v4508_v5  ;;  %v4509_v13 = vmax.f32 %v4477_v52, 0.0  ;;  %p5805_p11 = scmp.ne.s32.totalorder %s8501_s24, %s5804_s13  ;;  %p5812_p1 = scmp.lt.s32.totalorder %s5810_s19, %s5804_s13 }
 0x421   : > { %4538 = vst [vmem:[%s8407_s22 + $0x80] sm:$0xff] %v4506_v25  ;;  %v4507_v35 = vmax.f32 %v4475_v24, 0.0 }
 0x422   : > { %4541 = vst [vmem:[%s8407_s22 + $0x98] sm:$0xff] %v4509_v13  ;;  %p5806_p12 = pnand %p5805_p11, %p5955_p5  ;;  %p5813_p2 = por %p5812_p1, %p5811_p0 }
 0x423   : > { %4539 = vst [vmem:[%s8407_s22 + $0x88] sm:$0xff] %v4507_v35 }
 0x424   : > { %p5807_p13 = pneg %p5806_p12 }
 0x426   : > { %p5814_p3 = pnand %p5813_p2, %p5807_p13 }
 0x429   : > { %v5613_v59 = vpop.f32.mrb[164].mxu0 }
 0x42a   : > { %v4420_v50 = vadd.f32 %v5613_v59, %v8395_v22  ;;  %v4411_v21 = vpop.f32.mrb[165].mxu0 }
 0x42b   : > { %v4412_v60 = vadd.f32 %v8395_v22, %v4411_v21  ;;  %v5614_v11 = vpop.f32.mrb[166].mxu0 }
 0x42c   : > { %v4480_v56 = vadd.f32 %v5792_v63, %v4420_v50  ;;  %v4423_v3 = vadd.f32 %v5614_v11, %v8395_v22  ;;  %v4414_v34 = vpop.f32.mrb[167].mxu0 }
 0x42d   : > { %v4478_v58 = vadd.f32 %v5793_v36, %v4412_v60  ;;  %v4415_v41 = vadd.f32 %v8395_v22, %v4414_v34 }
 0x42e   : > { %v4512_v46 = vmax.f32 %v4480_v56, 0.0  ;;  %v4481_v7 = vadd.f32 %v5794_v1, %v4423_v3 }
 0x42f   : > { %v4510_v49 = vmax.f32 %v4478_v58, 0.0  ;;  %v4479_v30 = vadd.f32 %v5795_v47, %v4415_v41 }
 0x430   : > { %4544 = vst [vmem:[%s8407_s22 + $0xb0] sm:$0xff] %v4512_v46  ;;  %v4513_v15 = vmax.f32 %v4481_v7, 0.0 }
 0x431   : > { %4542 = vst [vmem:[%s8407_s22 + $0xa0] sm:$0xff] %v4510_v49  ;;  %v4511_v43 = vmax.f32 %v4479_v30, 0.0 }
 0x432   : > { %4545 = vst [vmem:[%s8407_s22 + $0xb8] sm:$0xff] %v4513_v15 }
 0x433   : > { %4543 = vst [vmem:[%s8407_s22 + $0xa8] sm:$0xff] %v4511_v43 }
 0x439   : > { %v5617_v29 = vpop.f32.mrb[168].mxu0 }
 0x43a   : > { %v4436_v16 = vadd.f32 %v5617_v29, %v8395_v22  ;;  %v4427_v4 = vpop.f32.mrb[169].mxu0 }
 0x43b   : > { %v4428_v10 = vadd.f32 %v8395_v22, %v4427_v4  ;;  %v5618_v12 = vpop.f32.mrb[170].mxu0 }
 0x43c   : > { %v4484_v40 = vadd.f32 %v5796_v32, %v4436_v16  ;;  %v4439_v20 = vadd.f32 %v5618_v12, %v8395_v22  ;;  %v4430_v37 = vpop.f32.mrb[171].mxu0 }
 0x43d   : > { %v4482_v18 = vadd.f32 %v5797_v19, %v4428_v10  ;;  %v4431_v8 = vadd.f32 %v8395_v22, %v4430_v37 }
 0x43e   : > { %v4516_v31 = vmax.f32 %v4484_v40, 0.0  ;;  %v4485_v55 = vadd.f32 %v5798_v0, %v4439_v20 }
 0x43f   : > { %v4514_v48 = vmax.f32 %v4482_v18, 0.0  ;;  %v4483_v62 = vadd.f32 %v5799_v54, %v4431_v8 }
 0x440   : > { %4548 = vst [vmem:[%s8407_s22 + $0xd0] sm:$0xff] %v4516_v31  ;;  %v4517_v17 = vmax.f32 %v4485_v55, 0.0 }
 0x441   : > { %4546 = vst [vmem:[%s8407_s22 + $0xc0] sm:$0xff] %v4514_v48  ;;  %v4515_v53 = vmax.f32 %v4483_v62, 0.0 }
 0x442   : > { %4549 = vst [vmem:[%s8407_s22 + $0xd8] sm:$0xff] %v4517_v17 }
 0x443   : > { %4547 = vst [vmem:[%s8407_s22 + $0xc8] sm:$0xff] %v4515_v53 }
 0x44a   : > { %v5621_v26 = vpop.f32.mrb[172].mxu0 }
 0x44b   : > { %v4452_v6 = vadd.f32 %v5621_v26, %v8395_v22  ;;  %v4443_v39 = vpop.f32.mrb[173].mxu0 }
 0x44c   : > { %v4444_v51 = vadd.f32 %v8395_v22, %v4443_v39  ;;  %v5622_v33 = vpop.f32.mrb[174].mxu0 }
 0x44d   : > { %v4488_v27 = vadd.f32 %v5800_v57, %v4452_v6  ;;  %v4455_v2 = vadd.f32 %v5622_v33, %v8395_v22  ;;  %v4446_v45 = vpop.f32.mrb[175].mxu0 }
 0x44e   : > { %v4486_v9 = vadd.f32 %v5801_v23, %v4444_v51  ;;  %v4447_v28 = vadd.f32 %v8395_v22, %v4446_v45 }
 0x44f   : > { %v4520_v42 = vmax.f32 %v4488_v27, 0.0  ;;  %v4489_v14 = vadd.f32 %v5802_v38, %v4455_v2 }
 0x450   : > { %v4518_v5 = vmax.f32 %v4486_v9, 0.0  ;;  %v4487_v52 = vadd.f32 %v5803_v44, %v4447_v28 }
 0x451   : > { %4552 = vst [vmem:[%s8407_s22 + $0xf0] sm:$0xff] %v4520_v42  ;;  %v4521_v25 = vmax.f32 %v4489_v14, 0.0 }
 0x452   : > { %4550 = vst [vmem:[%s8407_s22 + $0xe0] sm:$0xff] %v4518_v5  ;;  %v4519_v22 = vmax.f32 %v4487_v52, 0.0 }
 0x453   : > { %4553 = vst [vmem:[%s8407_s22 + $0xf8] sm:$0xff] %v4521_v25 }
 0x454   : > { %4551 = vst [vmem:[%s8407_s22 + $0xe8] sm:$0xff] %v4519_v22 }
 0x455   : > { %5817 = shalt.err (!%p5814_p3)
}
 0x456   : > { %s5818_s18 = scalar_lea.hbm %s8499_s10, 4096  ;;  %s5822_s22 = scalar_lea.hbm %s8557_s8, 8192 }
 0x457   : > { %p5819_p4 = scmp.ne.s32.totalorder %s8499_s10, %s5818_s18  ;;  %p5823_p9 = scmp.lt.u32.totalorder %s8499_s10, %s8557_s8 }
 0x458   : > { %p5824_p10 = scmp.lt.u32.totalorder %s5822_s22, %s5818_s18  ;;  %p5826_p12 = scmp.lt.u32.totalorder %s5818_s18, %s8499_s10 }
 0x459   : > { %p5820_p7 = pnand %p5819_p4, %p5955_p5 }
 0x45a   : > { %p5825_p11 = por %p5824_p10, %p5823_p9 }
 0x45b   : > { %p5821_p8 = pneg %p5820_p7 }
 0x45c   : > { %p5827_p13 = por %p5826_p12, %p5825_p11 }
 0x45e   : > { %p5828_p0 = pnand %p5827_p13, %p5821_p8 }
 0x460   : > { %5831 = shalt.err (!%p5828_p0)
}
 0x461   : > { %s5870_s26 = smov 128   ;;  %s5871_s13 = smov 8  }
 0x462   : > { %5639 = dma.vmem_to_hbm [thread:$0]  (%p5955_p5), %s8501_s24, 4096, %s8499_s10, %s8508_s9, %s5870_s26, %s5870_s26, %s5871_s13  }
 0x463 PF: > { %p5645_p1 = scmp.ge.s32.totalorder %s5866_s30, 2  ;;  %s4583_s12 = sand.u32 1, %s5854_s27  }
 0x464   : > { %s4584_s17 = scalar_lea.sflag [#allocation3], %s4583_s12 }
 0x465   : > { %p5642_p2 = pnand %p5645_p1, %p5959_p6 }
 0x467   : > { %5849 = dma.done.wait (!%p5642_p2), %s4584_s17, 4096  }
 0x468   : > { %5851 = vsyncadd (!%p5642_p2), %s4584_s17, 4294963200  ;;  %p18_p3 = scmp.ge.s32.totalorder %s5942_s11, 4   ;;  %s8868_s27 = smov %s5858_s28 }
 0x469   : > { %s8869_s28 = smov %s5862_s29  ;;  %s8870_s29 = smov %s5953_s14 }
 0x46a   : > { %s8871_s30 = smov %s5942_s11  ;;  %20 = sbr.rel (!%p18_p3) target bundleno = 3 (0x3), region = 94 }
 0x471   :  { %4589 = vsyncpa [#allocation3], 1 }
 0x472   :  { %4591 = vsyncpa [#allocation3 + $0x1], 1 }

</bundles_post_ra>
